<compile_context>
chip_gen: v7x
topology: tpu7x:2x2x1
jax: 0.10.0
libtpu: 0.0.40
codegen_flags: <defaults>
</compile_context>

<pallas_src>
import math

import jax
import jax.numpy as jnp
from jax import lax
from jax.experimental import pallas as pl
from jax.experimental.pallas import tpu as pltpu

EPS = 1e-5  # PyTorch BatchNorm2d default eps


# --------------------------------------------------------------------------
# Fused kernel
# --------------------------------------------------------------------------
def _make_fused_kernel(H, W, CIN, K1, C1, K2, C2, K3, C3, HID, ND):
    # conv1 over the (H, W) image, flat stride = W
    Ho1, Wo1 = H - (K1 - 1), W - (K1 - 1)
    L1 = (Ho1 - 1) * W + Wo1
    Hp1, Wp1 = Ho1 // 2, Wo1 // 2
    # conv2 over the pooled (Hp1, Wp1) map, flat stride = Wp1
    Ho2, Wo2 = Hp1 - (K2 - 1), Wp1 - (K2 - 1)
    L2 = (Ho2 - 1) * Wp1 + Wo2
    Hp2, Wp2 = Ho2 // 2, Wo2 // 2
    # conv3 over the pooled (Hp2, Wp2) map, flat stride = Wp2
    Ho3, Wo3 = Hp2 - (K3 - 1), Wp2 - (K3 - 1)
    L3 = (Ho3 - 1) * Wp2 + Wo3
    assert Ho3 >= 1 and Wo3 >= 1, "input spatial size too small for conv stack"

    def kernel(x_ref, w1_ref, s1_ref, b1_ref, w2_ref, s2_ref, b2_ref,
               w3_ref, s3_ref, b3_ref, sel1_ref, sel2_ref, mvec_ref,
               wf1_ref, bf1_ref, wf2_ref, bf2_ref,
               out_ref,
               c1_ref, p1_ref, c2_ref, p2_ref):
        f32 = jnp.float32

        def conv_slab(load, w_ref, s_ref, b_ref, k, stride, L):
            """Valid conv (stride 1) + folded-BN + ReLU over the whole layer.

            load(off, L) -> (L, Cin) flat slab of the input map shifted by
            `off` flat positions.  Returns the (L, Cout) flat output slab
            (valid output (ho, wo) lives at flat row ho*stride + wo)."""
            acc = None
            for dy in range(k):
                for dx in range(k):
                    xs = load(dy * stride + dx, L)          # (L, Cin)
                    t = jnp.dot(xs, w_ref[dy * k + dx],
                                preferred_element_type=f32)
                    acc = t if acc is None else acc + t
            return jnp.maximum(acc * s_ref[...] + b_ref[...], 0.0)

        def maxpool(c_ref, L, stride, sel_ref, p_ref):
            """2x2 / stride-2 max-pool from a flat conv-output scratch.

            vertical pair-max + horizontal pair-max via offset slabs (VPU),
            then one constant 0/1 selection matmul compacts the pooled values
            into the next layer's flat (Hp*Wp, C) layout."""
            vm1 = jnp.maximum(c_ref[0:L - stride, :], c_ref[stride:L, :])
            vm2 = jnp.maximum(vm1[:-1, :], vm1[1:, :])      # (L-stride-1, C)
            p_ref[...] = jnp.dot(sel_ref[...], vm2,
                                 preferred_element_type=f32)

        # ---- conv1 + BN + ReLU (flat, stride W) -> maxpool -> p1 -----------
        c1_ref[...] = conv_slab(lambda s, L: x_ref[0, s:s + L, :],
                                w1_ref, s1_ref, b1_ref, K1, W, L1)
        maxpool(c1_ref, L1, W, sel1_ref, p1_ref)

        # ---- conv2 + BN + ReLU (flat, stride Wp1) -> maxpool -> p2 ---------
        c2_ref[...] = conv_slab(lambda s, L: p1_ref[s:s + L, :],
                                w2_ref, s2_ref, b2_ref, K2, Wp1, L2)
        maxpool(c2_ref, L2, Wp1, sel2_ref, p2_ref)

        # ---- conv3 + BN + ReLU fused with the spatial mean -----------------
        y3 = conv_slab(lambda s, L: p2_ref[s:s + L, :],
                       w3_ref, s3_ref, b3_ref, K3, Wp2, L3)   # (L3, C3)
        feat = jnp.dot(mvec_ref[...], y3,
                       preferred_element_type=f32)            # (1, C3)

        # ---- fused MLP heads -----------------------------------------------
        hidden = jnp.maximum(
            jnp.dot(feat, wf1_ref[...], preferred_element_type=f32)
            + bf1_ref[...], 0.0)                              # (1, 2*HID)
        out = jnp.dot(hidden, wf2_ref[...],
                      preferred_element_type=f32) + bf2_ref[...]  # (1, ND+1)
        out_ref[0, :, :] = out

    dims = dict(Ho1=Ho1, Wo1=Wo1, L1=L1, Hp1=Hp1, Wp1=Wp1,
                Ho2=Ho2, Wo2=Wo2, L2=L2, Hp2=Hp2, Wp2=Wp2,
                Ho3=Ho3, Wo3=Wo3, L3=L3)
    return kernel, dims


# --------------------------------------------------------------------------
# Parameter / constant preprocessing
# --------------------------------------------------------------------------
def _fold_conv_bn(w, conv_b, gamma, beta, rmean, rvar):
    """(Cout,Cin,kh,kw) conv + BN(eval) -> per-(dy,dx) matmul blocks + scale/bias."""
    cout, cin, kh, kw = w.shape
    wblocks = jnp.transpose(w, (2, 3, 1, 0)).reshape(kh * kw, cin, cout)
    scale = gamma / jnp.sqrt(rvar + EPS)
    bias = beta + (conv_b - rmean) * scale
    return wblocks, scale.reshape(1, cout), bias.reshape(1, cout)


def _fuse_heads(wl1, bl1, wl2, bl2, ws1, bs1, ws2, bs2):
    """fc_logits & fc_shift: concat first layers, block-diagonal second layers."""
    hid = wl1.shape[0]
    nd = wl2.shape[0]
    wf1 = jnp.concatenate([wl1.T, ws1.T], axis=1)             # (C3, 2*hid)
    bf1 = jnp.concatenate([bl1, bs1]).reshape(1, 2 * hid)
    wf2 = jnp.zeros((2 * hid, nd + 1), jnp.float32)
    wf2 = wf2.at[:hid, :nd].set(wl2.T)
    wf2 = wf2.at[hid:, nd:].set(ws2.T)
    bf2 = jnp.concatenate([bl2, bs2]).reshape(1, nd + 1)
    return wf1, bf1, wf2, bf2


def _pool_select(Hp, Wp, stride, L):
    """0/1 matrix picking flat row 2*(hp*stride) + 2*wp out of the pair-maxed
    slab of length L - stride - 1, compacted to flat (Hp*Wp) pooled layout."""
    i = jnp.arange(Hp * Wp)
    j = 2 * (i // Wp) * stride + 2 * (i % Wp)
    return jax.nn.one_hot(j, L - stride - 1, dtype=jnp.float32)


def _mean_select(Ho, Wo, stride, L):
    """(1, L) vector: 1/(Ho*Wo) at valid conv-output rows, 0 at garbage rows."""
    valid = (jnp.arange(L) % stride) < Wo
    return (valid.astype(jnp.float32) / float(Ho * Wo)).reshape(1, L)


# --------------------------------------------------------------------------
# Forward pass (mirrors CelebReconstructor.forward) — one pallas_call total
# --------------------------------------------------------------------------
def celeb_reconstructor_forward(params, x1, x2):
    B, C, H, W = x1.shape
    # NCHW -> NHWC; torch.cat(dim=1) == channel concat (x1 channels first);
    # flatten spatial in the wrapper (free) so the kernel sees flat slabs.
    x = jnp.concatenate([jnp.transpose(x1, (0, 2, 3, 1)),
                         jnp.transpose(x2, (0, 2, 3, 1))], axis=-1)
    CIN = x.shape[-1]
    x = x.reshape(B, H * W, CIN)

    w1, s1, b1 = _fold_conv_bn(*params["conv1"])
    w2, s2, b2 = _fold_conv_bn(*params["conv2"])
    w3, s3, b3 = _fold_conv_bn(*params["conv3"])
    wf1, bf1, wf2, bf2 = _fuse_heads(*params["fc_logits"], *params["fc_shift"])

    K1, C1 = params["conv1"][0].shape[2], params["conv1"][0].shape[0]
    K2, C2 = params["conv2"][0].shape[2], params["conv2"][0].shape[0]
    K3, C3 = params["conv3"][0].shape[2], params["conv3"][0].shape[0]
    HID = params["fc_logits"][0].shape[0]
    ND = params["fc_logits"][2].shape[0]

    kernel, d = _make_fused_kernel(H, W, CIN, K1, C1, K2, C2, K3, C3, HID, ND)

    sel1 = _pool_select(d["Hp1"], d["Wp1"], W, d["L1"])
    sel2 = _pool_select(d["Hp2"], d["Wp2"], d["Wp1"], d["L2"])
    mvec = _mean_select(d["Ho3"], d["Wo3"], d["Wp2"], d["L3"])

    f32 = jnp.float32
    ND1 = ND + 1

    def const2d(a):
        return pl.BlockSpec(a.shape, lambda b: (0, 0))

    def const3d(a):
        return pl.BlockSpec(a.shape, lambda b: (0, 0, 0))

    out3 = pl.pallas_call(
        kernel,
        out_shape=jax.ShapeDtypeStruct((B, 1, ND1), f32),
        grid=(B,),
        in_specs=[
            pl.BlockSpec((1, H * W, CIN), lambda b: (b, 0, 0)),
            const3d(w1), const2d(s1), const2d(b1),
            const3d(w2), const2d(s2), const2d(b2),
            const3d(w3), const2d(s3), const2d(b3),
            const2d(sel1), const2d(sel2), const2d(mvec),
            const2d(wf1), const2d(bf1), const2d(wf2), const2d(bf2),
        ],
        out_specs=pl.BlockSpec((1, 1, ND1), lambda b: (b, 0, 0)),
        scratch_shapes=[
            pltpu.VMEM((d["L1"], C1), f32),                 # conv1 flat slab
            pltpu.VMEM((d["Hp1"] * d["Wp1"], C1), f32),     # pooled1 (flat)
            pltpu.VMEM((d["L2"], C2), f32),                 # conv2 flat slab
            pltpu.VMEM((d["Hp2"] * d["Wp2"], C2), f32),     # pooled2 (flat)
        ],
        compiler_params=pltpu.CompilerParams(
            dimension_semantics=("parallel",)),
    )(x, w1, s1, b1, w2, s2, b2, w3, s3, b3, sel1, sel2, mvec,
      wf1, bf1, wf2, bf2)

    out = out3.reshape(B, ND1)
    return out[:, :ND], jnp.squeeze(out[:, ND:])


# --------------------------------------------------------------------------
# Deterministic synthetic parameters
# --------------------------------------------------------------------------
def _conv_params(key, cout, cin, k):
    k1, k2, k3, k4, k5, k6 = jax.random.split(key, 6)
    w = 0.2 * jax.random.normal(k1, (cout, cin, k, k), jnp.float32)
    b = 0.1 * jax.random.normal(k2, (cout,), jnp.float32)
    gamma = 1.0 + 0.1 * jax.random.normal(k3, (cout,), jnp.float32)
    beta = 0.1 * jax.random.normal(k4, (cout,), jnp.float32)
    rmean = 0.1 * jax.random.normal(k5, (cout,), jnp.float32)
    rvar = 1.0 + 0.1 * jnp.abs(jax.random.normal(k6, (cout,), jnp.float32))
    return (w, b, gamma, beta, rmean, rvar)


def _linear_params(key, out_dim, in_dim):
    k1, k2 = jax.random.split(key)
    w = 0.1 * jax.random.normal(k1, (out_dim, in_dim), jnp.float32)
    b = 0.1 * jax.random.normal(k2, (out_dim,), jnp.float32)
    return w, b


def init_params(key, directions_count, num_channels=3, width=2):
    c1, c2, c3 = 3 * width, 8 * width, 60 * width
    hid = 42 * width
    nd = int(math.prod(directions_count))
    ks = jax.random.split(key, 7)
    return {
        "conv1": _conv_params(ks[0], c1, num_channels * 2, 2),
        "conv2": _conv_params(ks[1], c2, c1, 2),
        "conv3": _conv_params(ks[2], c3, c2, 4),
        "fc_logits": _linear_params(ks[3], hid, c3) + _linear_params(ks[4], nd, hid),
        "fc_shift": _linear_params(ks[5], hid, c3) + _linear_params(ks[6], 1, hid),
    }


# --------------------------------------------------------------------------
# Pure-JAX reference (XLA) for a correctness sanity check
# --------------------------------------------------------------------------
def _reference_forward(params, x1, x2):
    x = jnp.concatenate([jnp.transpose(x1, (0, 2, 3, 1)),
                         jnp.transpose(x2, (0, 2, 3, 1))], axis=-1)

    def conv_bn_relu(x, w, cb, gamma, beta, rmean, rvar):
        y = lax.conv_general_dilated(
            x, jnp.transpose(w, (2, 3, 1, 0)), window_strides=(1, 1),
            padding="VALID", dimension_numbers=("NHWC", "HWIO", "NHWC"))
        y = y + cb.reshape(1, 1, 1, -1)
        y = gamma * (y - rmean) / jnp.sqrt(rvar + EPS) + beta
        return jnp.maximum(y, 0.0)

    def pool(x):
        return lax.reduce_window(x, jnp.array(-jnp.inf, x.dtype), lax.max,
                                 (1, 2, 2, 1), (1, 2, 2, 1), "VALID")

    x = conv_bn_relu(x, *params["conv1"])
    x = pool(x)
    x = conv_bn_relu(x, *params["conv2"])
    x = pool(x)
    x = conv_bn_relu(x, *params["conv3"])
    feat = jnp.mean(x, axis=(1, 2))

    def head(f, w1, b1, w2, b2):
        h = jnp.maximum(f @ w1.T + b1, 0.0)
        return h @ w2.T + b2

    logits = head(feat, *params["fc_logits"])
    shift = head(feat, *params["fc_shift"])
    return logits, jnp.squeeze(shift)


# --------------------------------------------------------------------------
if __name__ == "__main__":
    directions_count = (5, 2)   # prod = 10
    width = 2
    B, C, H, W = 2, 3, 24, 24   # small CelebA-like crops; conv stack needs H,W >= 19

    key = jax.random.PRNGKey(0)
    kp, k1, k2 = jax.random.split(key, 3)
    params = init_params(kp, directions_count, num_channels=C, width=width)

    x1 = jax.random.normal(k1, (B, C, H, W), jnp.float32)
    x2 = jax.random.normal(k2, (B, C, H, W), jnp.float32)

    fwd = jax.jit(lambda a, b: celeb_reconstructor_forward(params, a, b))
    logits, shift = fwd(x1, x2)
    jax.block_until_ready((logits, shift))

    nd = int(math.prod(directions_count))
    assert logits.shape == (B, nd)
    assert shift.shape == (B,)

    ref_logits, ref_shift = _reference_forward(params, x1, x2)
    assert jnp.allclose(logits, ref_logits, rtol=5e-2, atol=1e-1), (
        float(jnp.max(jnp.abs(logits - ref_logits))))
    assert jnp.allclose(shift, ref_shift, rtol=5e-2, atol=1e-1), (
        float(jnp.max(jnp.abs(shift - ref_shift))))

    print("KERNEL_OK")
</pallas_src>

<mosaic_0001>
module attributes {stable_mosaic.version = 11 : i64} {
  func.func @kernel(%arg0: i32, %arg1: memref<1x576x6xf32, #tpu.memory_space<vmem>>, %arg2: memref<4x6x6xf32, #tpu.memory_space<vmem>>, %arg3: memref<1x6xf32, #tpu.memory_space<vmem>>, %arg4: memref<1x6xf32, #tpu.memory_space<vmem>>, %arg5: memref<4x6x16xf32, #tpu.memory_space<vmem>>, %arg6: memref<1x16xf32, #tpu.memory_space<vmem>>, %arg7: memref<1x16xf32, #tpu.memory_space<vmem>>, %arg8: memref<16x16x120xf32, #tpu.memory_space<vmem>>, %arg9: memref<1x120xf32, #tpu.memory_space<vmem>>, %arg10: memref<1x120xf32, #tpu.memory_space<vmem>>, %arg11: memref<121x526xf32, #tpu.memory_space<vmem>>, %arg12: memref<25x97xf32, #tpu.memory_space<vmem>>, %arg13: memref<1x7xf32, #tpu.memory_space<vmem>>, %arg14: memref<120x168xf32, #tpu.memory_space<vmem>>, %arg15: memref<1x168xf32, #tpu.memory_space<vmem>>, %arg16: memref<168x11xf32, #tpu.memory_space<vmem>>, %arg17: memref<1x11xf32, #tpu.memory_space<vmem>>, %arg18: memref<1x1x11xf32, #tpu.memory_space<vmem>>, %arg19: memref<551x6xf32, #tpu.memory_space<vmem>>, %arg20: memref<121x6xf32, #tpu.memory_space<vmem>>, %arg21: memref<109x16xf32, #tpu.memory_space<vmem>>, %arg22: memref<25x16xf32, #tpu.memory_space<vmem>>) attributes {dimension_semantics = [#tpu.dimension_semantics<parallel>], iteration_bounds = array<i64: 2>, scalar_prefetch = 0 : i64, scratch_operands = 4 : i64, tpu.core_type = #tpu.core_type<tc>, window_params = [{transform_indices = @transform_0, window_bounds = array<i64: 1, 576, 6>}, {pipeline_mode = #tpu.pipeline_mode<synchronous>, transform_indices = @transform_1, window_bounds = array<i64: 4, 6, 6>}, {pipeline_mode = #tpu.pipeline_mode<synchronous>, transform_indices = @transform_2, window_bounds = array<i64: 1, 6>}, {pipeline_mode = #tpu.pipeline_mode<synchronous>, transform_indices = @transform_3, window_bounds = array<i64: 1, 6>}, {pipeline_mode = #tpu.pipeline_mode<synchronous>, transform_indices = @transform_4, window_bounds = array<i64: 4, 6, 16>}, {pipeline_mode = #tpu.pipeline_mode<synchronous>, transform_indices = @transform_5, window_bounds = array<i64: 1, 16>}, {pipeline_mode = #tpu.pipeline_mode<synchronous>, transform_indices = @transform_6, window_bounds = array<i64: 1, 16>}, {pipeline_mode = #tpu.pipeline_mode<synchronous>, transform_indices = @transform_7, window_bounds = array<i64: 16, 16, 120>}, {pipeline_mode = #tpu.pipeline_mode<synchronous>, transform_indices = @transform_8, window_bounds = array<i64: 1, 120>}, {pipeline_mode = #tpu.pipeline_mode<synchronous>, transform_indices = @transform_9, window_bounds = array<i64: 1, 120>}, {pipeline_mode = #tpu.pipeline_mode<synchronous>, transform_indices = @transform_10, window_bounds = array<i64: 121, 526>}, {pipeline_mode = #tpu.pipeline_mode<synchronous>, transform_indices = @transform_11, window_bounds = array<i64: 25, 97>}, {pipeline_mode = #tpu.pipeline_mode<synchronous>, transform_indices = @transform_12, window_bounds = array<i64: 1, 7>}, {pipeline_mode = #tpu.pipeline_mode<synchronous>, transform_indices = @transform_13, window_bounds = array<i64: 120, 168>}, {pipeline_mode = #tpu.pipeline_mode<synchronous>, transform_indices = @transform_14, window_bounds = array<i64: 1, 168>}, {pipeline_mode = #tpu.pipeline_mode<synchronous>, transform_indices = @transform_15, window_bounds = array<i64: 168, 11>}, {pipeline_mode = #tpu.pipeline_mode<synchronous>, transform_indices = @transform_16, window_bounds = array<i64: 1, 11>}, {transform_indices = @transform_17, window_bounds = array<i64: 1, 1, 11>}]} {
    %c0 = arith.constant 0 : index
    %c0_0 = arith.constant 0 : index
    %c0_1 = arith.constant 0 : index
    %0 = vector.load %arg1[%c0, %c0_0, %c0_1] : memref<1x576x6xf32, #tpu.memory_space<vmem>>, vector<1x551x6xf32>
    %1 = vector.shape_cast %0 : vector<1x551x6xf32> to vector<551x6xf32>
    %c0_2 = arith.constant 0 : index
    %c0_3 = arith.constant 0 : index
    %c0_4 = arith.constant 0 : index
    %2 = vector.load %arg2[%c0_2, %c0_3, %c0_4] : memref<4x6x6xf32, #tpu.memory_space<vmem>>, vector<1x6x6xf32>
    %3 = vector.shape_cast %2 : vector<1x6x6xf32> to vector<6x6xf32>
    %cst = arith.constant dense<0.000000e+00> : vector<551x6xf32>
    %4 = tpu.matmul %1, %3, %cst {dimension_numbers = #tpu.dot_dimension_numbers<[1], [0], [0], [1], [0, 0, 1, 1], [], []>} : vector<551x6xf32>, vector<6x6xf32>, vector<551x6xf32> -> vector<551x6xf32>
    %c0_5 = arith.constant 0 : index
    %c1 = arith.constant 1 : index
    %c0_6 = arith.constant 0 : index
    %5 = vector.load %arg1[%c0_5, %c1, %c0_6] : memref<1x576x6xf32, #tpu.memory_space<vmem>>, vector<1x551x6xf32>
    %6 = vector.shape_cast %5 : vector<1x551x6xf32> to vector<551x6xf32>
    %c1_7 = arith.constant 1 : index
    %c0_8 = arith.constant 0 : index
    %c0_9 = arith.constant 0 : index
    %7 = vector.load %arg2[%c1_7, %c0_8, %c0_9] : memref<4x6x6xf32, #tpu.memory_space<vmem>>, vector<1x6x6xf32>
    %8 = vector.shape_cast %7 : vector<1x6x6xf32> to vector<6x6xf32>
    %cst_10 = arith.constant dense<0.000000e+00> : vector<551x6xf32>
    %9 = tpu.matmul %6, %8, %cst_10 {dimension_numbers = #tpu.dot_dimension_numbers<[1], [0], [0], [1], [0, 0, 1, 1], [], []>} : vector<551x6xf32>, vector<6x6xf32>, vector<551x6xf32> -> vector<551x6xf32>
    %10 = arith.addf %4, %9 : vector<551x6xf32>
    %c0_11 = arith.constant 0 : index
    %c24 = arith.constant 24 : index
    %c0_12 = arith.constant 0 : index
    %11 = vector.load %arg1[%c0_11, %c24, %c0_12] : memref<1x576x6xf32, #tpu.memory_space<vmem>>, vector<1x551x6xf32>
    %12 = vector.shape_cast %11 : vector<1x551x6xf32> to vector<551x6xf32>
    %c2 = arith.constant 2 : index
    %c0_13 = arith.constant 0 : index
    %c0_14 = arith.constant 0 : index
    %13 = vector.load %arg2[%c2, %c0_13, %c0_14] : memref<4x6x6xf32, #tpu.memory_space<vmem>>, vector<1x6x6xf32>
    %14 = vector.shape_cast %13 : vector<1x6x6xf32> to vector<6x6xf32>
    %cst_15 = arith.constant dense<0.000000e+00> : vector<551x6xf32>
    %15 = tpu.matmul %12, %14, %cst_15 {dimension_numbers = #tpu.dot_dimension_numbers<[1], [0], [0], [1], [0, 0, 1, 1], [], []>} : vector<551x6xf32>, vector<6x6xf32>, vector<551x6xf32> -> vector<551x6xf32>
    %16 = arith.addf %10, %15 : vector<551x6xf32>
    %c0_16 = arith.constant 0 : index
    %c25 = arith.constant 25 : index
    %c0_17 = arith.constant 0 : index
    %17 = vector.load %arg1[%c0_16, %c25, %c0_17] : memref<1x576x6xf32, #tpu.memory_space<vmem>>, vector<1x551x6xf32>
    %18 = vector.shape_cast %17 : vector<1x551x6xf32> to vector<551x6xf32>
    %c3 = arith.constant 3 : index
    %c0_18 = arith.constant 0 : index
    %c0_19 = arith.constant 0 : index
    %19 = vector.load %arg2[%c3, %c0_18, %c0_19] : memref<4x6x6xf32, #tpu.memory_space<vmem>>, vector<1x6x6xf32>
    %20 = vector.shape_cast %19 : vector<1x6x6xf32> to vector<6x6xf32>
    %cst_20 = arith.constant dense<0.000000e+00> : vector<551x6xf32>
    %21 = tpu.matmul %18, %20, %cst_20 {dimension_numbers = #tpu.dot_dimension_numbers<[1], [0], [0], [1], [0, 0, 1, 1], [], []>} : vector<551x6xf32>, vector<6x6xf32>, vector<551x6xf32> -> vector<551x6xf32>
    %22 = arith.addf %16, %21 : vector<551x6xf32>
    %c0_21 = arith.constant 0 : index
    %c0_22 = arith.constant 0 : index
    %23 = vector.load %arg3[%c0_21, %c0_22] : memref<1x6xf32, #tpu.memory_space<vmem>>, vector<1x6xf32>
    %24 = vector.broadcast %23 : vector<1x6xf32> to vector<551x6xf32>
    %25 = arith.mulf %22, %24 : vector<551x6xf32>
    %c0_23 = arith.constant 0 : index
    %c0_24 = arith.constant 0 : index
    %26 = vector.load %arg4[%c0_23, %c0_24] : memref<1x6xf32, #tpu.memory_space<vmem>>, vector<1x6xf32>
    %27 = vector.broadcast %26 : vector<1x6xf32> to vector<551x6xf32>
    %28 = arith.addf %25, %27 : vector<551x6xf32>
    %cst_25 = arith.constant 0.000000e+00 : f32
    %29 = vector.broadcast %cst_25 : f32 to vector<551x6xf32>
    %30 = arith.maximumf %28, %29 : vector<551x6xf32>
    %c0_26 = arith.constant 0 : index
    %c0_27 = arith.constant 0 : index
    %31 = vector.load %arg19[%c0_26, %c0_27] : memref<551x6xf32, #tpu.memory_space<vmem>>, vector<551x6xf32>
    tpu.vector_store %arg19[%c0_26, %c0_27], %30 {strides = array<i32>} : memref<551x6xf32, #tpu.memory_space<vmem>>, vector<551x6xf32>,
    %c0_28 = arith.constant 0 : index
    %c0_29 = arith.constant 0 : index
    %32 = vector.load %arg19[%c0_28, %c0_29] : memref<551x6xf32, #tpu.memory_space<vmem>>, vector<527x6xf32>
    %c24_30 = arith.constant 24 : index
    %c0_31 = arith.constant 0 : index
    %33 = vector.load %arg19[%c24_30, %c0_31] : memref<551x6xf32, #tpu.memory_space<vmem>>, vector<527x6xf32>
    %34 = arith.maximumf %32, %33 : vector<527x6xf32>
    %35 = vector.extract_strided_slice %34 {offsets = [0, 0], sizes = [526, 6], strides = [1, 1]} : vector<527x6xf32> to vector<526x6xf32>
    %36 = vector.extract_strided_slice %34 {offsets = [1, 0], sizes = [526, 6], strides = [1, 1]} : vector<527x6xf32> to vector<526x6xf32>
    %37 = arith.maximumf %35, %36 : vector<526x6xf32>
    %c0_32 = arith.constant 0 : index
    %c0_33 = arith.constant 0 : index
    %38 = vector.load %arg11[%c0_32, %c0_33] : memref<121x526xf32, #tpu.memory_space<vmem>>, vector<121x526xf32>
    %cst_34 = arith.constant dense<0.000000e+00> : vector<121x6xf32>
    %39 = tpu.matmul %38, %37, %cst_34 {dimension_numbers = #tpu.dot_dimension_numbers<[1], [0], [0], [1], [0, 0, 1, 1], [], []>} : vector<121x526xf32>, vector<526x6xf32>, vector<121x6xf32> -> vector<121x6xf32>
    %c0_35 = arith.constant 0 : index
    %c0_36 = arith.constant 0 : index
    %40 = vector.load %arg20[%c0_35, %c0_36] : memref<121x6xf32, #tpu.memory_space<vmem>>, vector<121x6xf32>
    tpu.vector_store %arg20[%c0_35, %c0_36], %39 {strides = array<i32>} : memref<121x6xf32, #tpu.memory_space<vmem>>, vector<121x6xf32>,
    %c0_37 = arith.constant 0 : index
    %c0_38 = arith.constant 0 : index
    %41 = vector.load %arg20[%c0_37, %c0_38] : memref<121x6xf32, #tpu.memory_space<vmem>>, vector<109x6xf32>
    %c0_39 = arith.constant 0 : index
    %c0_40 = arith.constant 0 : index
    %c0_41 = arith.constant 0 : index
    %42 = vector.load %arg5[%c0_39, %c0_40, %c0_41] : memref<4x6x16xf32, #tpu.memory_space<vmem>>, vector<1x6x16xf32>
    %43 = vector.shape_cast %42 : vector<1x6x16xf32> to vector<6x16xf32>
    %cst_42 = arith.constant dense<0.000000e+00> : vector<109x16xf32>
    %44 = tpu.matmul %41, %43, %cst_42 {dimension_numbers = #tpu.dot_dimension_numbers<[1], [0], [0], [1], [0, 0, 1, 1], [], []>} : vector<109x6xf32>, vector<6x16xf32>, vector<109x16xf32> -> vector<109x16xf32>
    %c1_43 = arith.constant 1 : index
    %c0_44 = arith.constant 0 : index
    %45 = vector.load %arg20[%c1_43, %c0_44] : memref<121x6xf32, #tpu.memory_space<vmem>>, vector<109x6xf32>
    %c1_45 = arith.constant 1 : index
    %c0_46 = arith.constant 0 : index
    %c0_47 = arith.constant 0 : index
    %46 = vector.load %arg5[%c1_45, %c0_46, %c0_47] : memref<4x6x16xf32, #tpu.memory_space<vmem>>, vector<1x6x16xf32>
    %47 = vector.shape_cast %46 : vector<1x6x16xf32> to vector<6x16xf32>
    %cst_48 = arith.constant dense<0.000000e+00> : vector<109x16xf32>
    %48 = tpu.matmul %45, %47, %cst_48 {dimension_numbers = #tpu.dot_dimension_numbers<[1], [0], [0], [1], [0, 0, 1, 1], [], []>} : vector<109x6xf32>, vector<6x16xf32>, vector<109x16xf32> -> vector<109x16xf32>
    %49 = arith.addf %44, %48 : vector<109x16xf32>
    %c11 = arith.constant 11 : index
    %c0_49 = arith.constant 0 : index
    %50 = vector.load %arg20[%c11, %c0_49] : memref<121x6xf32, #tpu.memory_space<vmem>>, vector<109x6xf32>
    %c2_50 = arith.constant 2 : index
    %c0_51 = arith.constant 0 : index
    %c0_52 = arith.constant 0 : index
    %51 = vector.load %arg5[%c2_50, %c0_51, %c0_52] : memref<4x6x16xf32, #tpu.memory_space<vmem>>, vector<1x6x16xf32>
    %52 = vector.shape_cast %51 : vector<1x6x16xf32> to vector<6x16xf32>
    %cst_53 = arith.constant dense<0.000000e+00> : vector<109x16xf32>
    %53 = tpu.matmul %50, %52, %cst_53 {dimension_numbers = #tpu.dot_dimension_numbers<[1], [0], [0], [1], [0, 0, 1, 1], [], []>} : vector<109x6xf32>, vector<6x16xf32>, vector<109x16xf32> -> vector<109x16xf32>
    %54 = arith.addf %49, %53 : vector<109x16xf32>
    %c12 = arith.constant 12 : index
    %c0_54 = arith.constant 0 : index
    %55 = vector.load %arg20[%c12, %c0_54] : memref<121x6xf32, #tpu.memory_space<vmem>>, vector<109x6xf32>
    %c3_55 = arith.constant 3 : index
    %c0_56 = arith.constant 0 : index
    %c0_57 = arith.constant 0 : index
    %56 = vector.load %arg5[%c3_55, %c0_56, %c0_57] : memref<4x6x16xf32, #tpu.memory_space<vmem>>, vector<1x6x16xf32>
    %57 = vector.shape_cast %56 : vector<1x6x16xf32> to vector<6x16xf32>
    %cst_58 = arith.constant dense<0.000000e+00> : vector<109x16xf32>
    %58 = tpu.matmul %55, %57, %cst_58 {dimension_numbers = #tpu.dot_dimension_numbers<[1], [0], [0], [1], [0, 0, 1, 1], [], []>} : vector<109x6xf32>, vector<6x16xf32>, vector<109x16xf32> -> vector<109x16xf32>
    %59 = arith.addf %54, %58 : vector<109x16xf32>
    %c0_59 = arith.constant 0 : index
    %c0_60 = arith.constant 0 : index
    %60 = vector.load %arg6[%c0_59, %c0_60] : memref<1x16xf32, #tpu.memory_space<vmem>>, vector<1x16xf32>
    %61 = vector.broadcast %60 : vector<1x16xf32> to vector<109x16xf32>
    %62 = arith.mulf %59, %61 : vector<109x16xf32>
    %c0_61 = arith.constant 0 : index
    %c0_62 = arith.constant 0 : index
    %63 = vector.load %arg7[%c0_61, %c0_62] : memref<1x16xf32, #tpu.memory_space<vmem>>, vector<1x16xf32>
    %64 = vector.broadcast %63 : vector<1x16xf32> to vector<109x16xf32>
    %65 = arith.addf %62, %64 : vector<109x16xf32>
    %cst_63 = arith.constant 0.000000e+00 : f32
    %66 = vector.broadcast %cst_63 : f32 to vector<109x16xf32>
    %67 = arith.maximumf %65, %66 : vector<109x16xf32>
    %c0_64 = arith.constant 0 : index
    %c0_65 = arith.constant 0 : index
    %68 = vector.load %arg21[%c0_64, %c0_65] : memref<109x16xf32, #tpu.memory_space<vmem>>, vector<109x16xf32>
    tpu.vector_store %arg21[%c0_64, %c0_65], %67 {strides = array<i32>} : memref<109x16xf32, #tpu.memory_space<vmem>>, vector<109x16xf32>,
    %c0_66 = arith.constant 0 : index
    %c0_67 = arith.constant 0 : index
    %69 = vector.load %arg21[%c0_66, %c0_67] : memref<109x16xf32, #tpu.memory_space<vmem>>, vector<98x16xf32>
    %c11_68 = arith.constant 11 : index
    %c0_69 = arith.constant 0 : index
    %70 = vector.load %arg21[%c11_68, %c0_69] : memref<109x16xf32, #tpu.memory_space<vmem>>, vector<98x16xf32>
    %71 = arith.maximumf %69, %70 : vector<98x16xf32>
    %72 = vector.extract_strided_slice %71 {offsets = [0, 0], sizes = [97, 16], strides = [1, 1]} : vector<98x16xf32> to vector<97x16xf32>
    %73 = vector.extract_strided_slice %71 {offsets = [1, 0], sizes = [97, 16], strides = [1, 1]} : vector<98x16xf32> to vector<97x16xf32>
    %74 = arith.maximumf %72, %73 : vector<97x16xf32>
    %c0_70 = arith.constant 0 : index
    %c0_71 = arith.constant 0 : index
    %75 = vector.load %arg12[%c0_70, %c0_71] : memref<25x97xf32, #tpu.memory_space<vmem>>, vector<25x97xf32>
    %cst_72 = arith.constant dense<0.000000e+00> : vector<25x16xf32>
    %76 = tpu.matmul %75, %74, %cst_72 {dimension_numbers = #tpu.dot_dimension_numbers<[1], [0], [0], [1], [0, 0, 1, 1], [], []>} : vector<25x97xf32>, vector<97x16xf32>, vector<25x16xf32> -> vector<25x16xf32>
    %c0_73 = arith.constant 0 : index
    %c0_74 = arith.constant 0 : index
    %77 = vector.load %arg22[%c0_73, %c0_74] : memref<25x16xf32, #tpu.memory_space<vmem>>, vector<25x16xf32>
    tpu.vector_store %arg22[%c0_73, %c0_74], %76 {strides = array<i32>} : memref<25x16xf32, #tpu.memory_space<vmem>>, vector<25x16xf32>,
    %c0_75 = arith.constant 0 : index
    %c0_76 = arith.constant 0 : index
    %78 = vector.load %arg22[%c0_75, %c0_76] : memref<25x16xf32, #tpu.memory_space<vmem>>, vector<7x16xf32>
    %c0_77 = arith.constant 0 : index
    %c0_78 = arith.constant 0 : index
    %c0_79 = arith.constant 0 : index
    %79 = vector.load %arg8[%c0_77, %c0_78, %c0_79] : memref<16x16x120xf32, #tpu.memory_space<vmem>>, vector<1x16x120xf32>
    %80 = vector.shape_cast %79 : vector<1x16x120xf32> to vector<16x120xf32>
    %cst_80 = arith.constant dense<0.000000e+00> : vector<7x120xf32>
    %81 = tpu.matmul %78, %80, %cst_80 {dimension_numbers = #tpu.dot_dimension_numbers<[1], [0], [0], [1], [0, 0, 1, 1], [], []>} : vector<7x16xf32>, vector<16x120xf32>, vector<7x120xf32> -> vector<7x120xf32>
    %c1_81 = arith.constant 1 : index
    %c0_82 = arith.constant 0 : index
    %82 = vector.load %arg22[%c1_81, %c0_82] : memref<25x16xf32, #tpu.memory_space<vmem>>, vector<7x16xf32>
    %c1_83 = arith.constant 1 : index
    %c0_84 = arith.constant 0 : index
    %c0_85 = arith.constant 0 : index
    %83 = vector.load %arg8[%c1_83, %c0_84, %c0_85] : memref<16x16x120xf32, #tpu.memory_space<vmem>>, vector<1x16x120xf32>
    %84 = vector.shape_cast %83 : vector<1x16x120xf32> to vector<16x120xf32>
    %cst_86 = arith.constant dense<0.000000e+00> : vector<7x120xf32>
    %85 = tpu.matmul %82, %84, %cst_86 {dimension_numbers = #tpu.dot_dimension_numbers<[1], [0], [0], [1], [0, 0, 1, 1], [], []>} : vector<7x16xf32>, vector<16x120xf32>, vector<7x120xf32> -> vector<7x120xf32>
    %86 = arith.addf %81, %85 : vector<7x120xf32>
    %c2_87 = arith.constant 2 : index
    %c0_88 = arith.constant 0 : index
    %87 = vector.load %arg22[%c2_87, %c0_88] : memref<25x16xf32, #tpu.memory_space<vmem>>, vector<7x16xf32>
    %c2_89 = arith.constant 2 : index
    %c0_90 = arith.constant 0 : index
    %c0_91 = arith.constant 0 : index
    %88 = vector.load %arg8[%c2_89, %c0_90, %c0_91] : memref<16x16x120xf32, #tpu.memory_space<vmem>>, vector<1x16x120xf32>
    %89 = vector.shape_cast %88 : vector<1x16x120xf32> to vector<16x120xf32>
    %cst_92 = arith.constant dense<0.000000e+00> : vector<7x120xf32>
    %90 = tpu.matmul %87, %89, %cst_92 {dimension_numbers = #tpu.dot_dimension_numbers<[1], [0], [0], [1], [0, 0, 1, 1], [], []>} : vector<7x16xf32>, vector<16x120xf32>, vector<7x120xf32> -> vector<7x120xf32>
    %91 = arith.addf %86, %90 : vector<7x120xf32>
    %c3_93 = arith.constant 3 : index
    %c0_94 = arith.constant 0 : index
    %92 = vector.load %arg22[%c3_93, %c0_94] : memref<25x16xf32, #tpu.memory_space<vmem>>, vector<7x16xf32>
    %c3_95 = arith.constant 3 : index
    %c0_96 = arith.constant 0 : index
    %c0_97 = arith.constant 0 : index
    %93 = vector.load %arg8[%c3_95, %c0_96, %c0_97] : memref<16x16x120xf32, #tpu.memory_space<vmem>>, vector<1x16x120xf32>
    %94 = vector.shape_cast %93 : vector<1x16x120xf32> to vector<16x120xf32>
    %cst_98 = arith.constant dense<0.000000e+00> : vector<7x120xf32>
    %95 = tpu.matmul %92, %94, %cst_98 {dimension_numbers = #tpu.dot_dimension_numbers<[1], [0], [0], [1], [0, 0, 1, 1], [], []>} : vector<7x16xf32>, vector<16x120xf32>, vector<7x120xf32> -> vector<7x120xf32>
    %96 = arith.addf %91, %95 : vector<7x120xf32>
    %c5 = arith.constant 5 : index
    %c0_99 = arith.constant 0 : index
    %97 = vector.load %arg22[%c5, %c0_99] : memref<25x16xf32, #tpu.memory_space<vmem>>, vector<7x16xf32>
    %c4 = arith.constant 4 : index
    %c0_100 = arith.constant 0 : index
    %c0_101 = arith.constant 0 : index
    %98 = vector.load %arg8[%c4, %c0_100, %c0_101] : memref<16x16x120xf32, #tpu.memory_space<vmem>>, vector<1x16x120xf32>
    %99 = vector.shape_cast %98 : vector<1x16x120xf32> to vector<16x120xf32>
    %cst_102 = arith.constant dense<0.000000e+00> : vector<7x120xf32>
    %100 = tpu.matmul %97, %99, %cst_102 {dimension_numbers = #tpu.dot_dimension_numbers<[1], [0], [0], [1], [0, 0, 1, 1], [], []>} : vector<7x16xf32>, vector<16x120xf32>, vector<7x120xf32> -> vector<7x120xf32>
    %101 = arith.addf %96, %100 : vector<7x120xf32>
    %c6 = arith.constant 6 : index
    %c0_103 = arith.constant 0 : index
    %102 = vector.load %arg22[%c6, %c0_103] : memref<25x16xf32, #tpu.memory_space<vmem>>, vector<7x16xf32>
    %c5_104 = arith.constant 5 : index
    %c0_105 = arith.constant 0 : index
    %c0_106 = arith.constant 0 : index
    %103 = vector.load %arg8[%c5_104, %c0_105, %c0_106] : memref<16x16x120xf32, #tpu.memory_space<vmem>>, vector<1x16x120xf32>
    %104 = vector.shape_cast %103 : vector<1x16x120xf32> to vector<16x120xf32>
    %cst_107 = arith.constant dense<0.000000e+00> : vector<7x120xf32>
    %105 = tpu.matmul %102, %104, %cst_107 {dimension_numbers = #tpu.dot_dimension_numbers<[1], [0], [0], [1], [0, 0, 1, 1], [], []>} : vector<7x16xf32>, vector<16x120xf32>, vector<7x120xf32> -> vector<7x120xf32>
    %106 = arith.addf %101, %105 : vector<7x120xf32>
    %c7 = arith.constant 7 : index
    %c0_108 = arith.constant 0 : index
    %107 = vector.load %arg22[%c7, %c0_108] : memref<25x16xf32, #tpu.memory_space<vmem>>, vector<7x16xf32>
    %c6_109 = arith.constant 6 : index
    %c0_110 = arith.constant 0 : index
    %c0_111 = arith.constant 0 : index
    %108 = vector.load %arg8[%c6_109, %c0_110, %c0_111] : memref<16x16x120xf32, #tpu.memory_space<vmem>>, vector<1x16x120xf32>
    %109 = vector.shape_cast %108 : vector<1x16x120xf32> to vector<16x120xf32>
    %cst_112 = arith.constant dense<0.000000e+00> : vector<7x120xf32>
    %110 = tpu.matmul %107, %109, %cst_112 {dimension_numbers = #tpu.dot_dimension_numbers<[1], [0], [0], [1], [0, 0, 1, 1], [], []>} : vector<7x16xf32>, vector<16x120xf32>, vector<7x120xf32> -> vector<7x120xf32>
    %111 = arith.addf %106, %110 : vector<7x120xf32>
    %c8 = arith.constant 8 : index
    %c0_113 = arith.constant 0 : index
    %112 = vector.load %arg22[%c8, %c0_113] : memref<25x16xf32, #tpu.memory_space<vmem>>, vector<7x16xf32>
    %c7_114 = arith.constant 7 : index
    %c0_115 = arith.constant 0 : index
    %c0_116 = arith.constant 0 : index
    %113 = vector.load %arg8[%c7_114, %c0_115, %c0_116] : memref<16x16x120xf32, #tpu.memory_space<vmem>>, vector<1x16x120xf32>
    %114 = vector.shape_cast %113 : vector<1x16x120xf32> to vector<16x120xf32>
    %cst_117 = arith.constant dense<0.000000e+00> : vector<7x120xf32>
    %115 = tpu.matmul %112, %114, %cst_117 {dimension_numbers = #tpu.dot_dimension_numbers<[1], [0], [0], [1], [0, 0, 1, 1], [], []>} : vector<7x16xf32>, vector<16x120xf32>, vector<7x120xf32> -> vector<7x120xf32>
    %116 = arith.addf %111, %115 : vector<7x120xf32>
    %c10 = arith.constant 10 : index
    %c0_118 = arith.constant 0 : index
    %117 = vector.load %arg22[%c10, %c0_118] : memref<25x16xf32, #tpu.memory_space<vmem>>, vector<7x16xf32>
    %c8_119 = arith.constant 8 : index
    %c0_120 = arith.constant 0 : index
    %c0_121 = arith.constant 0 : index
    %118 = vector.load %arg8[%c8_119, %c0_120, %c0_121] : memref<16x16x120xf32, #tpu.memory_space<vmem>>, vector<1x16x120xf32>
    %119 = vector.shape_cast %118 : vector<1x16x120xf32> to vector<16x120xf32>
    %cst_122 = arith.constant dense<0.000000e+00> : vector<7x120xf32>
    %120 = tpu.matmul %117, %119, %cst_122 {dimension_numbers = #tpu.dot_dimension_numbers<[1], [0], [0], [1], [0, 0, 1, 1], [], []>} : vector<7x16xf32>, vector<16x120xf32>, vector<7x120xf32> -> vector<7x120xf32>
    %121 = arith.addf %116, %120 : vector<7x120xf32>
    %c11_123 = arith.constant 11 : index
    %c0_124 = arith.constant 0 : index
    %122 = vector.load %arg22[%c11_123, %c0_124] : memref<25x16xf32, #tpu.memory_space<vmem>>, vector<7x16xf32>
    %c9 = arith.constant 9 : index
    %c0_125 = arith.constant 0 : index
    %c0_126 = arith.constant 0 : index
    %123 = vector.load %arg8[%c9, %c0_125, %c0_126] : memref<16x16x120xf32, #tpu.memory_space<vmem>>, vector<1x16x120xf32>
    %124 = vector.shape_cast %123 : vector<1x16x120xf32> to vector<16x120xf32>
    %cst_127 = arith.constant dense<0.000000e+00> : vector<7x120xf32>
    %125 = tpu.matmul %122, %124, %cst_127 {dimension_numbers = #tpu.dot_dimension_numbers<[1], [0], [0], [1], [0, 0, 1, 1], [], []>} : vector<7x16xf32>, vector<16x120xf32>, vector<7x120xf32> -> vector<7x120xf32>
    %126 = arith.addf %121, %125 : vector<7x120xf32>
    %c12_128 = arith.constant 12 : index
    %c0_129 = arith.constant 0 : index
    %127 = vector.load %arg22[%c12_128, %c0_129] : memref<25x16xf32, #tpu.memory_space<vmem>>, vector<7x16xf32>
    %c10_130 = arith.constant 10 : index
    %c0_131 = arith.constant 0 : index
    %c0_132 = arith.constant 0 : index
    %128 = vector.load %arg8[%c10_130, %c0_131, %c0_132] : memref<16x16x120xf32, #tpu.memory_space<vmem>>, vector<1x16x120xf32>
    %129 = vector.shape_cast %128 : vector<1x16x120xf32> to vector<16x120xf32>
    %cst_133 = arith.constant dense<0.000000e+00> : vector<7x120xf32>
    %130 = tpu.matmul %127, %129, %cst_133 {dimension_numbers = #tpu.dot_dimension_numbers<[1], [0], [0], [1], [0, 0, 1, 1], [], []>} : vector<7x16xf32>, vector<16x120xf32>, vector<7x120xf32> -> vector<7x120xf32>
    %131 = arith.addf %126, %130 : vector<7x120xf32>
    %c13 = arith.constant 13 : index
    %c0_134 = arith.constant 0 : index
    %132 = vector.load %arg22[%c13, %c0_134] : memref<25x16xf32, #tpu.memory_space<vmem>>, vector<7x16xf32>
    %c11_135 = arith.constant 11 : index
    %c0_136 = arith.constant 0 : index
    %c0_137 = arith.constant 0 : index
    %133 = vector.load %arg8[%c11_135, %c0_136, %c0_137] : memref<16x16x120xf32, #tpu.memory_space<vmem>>, vector<1x16x120xf32>
    %134 = vector.shape_cast %133 : vector<1x16x120xf32> to vector<16x120xf32>
    %cst_138 = arith.constant dense<0.000000e+00> : vector<7x120xf32>
    %135 = tpu.matmul %132, %134, %cst_138 {dimension_numbers = #tpu.dot_dimension_numbers<[1], [0], [0], [1], [0, 0, 1, 1], [], []>} : vector<7x16xf32>, vector<16x120xf32>, vector<7x120xf32> -> vector<7x120xf32>
    %136 = arith.addf %131, %135 : vector<7x120xf32>
    %c15 = arith.constant 15 : index
    %c0_139 = arith.constant 0 : index
    %137 = vector.load %arg22[%c15, %c0_139] : memref<25x16xf32, #tpu.memory_space<vmem>>, vector<7x16xf32>
    %c12_140 = arith.constant 12 : index
    %c0_141 = arith.constant 0 : index
    %c0_142 = arith.constant 0 : index
    %138 = vector.load %arg8[%c12_140, %c0_141, %c0_142] : memref<16x16x120xf32, #tpu.memory_space<vmem>>, vector<1x16x120xf32>
    %139 = vector.shape_cast %138 : vector<1x16x120xf32> to vector<16x120xf32>
    %cst_143 = arith.constant dense<0.000000e+00> : vector<7x120xf32>
    %140 = tpu.matmul %137, %139, %cst_143 {dimension_numbers = #tpu.dot_dimension_numbers<[1], [0], [0], [1], [0, 0, 1, 1], [], []>} : vector<7x16xf32>, vector<16x120xf32>, vector<7x120xf32> -> vector<7x120xf32>
    %141 = arith.addf %136, %140 : vector<7x120xf32>
    %c16 = arith.constant 16 : index
    %c0_144 = arith.constant 0 : index
    %142 = vector.load %arg22[%c16, %c0_144] : memref<25x16xf32, #tpu.memory_space<vmem>>, vector<7x16xf32>
    %c13_145 = arith.constant 13 : index
    %c0_146 = arith.constant 0 : index
    %c0_147 = arith.constant 0 : index
    %143 = vector.load %arg8[%c13_145, %c0_146, %c0_147] : memref<16x16x120xf32, #tpu.memory_space<vmem>>, vector<1x16x120xf32>
    %144 = vector.shape_cast %143 : vector<1x16x120xf32> to vector<16x120xf32>
    %cst_148 = arith.constant dense<0.000000e+00> : vector<7x120xf32>
    %145 = tpu.matmul %142, %144, %cst_148 {dimension_numbers = #tpu.dot_dimension_numbers<[1], [0], [0], [1], [0, 0, 1, 1], [], []>} : vector<7x16xf32>, vector<16x120xf32>, vector<7x120xf32> -> vector<7x120xf32>
    %146 = arith.addf %141, %145 : vector<7x120xf32>
    %c17 = arith.constant 17 : index
    %c0_149 = arith.constant 0 : index
    %147 = vector.load %arg22[%c17, %c0_149] : memref<25x16xf32, #tpu.memory_space<vmem>>, vector<7x16xf32>
    %c14 = arith.constant 14 : index
    %c0_150 = arith.constant 0 : index
    %c0_151 = arith.constant 0 : index
    %148 = vector.load %arg8[%c14, %c0_150, %c0_151] : memref<16x16x120xf32, #tpu.memory_space<vmem>>, vector<1x16x120xf32>
    %149 = vector.shape_cast %148 : vector<1x16x120xf32> to vector<16x120xf32>
    %cst_152 = arith.constant dense<0.000000e+00> : vector<7x120xf32>
    %150 = tpu.matmul %147, %149, %cst_152 {dimension_numbers = #tpu.dot_dimension_numbers<[1], [0], [0], [1], [0, 0, 1, 1], [], []>} : vector<7x16xf32>, vector<16x120xf32>, vector<7x120xf32> -> vector<7x120xf32>
    %151 = arith.addf %146, %150 : vector<7x120xf32>
    %c18 = arith.constant 18 : index
    %c0_153 = arith.constant 0 : index
    %152 = vector.load %arg22[%c18, %c0_153] : memref<25x16xf32, #tpu.memory_space<vmem>>, vector<7x16xf32>
    %c15_154 = arith.constant 15 : index
    %c0_155 = arith.constant 0 : index
    %c0_156 = arith.constant 0 : index
    %153 = vector.load %arg8[%c15_154, %c0_155, %c0_156] : memref<16x16x120xf32, #tpu.memory_space<vmem>>, vector<1x16x120xf32>
    %154 = vector.shape_cast %153 : vector<1x16x120xf32> to vector<16x120xf32>
    %cst_157 = arith.constant dense<0.000000e+00> : vector<7x120xf32>
    %155 = tpu.matmul %152, %154, %cst_157 {dimension_numbers = #tpu.dot_dimension_numbers<[1], [0], [0], [1], [0, 0, 1, 1], [], []>} : vector<7x16xf32>, vector<16x120xf32>, vector<7x120xf32> -> vector<7x120xf32>
    %156 = arith.addf %151, %155 : vector<7x120xf32>
    %c0_158 = arith.constant 0 : index
    %c0_159 = arith.constant 0 : index
    %157 = vector.load %arg9[%c0_158, %c0_159] : memref<1x120xf32, #tpu.memory_space<vmem>>, vector<1x120xf32>
    %158 = vector.broadcast %157 : vector<1x120xf32> to vector<7x120xf32>
    %159 = arith.mulf %156, %158 : vector<7x120xf32>
    %c0_160 = arith.constant 0 : index
    %c0_161 = arith.constant 0 : index
    %160 = vector.load %arg10[%c0_160, %c0_161] : memref<1x120xf32, #tpu.memory_space<vmem>>, vector<1x120xf32>
    %161 = vector.broadcast %160 : vector<1x120xf32> to vector<7x120xf32>
    %162 = arith.addf %159, %161 : vector<7x120xf32>
    %cst_162 = arith.constant 0.000000e+00 : f32
    %163 = vector.broadcast %cst_162 : f32 to vector<7x120xf32>
    %164 = arith.maximumf %162, %163 : vector<7x120xf32>
    %c0_163 = arith.constant 0 : index
    %c0_164 = arith.constant 0 : index
    %165 = vector.load %arg13[%c0_163, %c0_164] : memref<1x7xf32, #tpu.memory_space<vmem>>, vector<1x7xf32>
    %cst_165 = arith.constant dense<0.000000e+00> : vector<1x120xf32>
    %166 = tpu.matmul %165, %164, %cst_165 {dimension_numbers = #tpu.dot_dimension_numbers<[1], [0], [0], [1], [0, 0, 1, 1], [], []>} : vector<1x7xf32>, vector<7x120xf32>, vector<1x120xf32> -> vector<1x120xf32>
    %c0_166 = arith.constant 0 : index
    %c0_167 = arith.constant 0 : index
    %167 = vector.load %arg14[%c0_166, %c0_167] : memref<120x168xf32, #tpu.memory_space<vmem>>, vector<120x168xf32>
    %cst_168 = arith.constant dense<0.000000e+00> : vector<1x168xf32>
    %168 = tpu.matmul %166, %167, %cst_168 {dimension_numbers = #tpu.dot_dimension_numbers<[1], [0], [0], [1], [0, 0, 1, 1], [], []>} : vector<1x120xf32>, vector<120x168xf32>, vector<1x168xf32> -> vector<1x168xf32>
    %c0_169 = arith.constant 0 : index
    %c0_170 = arith.constant 0 : index
    %169 = vector.load %arg15[%c0_169, %c0_170] : memref<1x168xf32, #tpu.memory_space<vmem>>, vector<1x168xf32>
    %170 = arith.addf %168, %169 : vector<1x168xf32>
    %cst_171 = arith.constant 0.000000e+00 : f32
    %171 = vector.broadcast %cst_171 : f32 to vector<1x168xf32>
    %172 = arith.maximumf %170, %171 : vector<1x168xf32>
    %c0_172 = arith.constant 0 : index
    %c0_173 = arith.constant 0 : index
    %173 = vector.load %arg16[%c0_172, %c0_173] : memref<168x11xf32, #tpu.memory_space<vmem>>, vector<168x11xf32>
    %cst_174 = arith.constant dense<0.000000e+00> : vector<1x11xf32>
    %174 = tpu.matmul %172, %173, %cst_174 {dimension_numbers = #tpu.dot_dimension_numbers<[1], [0], [0], [1], [0, 0, 1, 1], [], []>} : vector<1x168xf32>, vector<168x11xf32>, vector<1x11xf32> -> vector<1x11xf32>
    %c0_175 = arith.constant 0 : index
    %c0_176 = arith.constant 0 : index
    %175 = vector.load %arg17[%c0_175, %c0_176] : memref<1x11xf32, #tpu.memory_space<vmem>>, vector<1x11xf32>
    %176 = arith.addf %174, %175 : vector<1x11xf32>
    %c0_177 = arith.constant 0 : index
    %c0_178 = arith.constant 0 : index
    %c0_179 = arith.constant 0 : index
    %177 = vector.load %arg18[%c0_177, %c0_178, %c0_179] : memref<1x1x11xf32, #tpu.memory_space<vmem>>, vector<1x1x11xf32>
    %178 = vector.shape_cast %177 : vector<1x1x11xf32> to vector<1x11xf32>
    %179 = vector.shape_cast %176 : vector<1x11xf32> to vector<1x1x11xf32>
    tpu.vector_store %arg18[%c0_177, %c0_178, %c0_179], %179 {strides = array<i32>} : memref<1x1x11xf32, #tpu.memory_space<vmem>>, vector<1x1x11xf32>,
    return
  }
  func.func @transform_0(%arg0: i32) -> (i32, i32, i32) {
    %c0_i32 = arith.constant 0 : i32
    %c0_i32_0 = arith.constant 0 : i32
    %c0_i32_1 = arith.constant 0 : i32
    return %arg0, %c0_i32, %c0_i32_0 : i32, i32, i32
  }
  func.func @transform_1(%arg0: i32) -> (i32, i32, i32) {
    %c0_i32 = arith.constant 0 : i32
    %c0_i32_0 = arith.constant 0 : i32
    %c0_i32_1 = arith.constant 0 : i32
    %c0_i32_2 = arith.constant 0 : i32
    return %c0_i32, %c0_i32_0, %c0_i32_1 : i32, i32, i32
  }
  func.func @transform_2(%arg0: i32) -> (i32, i32) {
    %c0_i32 = arith.constant 0 : i32
    %c0_i32_0 = arith.constant 0 : i32
    %c0_i32_1 = arith.constant 0 : i32
    return %c0_i32, %c0_i32_0 : i32, i32
  }
  func.func @transform_3(%arg0: i32) -> (i32, i32) {
    %c0_i32 = arith.constant 0 : i32
    %c0_i32_0 = arith.constant 0 : i32
    %c0_i32_1 = arith.constant 0 : i32
    return %c0_i32, %c0_i32_0 : i32, i32
  }
  func.func @transform_4(%arg0: i32) -> (i32, i32, i32) {
    %c0_i32 = arith.constant 0 : i32
    %c0_i32_0 = arith.constant 0 : i32
    %c0_i32_1 = arith.constant 0 : i32
    %c0_i32_2 = arith.constant 0 : i32
    return %c0_i32, %c0_i32_0, %c0_i32_1 : i32, i32, i32
  }
  func.func @transform_5(%arg0: i32) -> (i32, i32) {
    %c0_i32 = arith.constant 0 : i32
    %c0_i32_0 = arith.constant 0 : i32
    %c0_i32_1 = arith.constant 0 : i32
    return %c0_i32, %c0_i32_0 : i32, i32
  }
  func.func @transform_6(%arg0: i32) -> (i32, i32) {
    %c0_i32 = arith.constant 0 : i32
    %c0_i32_0 = arith.constant 0 : i32
    %c0_i32_1 = arith.constant 0 : i32
    return %c0_i32, %c0_i32_0 : i32, i32
  }
  func.func @transform_7(%arg0: i32) -> (i32, i32, i32) {
    %c0_i32 = arith.constant 0 : i32
    %c0_i32_0 = arith.constant 0 : i32
    %c0_i32_1 = arith.constant 0 : i32
    %c0_i32_2 = arith.constant 0 : i32
    return %c0_i32, %c0_i32_0, %c0_i32_1 : i32, i32, i32
  }
  func.func @transform_8(%arg0: i32) -> (i32, i32) {
    %c0_i32 = arith.constant 0 : i32
    %c0_i32_0 = arith.constant 0 : i32
    %c0_i32_1 = arith.constant 0 : i32
    return %c0_i32, %c0_i32_0 : i32, i32
  }
  func.func @transform_9(%arg0: i32) -> (i32, i32) {
    %c0_i32 = arith.constant 0 : i32
    %c0_i32_0 = arith.constant 0 : i32
    %c0_i32_1 = arith.constant 0 : i32
    return %c0_i32, %c0_i32_0 : i32, i32
  }
  func.func @transform_10(%arg0: i32) -> (i32, i32) {
    %c0_i32 = arith.constant 0 : i32
    %c0_i32_0 = arith.constant 0 : i32
    %c0_i32_1 = arith.constant 0 : i32
    return %c0_i32, %c0_i32_0 : i32, i32
  }
  func.func @transform_11(%arg0: i32) -> (i32, i32) {
    %c0_i32 = arith.constant 0 : i32
    %c0_i32_0 = arith.constant 0 : i32
    %c0_i32_1 = arith.constant 0 : i32
    return %c0_i32, %c0_i32_0 : i32, i32
  }
  func.func @transform_12(%arg0: i32) -> (i32, i32) {
    %c0_i32 = arith.constant 0 : i32
    %c0_i32_0 = arith.constant 0 : i32
    %c0_i32_1 = arith.constant 0 : i32
    return %c0_i32, %c0_i32_0 : i32, i32
  }
  func.func @transform_13(%arg0: i32) -> (i32, i32) {
    %c0_i32 = arith.constant 0 : i32
    %c0_i32_0 = arith.constant 0 : i32
    %c0_i32_1 = arith.constant 0 : i32
    return %c0_i32, %c0_i32_0 : i32, i32
  }
  func.func @transform_14(%arg0: i32) -> (i32, i32) {
    %c0_i32 = arith.constant 0 : i32
    %c0_i32_0 = arith.constant 0 : i32
    %c0_i32_1 = arith.constant 0 : i32
    return %c0_i32, %c0_i32_0 : i32, i32
  }
  func.func @transform_15(%arg0: i32) -> (i32, i32) {
    %c0_i32 = arith.constant 0 : i32
    %c0_i32_0 = arith.constant 0 : i32
    %c0_i32_1 = arith.constant 0 : i32
    return %c0_i32, %c0_i32_0 : i32, i32
  }
  func.func @transform_16(%arg0: i32) -> (i32, i32) {
    %c0_i32 = arith.constant 0 : i32
    %c0_i32_0 = arith.constant 0 : i32
    %c0_i32_1 = arith.constant 0 : i32
    return %c0_i32, %c0_i32_0 : i32, i32
  }
  func.func @transform_17(%arg0: i32) -> (i32, i32, i32) {
    %c0_i32 = arith.constant 0 : i32
    %c0_i32_0 = arith.constant 0 : i32
    %c0_i32_1 = arith.constant 0 : i32
    return %arg0, %c0_i32, %c0_i32_0 : i32, i32, i32
  }
}

</mosaic_0001>

<bundles_post_ra>
// kernel: _lambda_.1
= control target key start
LH: loop header
LB: loop body
LE: loop exit
PB: predicated region body
PF: predicated region fallthrough
CT: control target
= control target key end

     0   :  { %s10348_s24 = smov 0   ;;  %s13543_s0 = inlined_call_operand.vmem [shape: f32[2,576,6], index: 0, kind: input, shape index: {}]   ;;  %s13544_s1 = inlined_call_operand.vmem [shape: f32[4,6,6], index: 1, kind: input, shape index: {}]   ;;  %s13545_s2 = inlined_call_operand.vmem [shape: f32[1,6], index: 2, kind: input, shape index: {}]   ;;  %s13546_s3 = inlined_call_operand.vmem [shape: f32[1,6], index: 3, kind: input, shape index: {}]   ;;  %s13547_s4 = inlined_call_operand.vmem [shape: f32[4,6,16], index: 4, kind: input, shape index: {}]   ;;  %s13548_s5 = inlined_call_operand.vmem [shape: f32[1,16], index: 5, kind: input, shape index: {}]   ;;  %s13549_s6 = inlined_call_operand.vmem [shape: f32[1,16], index: 6, kind: input, shape index: {}]   ;;  %s13550_s7 = inlined_call_operand.vmem [shape: f32[16,16,120], index: 7, kind: input, shape index: {}]   ;;  %s13551_s8 = inlined_call_operand.vmem [shape: f32[1,120], index: 8, kind: input, shape index: {}]   ;;  %s13552_s9 = inlined_call_operand.vmem [shape: f32[1,120], index: 9, kind: input, shape index: {}]   ;;  %s13553_s10 = inlined_call_operand.vmem [shape: f32[121,526], index: 10, kind: input, shape index: {}]   ;;  %s13554_s11 = inlined_call_operand.vmem [shape: f32[25,97], index: 11, kind: input, shape index: {}]   ;;  %s13555_s12 = inlined_call_operand.vmem [shape: f32[1,7], index: 12, kind: input, shape index: {}]   ;;  %s13556_s13 = inlined_call_operand.vmem [shape: f32[120,168], index: 13, kind: input, shape index: {}]   ;;  %s13557_s14 = inlined_call_operand.vmem [shape: f32[1,168], index: 14, kind: input, shape index: {}]   ;;  %s13558_s15 = inlined_call_operand.vmem [shape: f32[168,11], index: 15, kind: input, shape index: {}]   ;;  %s13559_s16 = inlined_call_operand.vmem [shape: f32[1,11], index: 16, kind: input, shape index: {}]   ;;  %s13560_s17 = inlined_call_operand.vmem [shape: f32[2,1,11], index: 17, kind: output, shape index: {}]  }
   0x1   :  { %13582 = sst [smem:[#allocation25_spill]] %s13543_s0 }
   0x2   :  { %13583 = sst [smem:[#allocation26_spill]] %s13544_s1 }
   0x3 LB: > { %s7490_s25 = sadd.s32 4294967295, %s10252_s24   ;;  %p7494_p0 = scmp.ge.s32.totalorder %s10252_s24, 1  ;;  %s10252_s24 = sphi %s10348_s24, %s27_s24  }
   0x4   : > { %p487_p1 = scmp.lt.s32.totalorder %s10252_s24, 3 }
   0x6   : > { %p488_p2 = pnand %p7494_p0, %p487_p1 }
   0x8   : > { %491 = sbr.rel (%p488_p2) target bundleno = 2871 (0xb37), region = 88 }
   0xf   : > { %s13584_s28 = sld [smem:[#allocation26_spill]]  ;;  %vm894_vm0 = vcmask 1045504   ;;  %p537_p3 = scmp.lt.s32.totalorder %s7490_s25, 1  ;;  %v13579_v1 = vmov 0.0   ;;  %vm10255_vm1 = vmmov 0   ;;  %vm686_vm2 = vcmask 48128  }
  0x10   : > { %8716 = vmatprep.subr.mxu0 %v13579_v1  ;;  %8718 = vmatprep.mubr.msk.f32.mxu0 %vm10255_vm1, %v13579_v1  ;;  %s13585_s18 = sld [smem:[#allocation25_spill]]  ;;  %vm3941_vm3 = vcmask 1046528   ;;  %vm3737_vm4 = vcmask 47104   ;;  %vm10256_vm5 = vmmov 1   ;;  %vm4285_vm7 = vcmask 113664  }
  0x11   : > { %s13665_s25 = smov (!%p537_p3, %s7490_s25), 1  ;;  %8507 = vmatprep.subr.mxu1 %v13579_v1  ;;  %8509 = vmatprep.mubr.msk.f32.mxu1 %vm10255_vm1, %v13579_v1  ;;  %vm9677_vm6 = vmpackc.low %vm894_vm0, %vm10256_vm5  ;;  %vm4787_vm8 = vcmask 40960   ;;  %vm5779_vm9 = vcmask 793600   ;;  %vm5656_vm10 = vcmask 130048   ;;  %vm5670_vm11 = vcmask 126976  }
  0x12   : > { %s10231_s29 = smul.u32 576, %s13665_s25  ;;  %vm5792_vm12 = vcmask 1040384   ;;  %vm5884_vm13 = vcmask 122880   ;;  %vm7149_vm14 = vcmask 56320   ;;  %vm7268_vm15 = vcmask 982016   ;;  %s544_s1 = scalar_lea.vmem %s13560_s17, %s13665_s25 }
  0x15   : > { %v10359_v0 = vld [vmem:[%s13584_s28] sm:$0x3f]  ;;  %v7637_v2 = vld [vmem:[%s13584_s28 + $0x10] sm:$0x3f]  ;;  %v7708_v56 = vld [vmem:[%s13584_s28 + $0x18] sm:$0x3f] }
  0x16   : > { %8717 = vmatpush3.msk.msra.mxu0 %vm894_vm0, %v10359_v0  ;;  %s10376_s19 = scalar_lea.vmem %s13585_s18, %s10231_s29  ;;  %v7496_v57 = vld [vmem:[%s13584_s28 + $0x8] sm:$0x3f] }
  0x17   : > { %8925 = vmatprep.subr.mxu0 %v13579_v1  ;;  %v545_v3 = vld [vmem:[%s10376_s19] sm:$0xff]  ;;  %v546_v4 = vld [vmem:[%s10376_s19 + $0x8] sm:$0xff]  ;;  %v547_v5 = vld [vmem:[%s10376_s19 + $0x10] sm:$0xff]  ;;  %8508 = vmatpush3.msk.msra.mxu1 %vm894_vm0, %v7496_v57 }
  0x18   : > { %8719 = vmatmul.mubr.msk.f32.vlgmr.msra.gmra.mrb[0].mxu0 %vm686_vm2, %v545_v3  ;;  %v10396_v6 = vld [vmem:[%s10376_s19 + $0x18] sm:$0xff]  ;;  %v10403_v7 = vld [vmem:[%s10376_s19 + $0x20] sm:$0xff]  ;;  %v10410_v8 = vld [vmem:[%s10376_s19 + $0x28] sm:$0xff]  ;;  %9812 = vmatprep.subr.mxu1 %v13579_v1 }
  0x19   : > { %8721 = vmatprep.mubr.msk.f32.mxu0 %vm10255_vm1, %v13579_v1  ;;  %8926 = vmatpush3.msk.msra.mxu0 %vm894_vm0, %v7637_v2  ;;  %v10417_v9 = vld [vmem:[%s10376_s19 + $0x30] sm:$0xff]  ;;  %v10424_v10 = vld [vmem:[%s10376_s19 + $0x38] sm:$0xff]  ;;  %v10431_v11 = vld [vmem:[%s10376_s19 + $0x40] sm:$0xff] }
  0x1a   : > { %9134 = vmatprep.subr.mxu0 %v13579_v1  ;;  %v10438_v12 = vld [vmem:[%s10376_s19 + $0x48] sm:$0xff]  ;;  %v10445_v13 = vld [vmem:[%s10376_s19 + $0x50] sm:$0xff]  ;;  %v10452_v14 = vld [vmem:[%s10376_s19 + $0x58] sm:$0xff] }
  0x1b   : > { %v10459_v15 = vld [vmem:[%s10376_s19 + $0x60] sm:$0xff]  ;;  %v10466_v16 = vld [vmem:[%s10376_s19 + $0x68] sm:$0xff]  ;;  %v10473_v17 = vld [vmem:[%s10376_s19 + $0x70] sm:$0xff] }
  0x1c   : > { %8722 = vmatmul.mubr.msk.f32.gmra.mrb[2].mxu0 %vm686_vm2, %v546_v4  ;;  %v10480_v18 = vld [vmem:[%s10376_s19 + $0x78] sm:$0xff]  ;;  %v10487_v19 = vld [vmem:[%s10376_s19 + $0x80] sm:$0xff]  ;;  %v10494_v20 = vld [vmem:[%s10376_s19 + $0x88] sm:$0xff] }
  0x1d   : > { %8724 = vmatprep.mubr.msk.f32.mxu0 %vm10255_vm1, %v13579_v1  ;;  %v10501_v21 = vld [vmem:[%s10376_s19 + $0x90] sm:$0xff]  ;;  %v10508_v22 = vld [vmem:[%s10376_s19 + $0x98] sm:$0xff]  ;;  %v10515_v23 = vld [vmem:[%s10376_s19 + $0xa0] sm:$0xff] }
  0x1e   : > { %v10522_v24 = vld [vmem:[%s10376_s19 + $0xa8] sm:$0xff]  ;;  %v10529_v25 = vld [vmem:[%s10376_s19 + $0xb0] sm:$0xff]  ;;  %v10536_v26 = vld [vmem:[%s10376_s19 + $0xb8] sm:$0xff] }
  0x1f   : > { %v10543_v27 = vld [vmem:[%s10376_s19 + $0xc0] sm:$0xff]  ;;  %v10550_v28 = vld [vmem:[%s10376_s19 + $0xc8] sm:$0xff]  ;;  %v10557_v29 = vld [vmem:[%s10376_s19 + $0xd0] sm:$0xff] }
  0x20   : > { %8725 = vmatmul.mubr.msk.f32.gmra.mrb[4].mxu0 %vm686_vm2, %v547_v5  ;;  %v10564_v30 = vld [vmem:[%s10376_s19 + $0xd8] sm:$0xff]  ;;  %v10571_v31 = vld [vmem:[%s10376_s19 + $0xe0] sm:$0xff]  ;;  %v10578_v32 = vld [vmem:[%s10376_s19 + $0xe8] sm:$0xff] }
  0x21   : > { %8727 = vmatprep.mubr.msk.f32.mxu0 %vm10255_vm1, %v13579_v1  ;;  %v10585_v33 = vld [vmem:[%s10376_s19 + $0xf0] sm:$0xff]  ;;  %v10592_v34 = vld [vmem:[%s10376_s19 + $0xf8] sm:$0xff]  ;;  %v10599_v35 = vld [vmem:[%s10376_s19 + $0x100] sm:$0xff] }
  0x22   : > { %v10606_v36 = vld [vmem:[%s10376_s19 + $0x108] sm:$0xff]  ;;  %v10613_v37 = vld [vmem:[%s10376_s19 + $0x110] sm:$0xff]  ;;  %v10620_v38 = vld [vmem:[%s10376_s19 + $0x118] sm:$0xff] }
  0x23   : > { %v10627_v39 = vld [vmem:[%s10376_s19 + $0x120] sm:$0xff]  ;;  %v10634_v40 = vld [vmem:[%s10376_s19 + $0x128] sm:$0xff]  ;;  %v10641_v41 = vld [vmem:[%s10376_s19 + $0x130] sm:$0xff] }
  0x24   : > { %8728 = vmatmul.mubr.msk.f32.gmra.mrb[6].mxu0 %vm686_vm2, %v10396_v6  ;;  %v10648_v42 = vld [vmem:[%s10376_s19 + $0x138] sm:$0xff]  ;;  %v10655_v43 = vld [vmem:[%s10376_s19 + $0x140] sm:$0xff]  ;;  %v10662_v44 = vld [vmem:[%s10376_s19 + $0x148] sm:$0xff] }
  0x25   : > { %8730 = vmatprep.mubr.msk.f32.mxu0 %vm10255_vm1, %v13579_v1  ;;  %v10669_v45 = vld [vmem:[%s10376_s19 + $0x150] sm:$0xff]  ;;  %v10676_v46 = vld [vmem:[%s10376_s19 + $0x158] sm:$0xff]  ;;  %v10683_v47 = vld [vmem:[%s10376_s19 + $0x160] sm:$0xff] }
  0x26   : > { %v10690_v48 = vld [vmem:[%s10376_s19 + $0x168] sm:$0xff]  ;;  %v10697_v49 = vld [vmem:[%s10376_s19 + $0x170] sm:$0xff]  ;;  %v10704_v50 = vld [vmem:[%s10376_s19 + $0x178] sm:$0xff] }
  0x27   : > { %v10711_v51 = vld [vmem:[%s10376_s19 + $0x180] sm:$0xff]  ;;  %v10718_v52 = vld [vmem:[%s10376_s19 + $0x188] sm:$0xff]  ;;  %v10725_v53 = vld [vmem:[%s10376_s19 + $0x190] sm:$0xff] }
  0x28   : > { %8731 = vmatmul.mubr.msk.f32.gmra.mrb[8].mxu0 %vm686_vm2, %v10403_v7  ;;  %v10732_v54 = vld [vmem:[%s10376_s19 + $0x198] sm:$0xff]  ;;  %v10739_v55 = vld [vmem:[%s10376_s19 + $0x1a0] sm:$0xff]  ;;  %v616_v59 = vld [vmem:[%s10376_s19 + $0x9] sm:$0xff] }
  0x29   : > { %8733 = vmatprep.mubr.msk.f32.mxu0 %vm10255_vm1, %v13579_v1  ;;  %v615_v58 = vld [vmem:[%s10376_s19 + $0x1] sm:$0xff]  ;;  %v617_v60 = vld [vmem:[%s10376_s19 + $0x11] sm:$0xff]  ;;  %v10799_v61 = vld [vmem:[%s10376_s19 + $0x19] sm:$0xff] }
  0x2a   : > { %8510 = vmatmul.mubr.msk.f32.vlgmr.msra.gmra.mrb[0].mxu1 %vm686_vm2, %v615_v58  ;;  %v10810_v62 = vld [vmem:[%s10376_s19 + $0x21] sm:$0xff]  ;;  %v10821_v63 = vld [vmem:[%s10376_s19 + $0x29] sm:$0xff]  ;;  %v10843_v2 = vld [vmem:[%s10376_s19 + $0x39] sm:$0xff] }
  0x2b   : > { %8512 = vmatprep.mubr.msk.f32.mxu1 %vm10255_vm1, %v13579_v1  ;;  %9813 = vmatpush3.msk.msra.mxu1 %vm894_vm0, %v10359_v0  ;;  %v10832_v0 = vld [vmem:[%s10376_s19 + $0x31] sm:$0xff]  ;;  %v10854_v3 = vld [vmem:[%s10376_s19 + $0x41] sm:$0xff]  ;;  %v10865_v4 = vld [vmem:[%s10376_s19 + $0x49] sm:$0xff] }
  0x2c   : > { %8734 = vmatmul.mubr.msk.f32.gmra.mrb[10].mxu0 %vm686_vm2, %v10410_v8  ;;  %v10876_v5 = vld [vmem:[%s10376_s19 + $0x51] sm:$0xff]  ;;  %v11378_v57 = vld [vmem:[%s10376_s19 + $0x1e8] sm:$0xff] }
  0x2d   : > { %8736 = vmatprep.mubr.msk.f32.mxu0 %vm10255_vm1, %v13579_v1  ;;  %v11387_v58 = vld [vmem:[%s10376_s19 + $0x1b1] sm:$0xff] }
  0x2e   : > { %8513 = vmatmul.mubr.msk.f32.gmra.mrb[2].mxu1 %vm686_vm2, %v616_v59  ;;  %13593 = vst [vmem:[#allocation13_spill] sm:$0xff] %v11387_v58  ;;  %v11392_v59 = vld [vmem:[%s10376_s19 + $0x1f0] sm:$0xff] }
  0x2f   : > { %8515 = vmatprep.mubr.msk.f32.mxu1 %vm10255_vm1, %v13579_v1 }
  0x30   : > { %8737 = vmatmul.mubr.msk.f32.gmra.mrb[12].mxu0 %vm686_vm2, %v10417_v9 }
  0x31   : > { %8739 = vmatprep.mubr.msk.f32.mxu0 %vm10255_vm1, %v13579_v1 }
  0x32   : > { %8516 = vmatmul.mubr.msk.f32.gmra.mrb[4].mxu1 %vm686_vm2, %v617_v60  ;;  %v11401_v60 = vld [vmem:[%s10376_s19 + $0x1b9] sm:$0xff] }
  0x33   : > { %8518 = vmatprep.mubr.msk.f32.mxu1 %vm10255_vm1, %v13579_v1  ;;  %13594 = vst [vmem:[#allocation14_spill] sm:$0xff] %v11401_v60 }
  0x34   : > { %8740 = vmatmul.mubr.msk.f32.gmra.mrb[14].mxu0 %vm686_vm2, %v10424_v10 }
  0x35   : > { %8742 = vmatprep.mubr.msk.f32.mxu0 %vm10255_vm1, %v13579_v1 }
  0x36   : > { %8519 = vmatmul.mubr.msk.f32.gmra.mrb[6].mxu1 %vm686_vm2, %v10799_v61 }
  0x37   : > { %8521 = vmatprep.mubr.msk.f32.mxu1 %vm10255_vm1, %v13579_v1 }
  0x38   : > { %8743 = vmatmul.mubr.msk.f32.gmra.mrb[16].mxu0 %vm686_vm2, %v10431_v11 }
  0x39   : > { %8745 = vmatprep.mubr.msk.f32.mxu0 %vm10255_vm1, %v13579_v1 }
  0x3a   : > { %8522 = vmatmul.mubr.msk.f32.gmra.mrb[8].mxu1 %vm686_vm2, %v10810_v62 }
  0x3b   : > { %8524 = vmatprep.mubr.msk.f32.mxu1 %vm10255_vm1, %v13579_v1 }
  0x3c   : > { %8746 = vmatmul.mubr.msk.f32.gmra.mrb[18].mxu0 %vm686_vm2, %v10438_v12 }
  0x3d   : > { %8748 = vmatprep.mubr.msk.f32.mxu0 %vm10255_vm1, %v13579_v1 }
  0x3e   : > { %8525 = vmatmul.mubr.msk.f32.gmra.mrb[10].mxu1 %vm686_vm2, %v10821_v63 }
  0x3f   : > { %8527 = vmatprep.mubr.msk.f32.mxu1 %vm10255_vm1, %v13579_v1 }
  0x40   : > { %8749 = vmatmul.mubr.msk.f32.gmra.mrb[20].mxu0 %vm686_vm2, %v10445_v13 }
  0x41   : > { %8751 = vmatprep.mubr.msk.f32.mxu0 %vm10255_vm1, %v13579_v1 }
  0x42   : > { %8528 = vmatmul.mubr.msk.f32.gmra.mrb[12].mxu1 %vm686_vm2, %v10832_v0 }
  0x43   : > { %8530 = vmatprep.mubr.msk.f32.mxu1 %vm10255_vm1, %v13579_v1 }
  0x44   : > { %8752 = vmatmul.mubr.msk.f32.gmra.mrb[22].mxu0 %vm686_vm2, %v10452_v14 }
  0x45   : > { %8754 = vmatprep.mubr.msk.f32.mxu0 %vm10255_vm1, %v13579_v1 }
  0x46   : > { %8531 = vmatmul.mubr.msk.f32.gmra.mrb[14].mxu1 %vm686_vm2, %v10843_v2 }
  0x47   : > { %8533 = vmatprep.mubr.msk.f32.mxu1 %vm10255_vm1, %v13579_v1 }
  0x48   : > { %8755 = vmatmul.mubr.msk.f32.gmra.mrb[24].mxu0 %vm686_vm2, %v10459_v15 }
  0x49   : > { %8757 = vmatprep.mubr.msk.f32.mxu0 %vm10255_vm1, %v13579_v1 }
  0x4a   : > { %8534 = vmatmul.mubr.msk.f32.gmra.mrb[16].mxu1 %vm686_vm2, %v10854_v3 }
  0x4b   : > { %8536 = vmatprep.mubr.msk.f32.mxu1 %vm10255_vm1, %v13579_v1 }
  0x4c   : > { %8758 = vmatmul.mubr.msk.f32.gmra.mrb[26].mxu0 %vm686_vm2, %v10466_v16 }
  0x4d   : > { %8760 = vmatprep.mubr.msk.f32.mxu0 %vm10255_vm1, %v13579_v1 }
  0x4e   : > { %8537 = vmatmul.mubr.msk.f32.gmra.mrb[18].mxu1 %vm686_vm2, %v10865_v4 }
  0x4f   : > { %8539 = vmatprep.mubr.msk.f32.mxu1 %vm10255_vm1, %v13579_v1 }
  0x50   : > { %8761 = vmatmul.mubr.msk.f32.gmra.mrb[28].mxu0 %vm686_vm2, %v10473_v17 }
  0x51   : > { %8763 = vmatprep.mubr.msk.f32.mxu0 %vm10255_vm1, %v13579_v1 }
  0x52   : > { %8540 = vmatmul.mubr.msk.f32.gmra.mrb[20].mxu1 %vm686_vm2, %v10876_v5 }
  0x53   : > { %8542 = vmatprep.mubr.msk.f32.mxu1 %vm10255_vm1, %v13579_v1 }
  0x54   : > { %8764 = vmatmul.mubr.msk.f32.gmra.mrb[30].mxu0 %vm686_vm2, %v10480_v18 }
  0x55   : > { %8766 = vmatprep.mubr.msk.f32.mxu0 %vm10255_vm1, %v13579_v1 }
  0x58   : > { %8767 = vmatmul.mubr.msk.f32.gmra.mrb[32].mxu0 %vm686_vm2, %v10487_v19 }
  0x59   : > { %8769 = vmatprep.mubr.msk.f32.mxu0 %vm10255_vm1, %v13579_v1 }
  0x5c   : > { %8770 = vmatmul.mubr.msk.f32.gmra.mrb[34].mxu0 %vm686_vm2, %v10494_v20 }
  0x5d   : > { %8772 = vmatprep.mubr.msk.f32.mxu0 %vm10255_vm1, %v13579_v1 }
  0x60   : > { %8773 = vmatmul.mubr.msk.f32.gmra.mrb[36].mxu0 %vm686_vm2, %v10501_v21 }
  0x61   : > { %8775 = vmatprep.mubr.msk.f32.mxu0 %vm10255_vm1, %v13579_v1 }
  0x64   : > { %8776 = vmatmul.mubr.msk.f32.gmra.mrb[38].mxu0 %vm686_vm2, %v10508_v22 }
  0x65   : > { %8778 = vmatprep.mubr.msk.f32.mxu0 %vm10255_vm1, %v13579_v1 }
  0x68   : > { %8779 = vmatmul.mubr.msk.f32.gmra.mrb[40].mxu0 %vm686_vm2, %v10515_v23 }
  0x69   : > { %8781 = vmatprep.mubr.msk.f32.mxu0 %vm10255_vm1, %v13579_v1 }
  0x6c   : > { %8782 = vmatmul.mubr.msk.f32.gmra.mrb[42].mxu0 %vm686_vm2, %v10522_v24 }
  0x6d   : > { %8784 = vmatprep.mubr.msk.f32.mxu0 %vm10255_vm1, %v13579_v1 }
  0x70   : > { %8785 = vmatmul.mubr.msk.f32.gmra.mrb[44].mxu0 %vm686_vm2, %v10529_v25 }
  0x71   : > { %8787 = vmatprep.mubr.msk.f32.mxu0 %vm10255_vm1, %v13579_v1 }
  0x74   : > { %8788 = vmatmul.mubr.msk.f32.gmra.mrb[46].mxu0 %vm686_vm2, %v10536_v26 }
  0x75   : > { %8790 = vmatprep.mubr.msk.f32.mxu0 %vm10255_vm1, %v13579_v1 }
  0x78   : > { %8791 = vmatmul.mubr.msk.f32.gmra.mrb[48].mxu0 %vm686_vm2, %v10543_v27 }
  0x79   : > { %8793 = vmatprep.mubr.msk.f32.mxu0 %vm10255_vm1, %v13579_v1 }
  0x7c   : > { %8794 = vmatmul.mubr.msk.f32.gmra.mrb[50].mxu0 %vm686_vm2, %v10550_v28 }
  0x7d   : > { %8796 = vmatprep.mubr.msk.f32.mxu0 %vm10255_vm1, %v13579_v1 }
  0x80   : > { %8797 = vmatmul.mubr.msk.f32.gmra.mrb[52].mxu0 %vm686_vm2, %v10557_v29 }
  0x81   : > { %8799 = vmatprep.mubr.msk.f32.mxu0 %vm10255_vm1, %v13579_v1 }
  0x84   : > { %8800 = vmatmul.mubr.msk.f32.gmra.mrb[54].mxu0 %vm686_vm2, %v10564_v30 }
  0x85   : > { %8802 = vmatprep.mubr.msk.f32.mxu0 %vm10255_vm1, %v13579_v1 }
  0x88   : > { %8803 = vmatmul.mubr.msk.f32.gmra.mrb[56].mxu0 %vm686_vm2, %v10571_v31 }
  0x89   : > { %8805 = vmatprep.mubr.msk.f32.mxu0 %vm10255_vm1, %v13579_v1 }
  0x8c   : > { %8806 = vmatmul.mubr.msk.f32.gmra.mrb[58].mxu0 %vm686_vm2, %v10578_v32 }
  0x8d   : > { %8808 = vmatprep.mubr.msk.f32.mxu0 %vm10255_vm1, %v13579_v1 }
  0x90   : > { %8809 = vmatmul.mubr.msk.f32.gmra.mrb[60].mxu0 %vm686_vm2, %v10585_v33 }
  0x91   : > { %8811 = vmatprep.mubr.msk.f32.mxu0 %vm10255_vm1, %v13579_v1 }
  0x94   : > { %8812 = vmatmul.mubr.msk.f32.gmra.mrb[62].mxu0 %vm686_vm2, %v10592_v34 }
  0x95   : > { %8814 = vmatprep.mubr.msk.f32.mxu0 %vm10255_vm1, %v13579_v1 }
  0x98   : > { %8815 = vmatmul.mubr.msk.f32.gmra.mrb[64].mxu0 %vm686_vm2, %v10599_v35 }
  0x99   : > { %8817 = vmatprep.mubr.msk.f32.mxu0 %vm10255_vm1, %v13579_v1 }
  0x9c   : > { %8818 = vmatmul.mubr.msk.f32.gmra.mrb[66].mxu0 %vm686_vm2, %v10606_v36 }
  0x9d   : > { %8820 = vmatprep.mubr.msk.f32.mxu0 %vm10255_vm1, %v13579_v1 }
  0xa0   : > { %8821 = vmatmul.mubr.msk.f32.gmra.mrb[68].mxu0 %vm686_vm2, %v10613_v37 }
  0xa1   : > { %8823 = vmatprep.mubr.msk.f32.mxu0 %vm10255_vm1, %v13579_v1 }
  0xa4   : > { %8824 = vmatmul.mubr.msk.f32.gmra.mrb[70].mxu0 %vm686_vm2, %v10620_v38 }
  0xa5   : > { %8826 = vmatprep.mubr.msk.f32.mxu0 %vm10255_vm1, %v13579_v1 }
  0xa8   : > { %8827 = vmatmul.mubr.msk.f32.gmra.mrb[72].mxu0 %vm686_vm2, %v10627_v39 }
  0xa9   : > { %8829 = vmatprep.mubr.msk.f32.mxu0 %vm10255_vm1, %v13579_v1 }
  0xac   : > { %8830 = vmatmul.mubr.msk.f32.gmra.mrb[74].mxu0 %vm686_vm2, %v10634_v40 }
  0xad   : > { %8832 = vmatprep.mubr.msk.f32.mxu0 %vm10255_vm1, %v13579_v1 }
  0xb0   : > { %8833 = vmatmul.mubr.msk.f32.gmra.mrb[76].mxu0 %vm686_vm2, %v10641_v41 }
  0xb1   : > { %8835 = vmatprep.mubr.msk.f32.mxu0 %vm10255_vm1, %v13579_v1 }
  0xb4   : > { %8836 = vmatmul.mubr.msk.f32.gmra.mrb[78].mxu0 %vm686_vm2, %v10648_v42 }
  0xb5   : > { %8838 = vmatprep.mubr.msk.f32.mxu0 %vm10255_vm1, %v13579_v1 }
  0xb8   : > { %8839 = vmatmul.mubr.msk.f32.gmra.mrb[80].mxu0 %vm686_vm2, %v10655_v43 }
  0xb9   : > { %8841 = vmatprep.mubr.msk.f32.mxu0 %vm10255_vm1, %v13579_v1 }
  0xbc   : > { %8842 = vmatmul.mubr.msk.f32.gmra.mrb[82].mxu0 %vm686_vm2, %v10662_v44 }
  0xbd   : > { %8844 = vmatprep.mubr.msk.f32.mxu0 %vm10255_vm1, %v13579_v1 }
  0xc0   : > { %8845 = vmatmul.mubr.msk.f32.gmra.mrb[84].mxu0 %vm686_vm2, %v10669_v45 }
  0xc1   : > { %8847 = vmatprep.mubr.msk.f32.mxu0 %vm10255_vm1, %v13579_v1 }
  0xc4   : > { %8848 = vmatmul.mubr.msk.f32.gmra.mrb[86].mxu0 %vm686_vm2, %v10676_v46 }
  0xc5   : > { %8850 = vmatprep.mubr.msk.f32.mxu0 %vm10255_vm1, %v13579_v1 }
  0xc8   : > { %8851 = vmatmul.mubr.msk.f32.gmra.mrb[88].mxu0 %vm686_vm2, %v10683_v47 }
  0xc9   : > { %8853 = vmatprep.mubr.msk.f32.mxu0 %vm10255_vm1, %v13579_v1 }
  0xcc   : > { %8854 = vmatmul.mubr.msk.f32.gmra.mrb[90].mxu0 %vm686_vm2, %v10690_v48 }
  0xcd   : > { %8856 = vmatprep.mubr.msk.f32.mxu0 %vm10255_vm1, %v13579_v1 }
  0xd0   : > { %8857 = vmatmul.mubr.msk.f32.gmra.mrb[92].mxu0 %vm686_vm2, %v10697_v49 }
  0xd1   : > { %8859 = vmatprep.mubr.msk.f32.mxu0 %vm10255_vm1, %v13579_v1 }
  0xd4   : > { %8860 = vmatmul.mubr.msk.f32.gmra.mrb[94].mxu0 %vm686_vm2, %v10704_v50 }
  0xd5   : > { %8862 = vmatprep.mubr.msk.f32.mxu0 %vm10255_vm1, %v13579_v1 }
  0xd8   : > { %8863 = vmatmul.mubr.msk.f32.gmra.mrb[96].mxu0 %vm686_vm2, %v10711_v51 }
  0xd9   : > { %8865 = vmatprep.mubr.msk.f32.mxu0 %vm10255_vm1, %v13579_v1 }
  0xdc   : > { %8866 = vmatmul.mubr.msk.f32.gmra.mrb[98].mxu0 %vm686_vm2, %v10718_v52 }
  0xdd   : > { %8868 = vmatprep.mubr.msk.f32.mxu0 %vm10255_vm1, %v13579_v1 }
  0xe0   : > { %8869 = vmatmul.mubr.msk.f32.gmra.mrb[100].mxu0 %vm686_vm2, %v10725_v53 }
  0xe1   : > { %8871 = vmatprep.mubr.msk.f32.mxu0 %vm10255_vm1, %v13579_v1 }
  0xe4   : > { %8872 = vmatmul.mubr.msk.f32.gmra.mrb[102].mxu0 %vm686_vm2, %v10732_v54 }
  0xe5   : > { %8874 = vmatprep.mubr.msk.f32.mxu0 %vm10255_vm1, %v13579_v1 }
  0xe8   : > { %8875 = vmatmul.mubr.msk.f32.gmra.mrb[104].mxu0 %vm686_vm2, %v10739_v55 }
  0xe9   : > { %8927 = vmatprep.mubr.msk.f32.mxu0 %vm10255_vm1, %v13579_v1 }
  0xec   : > { %8928 = vmatmul.mubr.msk.f32.vlgmr.msra.gmra.mrb[0].mxu0 %vm686_vm2, %v10396_v6  ;;  %v10887_v6 = vld [vmem:[%s10376_s19 + $0x59] sm:$0xff] }
  0xed   : > { %8930 = vmatprep.mubr.msk.f32.mxu0 %vm10255_vm1, %v13579_v1  ;;  %9135 = vmatpush3.msk.msra.mxu0 %vm894_vm0, %v7708_v56  ;;  %v11373_v56 = vld [vmem:[%s10376_s19 + $0x1a9] sm:$0xff] }
  0xee   : > { %8543 = vmatmul.mubr.msk.f32.gmra.mrb[22].mxu1 %vm686_vm2, %v10887_v6  ;;  %13592 = vst [vmem:[#allocation12_spill] sm:$0xff] %v11373_v56 }
  0xef   : > { %8545 = vmatprep.mubr.msk.f32.mxu1 %vm10255_vm1, %v13579_v1 }
  0xf0   : > { %8931 = vmatmul.mubr.msk.f32.gmra.mrb[2].mxu0 %vm686_vm2, %v10403_v7  ;;  %v10898_v7 = vld [vmem:[%s10376_s19 + $0x61] sm:$0xff] }
  0xf1   : > { %8933 = vmatprep.mubr.msk.f32.mxu0 %vm10255_vm1, %v13579_v1 }
  0xf2   : > { %8546 = vmatmul.mubr.msk.f32.gmra.mrb[24].mxu1 %vm686_vm2, %v10898_v7 }
  0xf3   : > { %8548 = vmatprep.mubr.msk.f32.mxu1 %vm10255_vm1, %v13579_v1 }
  0xf4   : > { %8934 = vmatmul.mubr.msk.f32.gmra.mrb[4].mxu0 %vm686_vm2, %v10410_v8  ;;  %v10909_v8 = vld [vmem:[%s10376_s19 + $0x69] sm:$0xff] }
  0xf5   : > { %8936 = vmatprep.mubr.msk.f32.mxu0 %vm10255_vm1, %v13579_v1 }
  0xf6   : > { %8549 = vmatmul.mubr.msk.f32.gmra.mrb[26].mxu1 %vm686_vm2, %v10909_v8 }
  0xf7   : > { %8551 = vmatprep.mubr.msk.f32.mxu1 %vm10255_vm1, %v13579_v1 }
  0xf8   : > { %8937 = vmatmul.mubr.msk.f32.gmra.mrb[6].mxu0 %vm686_vm2, %v10417_v9  ;;  %v10920_v9 = vld [vmem:[%s10376_s19 + $0x71] sm:$0xff] }
  0xf9   : > { %8939 = vmatprep.mubr.msk.f32.mxu0 %vm10255_vm1, %v13579_v1 }
  0xfa   : > { %8552 = vmatmul.mubr.msk.f32.gmra.mrb[28].mxu1 %vm686_vm2, %v10920_v9 }
  0xfb   : > { %8554 = vmatprep.mubr.msk.f32.mxu1 %vm10255_vm1, %v13579_v1 }
  0xfc   : > { %8940 = vmatmul.mubr.msk.f32.gmra.mrb[8].mxu0 %vm686_vm2, %v10424_v10  ;;  %v10931_v10 = vld [vmem:[%s10376_s19 + $0x79] sm:$0xff] }
  0xfd   : > { %8942 = vmatprep.mubr.msk.f32.mxu0 %vm10255_vm1, %v13579_v1 }
  0xfe   : > { %8555 = vmatmul.mubr.msk.f32.gmra.mrb[30].mxu1 %vm686_vm2, %v10931_v10 }
  0xff   : > { %8557 = vmatprep.mubr.msk.f32.mxu1 %vm10255_vm1, %v13579_v1 }
 0x100   : > { %8943 = vmatmul.mubr.msk.f32.gmra.mrb[10].mxu0 %vm686_vm2, %v10431_v11  ;;  %v10942_v11 = vld [vmem:[%s10376_s19 + $0x81] sm:$0xff] }
 0x101   : > { %8945 = vmatprep.mubr.msk.f32.mxu0 %vm10255_vm1, %v13579_v1 }
 0x102   : > { %8558 = vmatmul.mubr.msk.f32.gmra.mrb[32].mxu1 %vm686_vm2, %v10942_v11 }
 0x103   : > { %8560 = vmatprep.mubr.msk.f32.mxu1 %vm10255_vm1, %v13579_v1 }
 0x104   : > { %8946 = vmatmul.mubr.msk.f32.gmra.mrb[12].mxu0 %vm686_vm2, %v10438_v12  ;;  %v10953_v12 = vld [vmem:[%s10376_s19 + $0x89] sm:$0xff] }
 0x105   : > { %8948 = vmatprep.mubr.msk.f32.mxu0 %vm10255_vm1, %v13579_v1 }
 0x106   : > { %8561 = vmatmul.mubr.msk.f32.gmra.mrb[34].mxu1 %vm686_vm2, %v10953_v12 }
 0x107   : > { %8563 = vmatprep.mubr.msk.f32.mxu1 %vm10255_vm1, %v13579_v1 }
 0x108   : > { %8949 = vmatmul.mubr.msk.f32.gmra.mrb[14].mxu0 %vm686_vm2, %v10445_v13  ;;  %v10964_v13 = vld [vmem:[%s10376_s19 + $0x91] sm:$0xff] }
 0x109   : > { %8951 = vmatprep.mubr.msk.f32.mxu0 %vm10255_vm1, %v13579_v1 }
 0x10a   : > { %8564 = vmatmul.mubr.msk.f32.gmra.mrb[36].mxu1 %vm686_vm2, %v10964_v13 }
 0x10b   : > { %8566 = vmatprep.mubr.msk.f32.mxu1 %vm10255_vm1, %v13579_v1 }
 0x10c   : > { %8952 = vmatmul.mubr.msk.f32.gmra.mrb[16].mxu0 %vm686_vm2, %v10452_v14  ;;  %v10975_v14 = vld [vmem:[%s10376_s19 + $0x99] sm:$0xff] }
 0x10d   : > { %8954 = vmatprep.mubr.msk.f32.mxu0 %vm10255_vm1, %v13579_v1 }
 0x10e   : > { %8567 = vmatmul.mubr.msk.f32.gmra.mrb[38].mxu1 %vm686_vm2, %v10975_v14 }
 0x10f   : > { %8569 = vmatprep.mubr.msk.f32.mxu1 %vm10255_vm1, %v13579_v1 }
 0x110   : > { %8955 = vmatmul.mubr.msk.f32.gmra.mrb[18].mxu0 %vm686_vm2, %v10459_v15  ;;  %v10986_v15 = vld [vmem:[%s10376_s19 + $0xa1] sm:$0xff] }
 0x111   : > { %8957 = vmatprep.mubr.msk.f32.mxu0 %vm10255_vm1, %v13579_v1 }
 0x112   : > { %8570 = vmatmul.mubr.msk.f32.gmra.mrb[40].mxu1 %vm686_vm2, %v10986_v15 }
 0x113   : > { %8572 = vmatprep.mubr.msk.f32.mxu1 %vm10255_vm1, %v13579_v1 }
 0x114   : > { %8958 = vmatmul.mubr.msk.f32.gmra.mrb[20].mxu0 %vm686_vm2, %v10466_v16  ;;  %v10997_v16 = vld [vmem:[%s10376_s19 + $0xa9] sm:$0xff] }
 0x115   : > { %8960 = vmatprep.mubr.msk.f32.mxu0 %vm10255_vm1, %v13579_v1 }
 0x116   : > { %8573 = vmatmul.mubr.msk.f32.gmra.mrb[42].mxu1 %vm686_vm2, %v10997_v16 }
 0x117   : > { %8575 = vmatprep.mubr.msk.f32.mxu1 %vm10255_vm1, %v13579_v1 }
 0x118   : > { %8961 = vmatmul.mubr.msk.f32.gmra.mrb[22].mxu0 %vm686_vm2, %v10473_v17  ;;  %v11008_v17 = vld [vmem:[%s10376_s19 + $0xb1] sm:$0xff] }
 0x119   : > { %8963 = vmatprep.mubr.msk.f32.mxu0 %vm10255_vm1, %v13579_v1 }
 0x11a   : > { %8576 = vmatmul.mubr.msk.f32.gmra.mrb[44].mxu1 %vm686_vm2, %v11008_v17 }
 0x11b   : > { %8578 = vmatprep.mubr.msk.f32.mxu1 %vm10255_vm1, %v13579_v1 }
 0x11c   : > { %8964 = vmatmul.mubr.msk.f32.gmra.mrb[24].mxu0 %vm686_vm2, %v10480_v18  ;;  %v11019_v18 = vld [vmem:[%s10376_s19 + $0xb9] sm:$0xff] }
 0x11d   : > { %8966 = vmatprep.mubr.msk.f32.mxu0 %vm10255_vm1, %v13579_v1 }
 0x11e   : > { %8579 = vmatmul.mubr.msk.f32.gmra.mrb[46].mxu1 %vm686_vm2, %v11019_v18 }
 0x11f   : > { %8581 = vmatprep.mubr.msk.f32.mxu1 %vm10255_vm1, %v13579_v1 }
 0x120   : > { %8967 = vmatmul.mubr.msk.f32.gmra.mrb[26].mxu0 %vm686_vm2, %v10487_v19  ;;  %v11030_v19 = vld [vmem:[%s10376_s19 + $0xc1] sm:$0xff] }
 0x121   : > { %8969 = vmatprep.mubr.msk.f32.mxu0 %vm10255_vm1, %v13579_v1 }
 0x122   : > { %8582 = vmatmul.mubr.msk.f32.gmra.mrb[48].mxu1 %vm686_vm2, %v11030_v19 }
 0x123   : > { %8584 = vmatprep.mubr.msk.f32.mxu1 %vm10255_vm1, %v13579_v1 }
 0x124   : > { %8970 = vmatmul.mubr.msk.f32.gmra.mrb[28].mxu0 %vm686_vm2, %v10494_v20  ;;  %v11041_v20 = vld [vmem:[%s10376_s19 + $0xc9] sm:$0xff] }
 0x125   : > { %8972 = vmatprep.mubr.msk.f32.mxu0 %vm10255_vm1, %v13579_v1 }
 0x126   : > { %8585 = vmatmul.mubr.msk.f32.gmra.mrb[50].mxu1 %vm686_vm2, %v11041_v20 }
 0x127   : > { %8587 = vmatprep.mubr.msk.f32.mxu1 %vm10255_vm1, %v13579_v1 }
 0x128   : > { %8973 = vmatmul.mubr.msk.f32.gmra.mrb[30].mxu0 %vm686_vm2, %v10501_v21  ;;  %v11052_v21 = vld [vmem:[%s10376_s19 + $0xd1] sm:$0xff] }
 0x129   : > { %8975 = vmatprep.mubr.msk.f32.mxu0 %vm10255_vm1, %v13579_v1 }
 0x12a   : > { %8588 = vmatmul.mubr.msk.f32.gmra.mrb[52].mxu1 %vm686_vm2, %v11052_v21 }
 0x12b   : > { %8590 = vmatprep.mubr.msk.f32.mxu1 %vm10255_vm1, %v13579_v1 }
 0x12c   : > { %8976 = vmatmul.mubr.msk.f32.gmra.mrb[32].mxu0 %vm686_vm2, %v10508_v22  ;;  %v11063_v22 = vld [vmem:[%s10376_s19 + $0xd9] sm:$0xff] }
 0x12d   : > { %8978 = vmatprep.mubr.msk.f32.mxu0 %vm10255_vm1, %v13579_v1 }
 0x12e   : > { %8591 = vmatmul.mubr.msk.f32.gmra.mrb[54].mxu1 %vm686_vm2, %v11063_v22 }
 0x12f   : > { %8593 = vmatprep.mubr.msk.f32.mxu1 %vm10255_vm1, %v13579_v1 }
 0x130   : > { %8979 = vmatmul.mubr.msk.f32.gmra.mrb[34].mxu0 %vm686_vm2, %v10515_v23  ;;  %v11074_v23 = vld [vmem:[%s10376_s19 + $0xe1] sm:$0xff] }
 0x131   : > { %8981 = vmatprep.mubr.msk.f32.mxu0 %vm10255_vm1, %v13579_v1 }
 0x132   : > { %8594 = vmatmul.mubr.msk.f32.gmra.mrb[56].mxu1 %vm686_vm2, %v11074_v23 }
 0x133   : > { %8596 = vmatprep.mubr.msk.f32.mxu1 %vm10255_vm1, %v13579_v1 }
 0x134   : > { %8982 = vmatmul.mubr.msk.f32.gmra.mrb[36].mxu0 %vm686_vm2, %v10522_v24  ;;  %v11085_v24 = vld [vmem:[%s10376_s19 + $0xe9] sm:$0xff] }
 0x135   : > { %8984 = vmatprep.mubr.msk.f32.mxu0 %vm10255_vm1, %v13579_v1 }
 0x136   : > { %8597 = vmatmul.mubr.msk.f32.gmra.mrb[58].mxu1 %vm686_vm2, %v11085_v24 }
 0x137   : > { %8599 = vmatprep.mubr.msk.f32.mxu1 %vm10255_vm1, %v13579_v1 }
 0x138   : > { %8985 = vmatmul.mubr.msk.f32.gmra.mrb[38].mxu0 %vm686_vm2, %v10529_v25  ;;  %v11096_v25 = vld [vmem:[%s10376_s19 + $0xf1] sm:$0xff] }
 0x139   : > { %8987 = vmatprep.mubr.msk.f32.mxu0 %vm10255_vm1, %v13579_v1 }
 0x13a   : > { %8600 = vmatmul.mubr.msk.f32.gmra.mrb[60].mxu1 %vm686_vm2, %v11096_v25 }
 0x13b   : > { %8602 = vmatprep.mubr.msk.f32.mxu1 %vm10255_vm1, %v13579_v1 }
 0x13c   : > { %8988 = vmatmul.mubr.msk.f32.gmra.mrb[40].mxu0 %vm686_vm2, %v10536_v26  ;;  %v11107_v26 = vld [vmem:[%s10376_s19 + $0xf9] sm:$0xff] }
 0x13d   : > { %8990 = vmatprep.mubr.msk.f32.mxu0 %vm10255_vm1, %v13579_v1 }
 0x13e   : > { %8603 = vmatmul.mubr.msk.f32.gmra.mrb[62].mxu1 %vm686_vm2, %v11107_v26 }
 0x13f   : > { %8605 = vmatprep.mubr.msk.f32.mxu1 %vm10255_vm1, %v13579_v1 }
 0x140   : > { %8991 = vmatmul.mubr.msk.f32.gmra.mrb[42].mxu0 %vm686_vm2, %v10543_v27  ;;  %v11118_v27 = vld [vmem:[%s10376_s19 + $0x101] sm:$0xff] }
 0x141   : > { %8993 = vmatprep.mubr.msk.f32.mxu0 %vm10255_vm1, %v13579_v1 }
 0x142   : > { %8606 = vmatmul.mubr.msk.f32.gmra.mrb[64].mxu1 %vm686_vm2, %v11118_v27 }
 0x143   : > { %8608 = vmatprep.mubr.msk.f32.mxu1 %vm10255_vm1, %v13579_v1 }
 0x144   : > { %8994 = vmatmul.mubr.msk.f32.gmra.mrb[44].mxu0 %vm686_vm2, %v10550_v28  ;;  %v11129_v28 = vld [vmem:[%s10376_s19 + $0x109] sm:$0xff] }
 0x145   : > { %8996 = vmatprep.mubr.msk.f32.mxu0 %vm10255_vm1, %v13579_v1 }
 0x146   : > { %8609 = vmatmul.mubr.msk.f32.gmra.mrb[66].mxu1 %vm686_vm2, %v11129_v28 }
 0x147   : > { %8611 = vmatprep.mubr.msk.f32.mxu1 %vm10255_vm1, %v13579_v1 }
 0x148   : > { %8997 = vmatmul.mubr.msk.f32.gmra.mrb[46].mxu0 %vm686_vm2, %v10557_v29  ;;  %v11140_v29 = vld [vmem:[%s10376_s19 + $0x111] sm:$0xff] }
 0x149   : > { %8999 = vmatprep.mubr.msk.f32.mxu0 %vm10255_vm1, %v13579_v1 }
 0x14a   : > { %8612 = vmatmul.mubr.msk.f32.gmra.mrb[68].mxu1 %vm686_vm2, %v11140_v29 }
 0x14b   : > { %8614 = vmatprep.mubr.msk.f32.mxu1 %vm10255_vm1, %v13579_v1 }
 0x14c   : > { %9000 = vmatmul.mubr.msk.f32.gmra.mrb[48].mxu0 %vm686_vm2, %v10564_v30  ;;  %v11151_v30 = vld [vmem:[%s10376_s19 + $0x119] sm:$0xff] }
 0x14d   : > { %9002 = vmatprep.mubr.msk.f32.mxu0 %vm10255_vm1, %v13579_v1 }
 0x14e   : > { %8615 = vmatmul.mubr.msk.f32.gmra.mrb[70].mxu1 %vm686_vm2, %v11151_v30 }
 0x14f   : > { %8617 = vmatprep.mubr.msk.f32.mxu1 %vm10255_vm1, %v13579_v1 }
 0x150   : > { %9003 = vmatmul.mubr.msk.f32.gmra.mrb[50].mxu0 %vm686_vm2, %v10571_v31  ;;  %v11162_v31 = vld [vmem:[%s10376_s19 + $0x121] sm:$0xff] }
 0x151   : > { %9005 = vmatprep.mubr.msk.f32.mxu0 %vm10255_vm1, %v13579_v1 }
 0x152   : > { %8618 = vmatmul.mubr.msk.f32.gmra.mrb[72].mxu1 %vm686_vm2, %v11162_v31 }
 0x153   : > { %8620 = vmatprep.mubr.msk.f32.mxu1 %vm10255_vm1, %v13579_v1 }
 0x154   : > { %9006 = vmatmul.mubr.msk.f32.gmra.mrb[52].mxu0 %vm686_vm2, %v10578_v32  ;;  %v11173_v32 = vld [vmem:[%s10376_s19 + $0x129] sm:$0xff] }
 0x155   : > { %9008 = vmatprep.mubr.msk.f32.mxu0 %vm10255_vm1, %v13579_v1 }
 0x156   : > { %8621 = vmatmul.mubr.msk.f32.gmra.mrb[74].mxu1 %vm686_vm2, %v11173_v32 }
 0x157   : > { %8623 = vmatprep.mubr.msk.f32.mxu1 %vm10255_vm1, %v13579_v1 }
 0x158   : > { %9009 = vmatmul.mubr.msk.f32.gmra.mrb[54].mxu0 %vm686_vm2, %v10585_v33  ;;  %v11184_v33 = vld [vmem:[%s10376_s19 + $0x131] sm:$0xff] }
 0x159   : > { %9011 = vmatprep.mubr.msk.f32.mxu0 %vm10255_vm1, %v13579_v1 }
 0x15a   : > { %8624 = vmatmul.mubr.msk.f32.gmra.mrb[76].mxu1 %vm686_vm2, %v11184_v33 }
 0x15b   : > { %8626 = vmatprep.mubr.msk.f32.mxu1 %vm10255_vm1, %v13579_v1 }
 0x15c   : > { %9012 = vmatmul.mubr.msk.f32.gmra.mrb[56].mxu0 %vm686_vm2, %v10592_v34  ;;  %v11195_v34 = vld [vmem:[%s10376_s19 + $0x139] sm:$0xff] }
 0x15d   : > { %9014 = vmatprep.mubr.msk.f32.mxu0 %vm10255_vm1, %v13579_v1 }
 0x15e   : > { %8627 = vmatmul.mubr.msk.f32.gmra.mrb[78].mxu1 %vm686_vm2, %v11195_v34 }
 0x15f   : > { %8629 = vmatprep.mubr.msk.f32.mxu1 %vm10255_vm1, %v13579_v1 }
 0x160   : > { %9015 = vmatmul.mubr.msk.f32.gmra.mrb[58].mxu0 %vm686_vm2, %v10599_v35  ;;  %v11206_v35 = vld [vmem:[%s10376_s19 + $0x141] sm:$0xff] }
 0x161   : > { %9017 = vmatprep.mubr.msk.f32.mxu0 %vm10255_vm1, %v13579_v1 }
 0x162   : > { %8630 = vmatmul.mubr.msk.f32.gmra.mrb[80].mxu1 %vm686_vm2, %v11206_v35 }
 0x163   : > { %8632 = vmatprep.mubr.msk.f32.mxu1 %vm10255_vm1, %v13579_v1 }
 0x164   : > { %9018 = vmatmul.mubr.msk.f32.gmra.mrb[60].mxu0 %vm686_vm2, %v10606_v36  ;;  %v11217_v36 = vld [vmem:[%s10376_s19 + $0x149] sm:$0xff] }
 0x165   : > { %9020 = vmatprep.mubr.msk.f32.mxu0 %vm10255_vm1, %v13579_v1 }
 0x166   : > { %8633 = vmatmul.mubr.msk.f32.gmra.mrb[82].mxu1 %vm686_vm2, %v11217_v36 }
 0x167   : > { %8635 = vmatprep.mubr.msk.f32.mxu1 %vm10255_vm1, %v13579_v1 }
 0x168   : > { %9021 = vmatmul.mubr.msk.f32.gmra.mrb[62].mxu0 %vm686_vm2, %v10613_v37  ;;  %v11228_v37 = vld [vmem:[%s10376_s19 + $0x151] sm:$0xff] }
 0x169   : > { %9023 = vmatprep.mubr.msk.f32.mxu0 %vm10255_vm1, %v13579_v1 }
 0x16a   : > { %8636 = vmatmul.mubr.msk.f32.gmra.mrb[84].mxu1 %vm686_vm2, %v11228_v37 }
 0x16b   : > { %8638 = vmatprep.mubr.msk.f32.mxu1 %vm10255_vm1, %v13579_v1 }
 0x16c   : > { %9024 = vmatmul.mubr.msk.f32.gmra.mrb[64].mxu0 %vm686_vm2, %v10620_v38  ;;  %v11239_v38 = vld [vmem:[%s10376_s19 + $0x159] sm:$0xff] }
 0x16d   : > { %9026 = vmatprep.mubr.msk.f32.mxu0 %vm10255_vm1, %v13579_v1 }
 0x16e   : > { %8639 = vmatmul.mubr.msk.f32.gmra.mrb[86].mxu1 %vm686_vm2, %v11239_v38 }
 0x16f   : > { %8641 = vmatprep.mubr.msk.f32.mxu1 %vm10255_vm1, %v13579_v1 }
 0x170   : > { %9027 = vmatmul.mubr.msk.f32.gmra.mrb[66].mxu0 %vm686_vm2, %v10627_v39  ;;  %v11250_v39 = vld [vmem:[%s10376_s19 + $0x161] sm:$0xff] }
 0x171   : > { %9029 = vmatprep.mubr.msk.f32.mxu0 %vm10255_vm1, %v13579_v1 }
 0x172   : > { %8642 = vmatmul.mubr.msk.f32.gmra.mrb[88].mxu1 %vm686_vm2, %v11250_v39 }
 0x173   : > { %8644 = vmatprep.mubr.msk.f32.mxu1 %vm10255_vm1, %v13579_v1 }
 0x174   : > { %9030 = vmatmul.mubr.msk.f32.gmra.mrb[68].mxu0 %vm686_vm2, %v10634_v40  ;;  %v11261_v40 = vld [vmem:[%s10376_s19 + $0x169] sm:$0xff] }
 0x175   : > { %9032 = vmatprep.mubr.msk.f32.mxu0 %vm10255_vm1, %v13579_v1 }
 0x176   : > { %8645 = vmatmul.mubr.msk.f32.gmra.mrb[90].mxu1 %vm686_vm2, %v11261_v40 }
 0x177   : > { %8647 = vmatprep.mubr.msk.f32.mxu1 %vm10255_vm1, %v13579_v1 }
 0x178   : > { %9033 = vmatmul.mubr.msk.f32.gmra.mrb[70].mxu0 %vm686_vm2, %v10641_v41  ;;  %v11266_v41 = vld [vmem:[%s10376_s19 + $0x1a8] sm:$0xff] }
 0x179   : > { %9035 = vmatprep.mubr.msk.f32.mxu0 %vm10255_vm1, %v13579_v1 }
 0x17c   : > { %9036 = vmatmul.mubr.msk.f32.gmra.mrb[72].mxu0 %vm686_vm2, %v10648_v42  ;;  %v11275_v42 = vld [vmem:[%s10376_s19 + $0x171] sm:$0xff] }
 0x17d   : > { %9038 = vmatprep.mubr.msk.f32.mxu0 %vm10255_vm1, %v13579_v1  ;;  %8648 = vmatmul.mubr.msk.f32.gmra.mrb[92].mxu1 %vm686_vm2, %v11275_v42 }
 0x17e   : > { %8650 = vmatprep.mubr.msk.f32.mxu1 %vm10255_vm1, %v13579_v1 }
 0x180   : > { %9039 = vmatmul.mubr.msk.f32.gmra.mrb[74].mxu0 %vm686_vm2, %v10655_v43  ;;  %v11280_v43 = vld [vmem:[%s10376_s19 + $0x1b0] sm:$0xff] }
 0x181   : > { %9041 = vmatprep.mubr.msk.f32.mxu0 %vm10255_vm1, %v13579_v1 }
 0x184   : > { %9042 = vmatmul.mubr.msk.f32.gmra.mrb[76].mxu0 %vm686_vm2, %v10662_v44  ;;  %v11289_v44 = vld [vmem:[%s10376_s19 + $0x179] sm:$0xff] }
 0x185   : > { %9044 = vmatprep.mubr.msk.f32.mxu0 %vm10255_vm1, %v13579_v1  ;;  %13586 = vst [vmem:[#allocation6_spill] sm:$0xff] %v11289_v44  ;;  %8651 = vmatmul.mubr.msk.f32.gmra.mrb[94].mxu1 %vm686_vm2, %v11289_v44  ;;  %v1994_v44 = vld [vmem:[%s10376_s19 + $0x228] sm:$0xff] }
 0x186   : > { %8653 = vmatprep.mubr.msk.f32.mxu1 %vm10255_vm1, %v13579_v1 }
 0x188   : > { %9045 = vmatmul.mubr.msk.f32.gmra.mrb[78].mxu0 %vm686_vm2, %v10669_v45  ;;  %v11294_v45 = vld [vmem:[%s10376_s19 + $0x1b8] sm:$0xff] }
 0x189   : > { %9047 = vmatprep.mubr.msk.f32.mxu0 %vm10255_vm1, %v13579_v1 }
 0x18c   : > { %9048 = vmatmul.mubr.msk.f32.gmra.mrb[80].mxu0 %vm686_vm2, %v10676_v46  ;;  %v11303_v46 = vld [vmem:[%s10376_s19 + $0x181] sm:$0xff] }
 0x18d   : > { %9050 = vmatprep.mubr.msk.f32.mxu0 %vm10255_vm1, %v13579_v1  ;;  %13587 = vst [vmem:[#allocation7_spill] sm:$0xff] %v11303_v46  ;;  %8654 = vmatmul.mubr.msk.f32.gmra.mrb[96].mxu1 %vm686_vm2, %v11303_v46  ;;  %v1993_v46 = vld [vmem:[%s10376_s19 + $0x220] sm:$0xff] }
 0x18e   : > { %8656 = vmatprep.mubr.msk.f32.mxu1 %vm10255_vm1, %v13579_v1 }
 0x190   : > { %9051 = vmatmul.mubr.msk.f32.gmra.mrb[82].mxu0 %vm686_vm2, %v10683_v47  ;;  %v11308_v47 = vld [vmem:[%s10376_s19 + $0x1c0] sm:$0xff] }
 0x191   : > { %9053 = vmatprep.mubr.msk.f32.mxu0 %vm10255_vm1, %v13579_v1 }
 0x194   : > { %9054 = vmatmul.mubr.msk.f32.gmra.mrb[84].mxu0 %vm686_vm2, %v10690_v48  ;;  %v11317_v48 = vld [vmem:[%s10376_s19 + $0x189] sm:$0xff] }
 0x195   : > { %9056 = vmatprep.mubr.msk.f32.mxu0 %vm10255_vm1, %v13579_v1  ;;  %13588 = vst [vmem:[#allocation8_spill] sm:$0xff] %v11317_v48  ;;  %8657 = vmatmul.mubr.msk.f32.gmra.mrb[98].mxu1 %vm686_vm2, %v11317_v48  ;;  %v11462_v48 = vld [vmem:[%s10376_s19 + $0x218] sm:$0xff] }
 0x196   : > { %8659 = vmatprep.mubr.msk.f32.mxu1 %vm10255_vm1, %v13579_v1 }
 0x198   : > { %9057 = vmatmul.mubr.msk.f32.gmra.mrb[86].mxu0 %vm686_vm2, %v10697_v49  ;;  %v11322_v49 = vld [vmem:[%s10376_s19 + $0x1c8] sm:$0xff] }
 0x199   : > { %9059 = vmatprep.mubr.msk.f32.mxu0 %vm10255_vm1, %v13579_v1 }
 0x19c   : > { %9060 = vmatmul.mubr.msk.f32.gmra.mrb[88].mxu0 %vm686_vm2, %v10704_v50  ;;  %v11331_v50 = vld [vmem:[%s10376_s19 + $0x191] sm:$0xff] }
 0x19d   : > { %9062 = vmatprep.mubr.msk.f32.mxu0 %vm10255_vm1, %v13579_v1  ;;  %13589 = vst [vmem:[#allocation9_spill] sm:$0xff] %v11331_v50  ;;  %8660 = vmatmul.mubr.msk.f32.gmra.mrb[100].mxu1 %vm686_vm2, %v11331_v50  ;;  %v11448_v50 = vld [vmem:[%s10376_s19 + $0x210] sm:$0xff] }
 0x19e   : > { %8662 = vmatprep.mubr.msk.f32.mxu1 %vm10255_vm1, %v13579_v1 }
 0x1a0   : > { %9063 = vmatmul.mubr.msk.f32.gmra.mrb[90].mxu0 %vm686_vm2, %v10711_v51  ;;  %v11336_v51 = vld [vmem:[%s10376_s19 + $0x1d0] sm:$0xff] }
 0x1a1   : > { %9065 = vmatprep.mubr.msk.f32.mxu0 %vm10255_vm1, %v13579_v1 }
 0x1a4   : > { %9066 = vmatmul.mubr.msk.f32.gmra.mrb[92].mxu0 %vm686_vm2, %v10718_v52  ;;  %v11345_v52 = vld [vmem:[%s10376_s19 + $0x199] sm:$0xff] }
 0x1a5   : > { %9068 = vmatprep.mubr.msk.f32.mxu0 %vm10255_vm1, %v13579_v1  ;;  %13590 = vst [vmem:[#allocation10_spill] sm:$0xff] %v11345_v52  ;;  %8663 = vmatmul.mubr.msk.f32.gmra.mrb[102].mxu1 %vm686_vm2, %v11345_v52  ;;  %v11434_v52 = vld [vmem:[%s10376_s19 + $0x208] sm:$0xff] }
 0x1a6   : > { %8665 = vmatprep.mubr.msk.f32.mxu1 %vm10255_vm1, %v13579_v1 }
 0x1a8   : > { %9069 = vmatmul.mubr.msk.f32.gmra.mrb[94].mxu0 %vm686_vm2, %v10725_v53  ;;  %v11350_v53 = vld [vmem:[%s10376_s19 + $0x1d8] sm:$0xff] }
 0x1a9   : > { %9071 = vmatprep.mubr.msk.f32.mxu0 %vm10255_vm1, %v13579_v1 }
 0x1ac   : > { %9072 = vmatmul.mubr.msk.f32.gmra.mrb[96].mxu0 %vm686_vm2, %v10732_v54  ;;  %v11359_v54 = vld [vmem:[%s10376_s19 + $0x1a1] sm:$0xff] }
 0x1ad   : > { %9074 = vmatprep.mubr.msk.f32.mxu0 %vm10255_vm1, %v13579_v1  ;;  %13591 = vst [vmem:[#allocation11_spill] sm:$0xff] %v11359_v54  ;;  %8666 = vmatmul.mubr.msk.f32.gmra.mrb[104].mxu1 %vm686_vm2, %v11359_v54  ;;  %v11420_v54 = vld [vmem:[%s10376_s19 + $0x200] sm:$0xff] }
 0x1ae   : > { %8668 = vmatprep.mubr.msk.f32.mxu1 %vm10255_vm1, %v13579_v1 }
 0x1b0   : > { %9075 = vmatmul.mubr.msk.f32.gmra.mrb[98].mxu0 %vm686_vm2, %v10739_v55  ;;  %v11364_v55 = vld [vmem:[%s10376_s19 + $0x1e0] sm:$0xff] }
 0x1b1   : > { %9077 = vmatprep.mubr.msk.f32.mxu0 %vm10255_vm1, %v13579_v1  ;;  %8669 = vmatmul.mubr.msk.f32.gmra.mrb[106].mxu1 %vm686_vm2, %v11373_v56  ;;  %v11406_v56 = vld [vmem:[%s10376_s19 + $0x1f8] sm:$0xff] }
 0x1b2   : > { %8671 = vmatprep.mubr.msk.f32.mxu1 %vm10255_vm1, %v13579_v1 }
 0x1b4   : > { %9078 = vmatmul.mubr.msk.f32.gmra.mrb[100].mxu0 %vm686_vm2, %v11266_v41 }
 0x1b5   : > { %9080 = vmatprep.mubr.msk.f32.mxu0 %vm10255_vm1, %v13579_v1  ;;  %8672 = vmatmul.mubr.msk.f32.gmra.mrb[108].mxu1 %vm686_vm2, %v11387_v58  ;;  %v11415_v58 = vld [vmem:[%s10376_s19 + $0x1c1] sm:$0xff] }
 0x1b6   : > { %8674 = vmatprep.mubr.msk.f32.mxu1 %vm10255_vm1, %v13579_v1  ;;  %13595 = vst [vmem:[#allocation15_spill] sm:$0xff] %v11415_v58 }
 0x1b8   : > { %9081 = vmatmul.mubr.msk.f32.gmra.mrb[102].mxu0 %vm686_vm2, %v11280_v43 }
 0x1b9   : > { %9083 = vmatprep.mubr.msk.f32.mxu0 %vm10255_vm1, %v13579_v1  ;;  %8675 = vmatmul.mubr.msk.f32.gmra.mrb[110].mxu1 %vm686_vm2, %v11401_v60  ;;  %v11429_v60 = vld [vmem:[%s10376_s19 + $0x1c9] sm:$0xff] }
 0x1ba   : > { %8677 = vmatprep.mubr.msk.f32.mxu1 %vm10255_vm1, %v13579_v1  ;;  %13596 = vst [vmem:[#allocation16_spill] sm:$0xff] %v11429_v60 }
 0x1bc   : > { %9084 = vmatmul.mubr.msk.f32.gmra.mrb[104].mxu0 %vm686_vm2, %v11294_v45 }
 0x1bd   : > { %9086 = vmatprep.mubr.msk.f32.mxu0 %vm10255_vm1, %v13579_v1  ;;  %8678 = vmatmul.mubr.msk.f32.gmra.mrb[112].mxu1 %vm686_vm2, %v11415_v58  ;;  %v11443_v58 = vld [vmem:[%s10376_s19 + $0x1d1] sm:$0xff] }
 0x1be   : > { %8680 = vmatprep.mubr.msk.f32.mxu1 %vm10255_vm1, %v13579_v1  ;;  %13597 = vst [vmem:[#allocation17_spill] sm:$0xff] %v11443_v58 }
 0x1c0   : > { %9087 = vmatmul.mubr.msk.f32.gmra.mrb[106].mxu0 %vm686_vm2, %v11308_v47 }
 0x1c1   : > { %9089 = vmatprep.mubr.msk.f32.mxu0 %vm10255_vm1, %v13579_v1  ;;  %8681 = vmatmul.mubr.msk.f32.gmra.mrb[114].mxu1 %vm686_vm2, %v11429_v60  ;;  %v11457_v60 = vld [vmem:[%s10376_s19 + $0x1d9] sm:$0xff] }
 0x1c2   : > { %8683 = vmatprep.mubr.msk.f32.mxu1 %vm10255_vm1, %v13579_v1  ;;  %13598 = vst [vmem:[#allocation18_spill] sm:$0xff] %v11457_v60 }
 0x1c4   : > { %9090 = vmatmul.mubr.msk.f32.gmra.mrb[108].mxu0 %vm686_vm2, %v11322_v49 }
 0x1c5   : > { %9092 = vmatprep.mubr.msk.f32.mxu0 %vm10255_vm1, %v13579_v1  ;;  %8684 = vmatmul.mubr.msk.f32.gmra.mrb[116].mxu1 %vm686_vm2, %v11443_v58  ;;  %v11471_v58 = vld [vmem:[%s10376_s19 + $0x1e1] sm:$0xff] }
 0x1c6   : > { %8686 = vmatprep.mubr.msk.f32.mxu1 %vm10255_vm1, %v13579_v1  ;;  %13599 = vst [vmem:[#allocation19_spill] sm:$0xff] %v11471_v58 }
 0x1c8   : > { %9093 = vmatmul.mubr.msk.f32.gmra.mrb[110].mxu0 %vm686_vm2, %v11336_v51 }
 0x1c9   : > { %9095 = vmatprep.mubr.msk.f32.mxu0 %vm10255_vm1, %v13579_v1  ;;  %8687 = vmatmul.mubr.msk.f32.gmra.mrb[118].mxu1 %vm686_vm2, %v11457_v60  ;;  %v11482_v60 = vld [vmem:[%s10376_s19 + $0x1e9] sm:$0xff] }
 0x1ca   : > { %8689 = vmatprep.mubr.msk.f32.mxu1 %vm10255_vm1, %v13579_v1  ;;  %13600 = vst [vmem:[#allocation20_spill] sm:$0xff] %v11482_v60 }
 0x1cc   : > { %9096 = vmatmul.mubr.msk.f32.gmra.mrb[112].mxu0 %vm686_vm2, %v11350_v53 }
 0x1cd   : > { %9098 = vmatprep.mubr.msk.f32.mxu0 %vm10255_vm1, %v13579_v1  ;;  %8690 = vmatmul.mubr.msk.f32.gmra.mrb[120].mxu1 %vm686_vm2, %v11471_v58  ;;  %v11493_v58 = vld [vmem:[%s10376_s19 + $0x1f1] sm:$0xff] }
 0x1ce   : > { %8692 = vmatprep.mubr.msk.f32.mxu1 %vm10255_vm1, %v13579_v1  ;;  %13601 = vst [vmem:[#allocation21_spill] sm:$0xff] %v11493_v58 }
 0x1d0   : > { %9099 = vmatmul.mubr.msk.f32.gmra.mrb[114].mxu0 %vm686_vm2, %v11364_v55 }
 0x1d1   : > { %9101 = vmatprep.mubr.msk.f32.mxu0 %vm10255_vm1, %v13579_v1  ;;  %8693 = vmatmul.mubr.msk.f32.gmra.mrb[122].mxu1 %vm686_vm2, %v11482_v60  ;;  %v11504_v60 = vld [vmem:[%s10376_s19 + $0x1f9] sm:$0xff] }
 0x1d2   : > { %8695 = vmatprep.mubr.msk.f32.mxu1 %vm10255_vm1, %v13579_v1 }
 0x1d4   : > { %9102 = vmatmul.mubr.msk.f32.gmra.mrb[116].mxu0 %vm686_vm2, %v11378_v57 }
 0x1d5   : > { %9104 = vmatprep.mubr.msk.f32.mxu0 %vm10255_vm1, %v13579_v1  ;;  %8696 = vmatmul.mubr.msk.f32.gmra.mrb[124].mxu1 %vm686_vm2, %v11493_v58  ;;  %v11515_v58 = vld [vmem:[%s10376_s19 + $0x201] sm:$0xff] }
 0x1d6   : > { %8698 = vmatprep.mubr.msk.f32.mxu1 %vm10255_vm1, %v13579_v1 }
 0x1d8   : > { %9105 = vmatmul.mubr.msk.f32.gmra.mrb[118].mxu0 %vm686_vm2, %v11392_v59 }
 0x1d9   : > { %9107 = vmatprep.mubr.msk.f32.mxu0 %vm10255_vm1, %v13579_v1  ;;  %8699 = vmatmul.mubr.msk.f32.gmra.mrb[126].mxu1 %vm686_vm2, %v11504_v60 }
 0x1da   : > { %8701 = vmatprep.mubr.msk.f32.mxu1 %vm10255_vm1, %v13579_v1 }
 0x1dc   : > { %9108 = vmatmul.mubr.msk.f32.gmra.mrb[120].mxu0 %vm686_vm2, %v11406_v56 }
 0x1dd   : > { %9110 = vmatprep.mubr.msk.f32.mxu0 %vm10255_vm1, %v13579_v1  ;;  %8702 = vmatmul.mubr.msk.f32.gmra.mrb[128].mxu1 %vm686_vm2, %v11515_v58 }
 0x1de   : > { %8704 = vmatprep.mubr.msk.f32.mxu1 %vm10255_vm1, %v13579_v1 }
 0x1e0   : > { %9111 = vmatmul.mubr.msk.f32.gmra.mrb[122].mxu0 %vm686_vm2, %v11420_v54 }
 0x1e1   : > { %9113 = vmatprep.mubr.msk.f32.mxu0 %vm10255_vm1, %v13579_v1 }
 0x1e4   : > { %9114 = vmatmul.mubr.msk.f32.gmra.mrb[124].mxu0 %vm686_vm2, %v11434_v52 }
 0x1e5   : > { %9116 = vmatprep.mubr.msk.f32.mxu0 %vm10255_vm1, %v13579_v1 }
 0x1e8   : > { %9117 = vmatmul.mubr.msk.f32.gmra.mrb[126].mxu0 %vm686_vm2, %v11448_v50 }
 0x1e9   : > { %9119 = vmatprep.mubr.msk.f32.mxu0 %vm10255_vm1, %v13579_v1 }
 0x1ec   : > { %9120 = vmatmul.mubr.msk.f32.gmra.mrb[128].mxu0 %vm686_vm2, %v11462_v48 }
 0x1ed   : > { %9122 = vmatprep.mubr.msk.f32.mxu0 %vm10255_vm1, %v13579_v1 }
 0x1f0   : > { %9123 = vmatmul.mubr.msk.f32.gmra.mrb[130].mxu0 %vm686_vm2, %v1993_v46  ;;  %v1995_v46 = vld [vmem:[%s10376_s19 + $0x230] sm:$0xff] }
 0x1f1   : > { %9125 = vmatprep.mubr.msk.f32.mxu0 %vm10255_vm1, %v13579_v1 }
 0x1f4   : > { %9126 = vmatmul.mubr.msk.f32.gmra.mrb[132].mxu0 %vm686_vm2, %v1994_v44  ;;  %v1996_v44 = vld [vmem:[%s10376_s19 + $0x238] sm:$0x7f] }
 0x1f5   : > { %9128 = vmatprep.mubr.msk.f32.mxu0 %vm10255_vm1, %v13579_v1 }
 0x1f8   : > { %9129 = vmatmul.mubr.msk.f32.gmra.mrb[134].mxu0 %vm686_vm2, %v1995_v46  ;;  %v11526_v46 = vld [vmem:[%s10376_s19 + $0x209] sm:$0xff] }
 0x1f9   : > { %9131 = vmatprep.mubr.msk.f32.mxu0 %vm10255_vm1, %v13579_v1  ;;  %8705 = vmatmul.mubr.msk.f32.gmra.mrb[130].mxu1 %vm686_vm2, %v11526_v46 }
 0x1fa   : > { %8707 = vmatprep.mubr.msk.f32.mxu1 %vm10255_vm1, %v13579_v1 }
 0x1fc   : > { %9132 = vmatmul.mubr.msk.f32.gmra.mrb[136].mxu0 %vm686_vm2, %v1996_v44  ;;  %v11537_v44 = vld [vmem:[%s10376_s19 + $0x211] sm:$0xff] }
 0x1fd   : > { %9136 = vmatprep.mubr.msk.f32.mxu0 %vm10255_vm1, %v13579_v1  ;;  %8708 = vmatmul.mubr.msk.f32.gmra.mrb[132].mxu1 %vm686_vm2, %v11537_v44 }
 0x1fe   : > { %8710 = vmatprep.mubr.msk.f32.mxu1 %vm10255_vm1, %v13579_v1 }
 0x200   : > { %9137 = vmatmul.mubr.msk.f32.vlgmr.msra.gmra.mrb[0].mxu0 %vm686_vm2, %v10799_v61  ;;  %v11548_v61 = vld [vmem:[%s10376_s19 + $0x219] sm:$0xff] }
 0x201   : > { %9139 = vmatprep.mubr.msk.f32.mxu0 %vm10255_vm1, %v13579_v1  ;;  %13602 = vst [vmem:[#allocation22_spill] sm:$0xff] %v11548_v61  ;;  %8711 = vmatmul.mubr.msk.f32.gmra.mrb[134].mxu1 %vm686_vm2, %v11548_v61 }
 0x202   : > { %8713 = vmatprep.mubr.msk.f32.mxu1 %vm10255_vm1, %v13579_v1 }
 0x204   : > { %9140 = vmatmul.mubr.msk.f32.gmra.mrb[2].mxu0 %vm686_vm2, %v10810_v62  ;;  %v683_v62 = vld [vmem:[%s10376_s19 + $0x221] sm:$0x7f] }
 0x205   : > { %9142 = vmatprep.mubr.msk.f32.mxu0 %vm10255_vm1, %v13579_v1  ;;  %8714 = vmatmul.mubr.msk.f32.gmra.mrb[136].mxu1 %vm686_vm2, %v683_v62 }
 0x206   : > { %8877 = vmatprep.mubr.msk.f32.mxu1 %vm10255_vm1, %v13579_v1 }
 0x208   : > { %9143 = vmatmul.mubr.msk.f32.gmra.mrb[4].mxu0 %vm686_vm2, %v10821_v63  ;;  %v11566_v63 = vpop.f32.mrb[0].mxu1 }
 0x209   : > { %9145 = vmatprep.mubr.msk.f32.mxu0 %vm10255_vm1, %v13579_v1  ;;  %v8511_v61 = vpop.f32.mrb[1].mxu1  ;;  %8878 = vmatmul.mubr.msk.f32.vlgmr.msra.gmra.mrb[106].mxu1 %vm686_vm2, %v11266_v41 }
 0x20a   : > { %8880 = vmatprep.mubr.msk.f32.mxu1 %vm10255_vm1, %v13579_v1  ;;  %v613_v61 = vld [vmem:[%s10376_s19 + $0x220] sm:$0x7f] }
 0x20c   : > { %9146 = vmatmul.mubr.msk.f32.gmra.mrb[6].mxu0 %vm686_vm2, %v10832_v0  ;;  %v11576_v0 = vpop.f32.mrb[2].mxu1 }
 0x20d   : > { %9148 = vmatprep.mubr.msk.f32.mxu0 %vm10255_vm1, %v13579_v1  ;;  %8881 = vmatmul.mubr.msk.f32.gmra.mrb[108].mxu1 %vm686_vm2, %v11280_v43 }
 0x20e   : > { %8883 = vmatprep.mubr.msk.f32.mxu1 %vm10255_vm1, %v13579_v1 }
 0x210   : > { %9149 = vmatmul.mubr.msk.f32.gmra.mrb[8].mxu0 %vm686_vm2, %v10843_v2  ;;  %v8514_v2 = vpop.f32.mrb[3].mxu1 }
 0x211   : > { %9151 = vmatprep.mubr.msk.f32.mxu0 %vm10255_vm1, %v13579_v1  ;;  %v11586_v41 = vpop.f32.mrb[4].mxu1  ;;  %8884 = vmatmul.mubr.msk.f32.gmra.mrb[110].mxu1 %vm686_vm2, %v11294_v45 }
 0x212   : > { %8886 = vmatprep.mubr.msk.f32.mxu1 %vm10255_vm1, %v13579_v1 }
 0x214   : > { %9152 = vmatmul.mubr.msk.f32.gmra.mrb[10].mxu0 %vm686_vm2, %v10854_v3  ;;  %v8517_v3 = vpop.f32.mrb[5].mxu1 }
 0x215   : > { %9154 = vmatprep.mubr.msk.f32.mxu0 %vm10255_vm1, %v13579_v1  ;;  %v11596_v43 = vpop.f32.mrb[6].mxu1  ;;  %8887 = vmatmul.mubr.msk.f32.gmra.mrb[112].mxu1 %vm686_vm2, %v11308_v47 }
 0x216   : > { %8889 = vmatprep.mubr.msk.f32.mxu1 %vm10255_vm1, %v13579_v1 }
 0x218   : > { %9155 = vmatmul.mubr.msk.f32.gmra.mrb[12].mxu0 %vm686_vm2, %v10865_v4  ;;  %v8520_v4 = vpop.f32.mrb[7].mxu1 }
 0x219   : > { %9157 = vmatprep.mubr.msk.f32.mxu0 %vm10255_vm1, %v13579_v1  ;;  %v11606_v45 = vpop.f32.mrb[8].mxu1  ;;  %8890 = vmatmul.mubr.msk.f32.gmra.mrb[114].mxu1 %vm686_vm2, %v11322_v49 }
 0x21a   : > { %8892 = vmatprep.mubr.msk.f32.mxu1 %vm10255_vm1, %v13579_v1 }
 0x21c   : > { %9158 = vmatmul.mubr.msk.f32.gmra.mrb[14].mxu0 %vm686_vm2, %v10876_v5  ;;  %v8523_v5 = vpop.f32.mrb[9].mxu1 }
 0x21d   : > { %9160 = vmatprep.mubr.msk.f32.mxu0 %vm10255_vm1, %v13579_v1  ;;  %v11616_v47 = vpop.f32.mrb[10].mxu1  ;;  %8893 = vmatmul.mubr.msk.f32.gmra.mrb[116].mxu1 %vm686_vm2, %v11336_v51 }
 0x21e   : > { %8895 = vmatprep.mubr.msk.f32.mxu1 %vm10255_vm1, %v13579_v1 }
 0x220   : > { %9161 = vmatmul.mubr.msk.f32.gmra.mrb[16].mxu0 %vm686_vm2, %v10887_v6  ;;  %v8526_v6 = vpop.f32.mrb[11].mxu1 }
 0x221   : > { %9163 = vmatprep.mubr.msk.f32.mxu0 %vm10255_vm1, %v13579_v1  ;;  %v11626_v49 = vpop.f32.mrb[12].mxu1  ;;  %8896 = vmatmul.mubr.msk.f32.gmra.mrb[118].mxu1 %vm686_vm2, %v11350_v53 }
 0x222   : > { %8898 = vmatprep.mubr.msk.f32.mxu1 %vm10255_vm1, %v13579_v1 }
 0x224   : > { %9164 = vmatmul.mubr.msk.f32.gmra.mrb[18].mxu0 %vm686_vm2, %v10898_v7  ;;  %v8529_v7 = vpop.f32.mrb[13].mxu1 }
 0x225   : > { %9166 = vmatprep.mubr.msk.f32.mxu0 %vm10255_vm1, %v13579_v1  ;;  %v11636_v51 = vpop.f32.mrb[14].mxu1  ;;  %8899 = vmatmul.mubr.msk.f32.gmra.mrb[120].mxu1 %vm686_vm2, %v11364_v55 }
 0x226   : > { %8901 = vmatprep.mubr.msk.f32.mxu1 %vm10255_vm1, %v13579_v1 }
 0x228   : > { %9167 = vmatmul.mubr.msk.f32.gmra.mrb[20].mxu0 %vm686_vm2, %v10909_v8  ;;  %v8532_v8 = vpop.f32.mrb[15].mxu1 }
 0x229   : > { %9169 = vmatprep.mubr.msk.f32.mxu0 %vm10255_vm1, %v13579_v1  ;;  %v11646_v53 = vpop.f32.mrb[16].mxu1  ;;  %8902 = vmatmul.mubr.msk.f32.gmra.mrb[122].mxu1 %vm686_vm2, %v11378_v57 }
 0x22a   : > { %8904 = vmatprep.mubr.msk.f32.mxu1 %vm10255_vm1, %v13579_v1 }
 0x22c   : > { %9170 = vmatmul.mubr.msk.f32.gmra.mrb[22].mxu0 %vm686_vm2, %v10920_v9  ;;  %v8535_v9 = vpop.f32.mrb[17].mxu1 }
 0x22d   : > { %9172 = vmatprep.mubr.msk.f32.mxu0 %vm10255_vm1, %v13579_v1  ;;  %v11656_v55 = vpop.f32.mrb[18].mxu1  ;;  %8905 = vmatmul.mubr.msk.f32.gmra.mrb[124].mxu1 %vm686_vm2, %v11392_v59 }
 0x22e   : > { %8907 = vmatprep.mubr.msk.f32.mxu1 %vm10255_vm1, %v13579_v1 }
 0x230   : > { %9173 = vmatmul.mubr.msk.f32.gmra.mrb[24].mxu0 %vm686_vm2, %v10931_v10  ;;  %v8538_v10 = vpop.f32.mrb[19].mxu1 }
 0x231   : > { %9175 = vmatprep.mubr.msk.f32.mxu0 %vm10255_vm1, %v13579_v1  ;;  %v11666_v57 = vpop.f32.mrb[20].mxu1  ;;  %8908 = vmatmul.mubr.msk.f32.gmra.mrb[126].mxu1 %vm686_vm2, %v11406_v56 }
 0x232   : > { %8910 = vmatprep.mubr.msk.f32.mxu1 %vm10255_vm1, %v13579_v1 }
 0x234   : > { %9176 = vmatmul.mubr.msk.f32.gmra.mrb[26].mxu0 %vm686_vm2, %v10942_v11  ;;  %v8541_v11 = vpop.f32.mrb[21].mxu1 }
 0x235   : > { %9178 = vmatprep.mubr.msk.f32.mxu0 %vm10255_vm1, %v13579_v1  ;;  %v11676_v59 = vpop.f32.mrb[22].mxu1  ;;  %8911 = vmatmul.mubr.msk.f32.gmra.mrb[128].mxu1 %vm686_vm2, %v11420_v54 }
 0x236   : > { %8913 = vmatprep.mubr.msk.f32.mxu1 %vm10255_vm1, %v13579_v1 }
 0x238   : > { %9179 = vmatmul.mubr.msk.f32.gmra.mrb[28].mxu0 %vm686_vm2, %v10953_v12  ;;  %v8544_v12 = vpop.f32.mrb[23].mxu1 }
 0x239   : > { %9181 = vmatprep.mubr.msk.f32.mxu0 %vm10255_vm1, %v13579_v1  ;;  %v11686_v56 = vpop.f32.mrb[24].mxu1  ;;  %8914 = vmatmul.mubr.msk.f32.gmra.mrb[130].mxu1 %vm686_vm2, %v11434_v52 }
 0x23a   : > { %8916 = vmatprep.mubr.msk.f32.mxu1 %vm10255_vm1, %v13579_v1 }
 0x23c   : > { %9182 = vmatmul.mubr.msk.f32.gmra.mrb[30].mxu0 %vm686_vm2, %v10964_v13  ;;  %v8547_v13 = vpop.f32.mrb[25].mxu1 }
 0x23d   : > { %9184 = vmatprep.mubr.msk.f32.mxu0 %vm10255_vm1, %v13579_v1  ;;  %v11696_v54 = vpop.f32.mrb[26].mxu1  ;;  %8917 = vmatmul.mubr.msk.f32.gmra.mrb[132].mxu1 %vm686_vm2, %v11448_v50 }
 0x23e   : > { %8919 = vmatprep.mubr.msk.f32.mxu1 %vm10255_vm1, %v13579_v1 }
 0x240   : > { %9185 = vmatmul.mubr.msk.f32.gmra.mrb[32].mxu0 %vm686_vm2, %v10975_v14  ;;  %v8550_v14 = vpop.f32.mrb[27].mxu1 }
 0x241   : > { %9187 = vmatprep.mubr.msk.f32.mxu0 %vm10255_vm1, %v13579_v1  ;;  %v11706_v52 = vpop.f32.mrb[28].mxu1  ;;  %8920 = vmatmul.mubr.msk.f32.gmra.mrb[134].mxu1 %vm686_vm2, %v11462_v48 }
 0x242   : > { %8922 = vmatprep.mubr.msk.f32.mxu1 %vm10255_vm1, %v13579_v1 }
 0x244   : > { %9188 = vmatmul.mubr.msk.f32.gmra.mrb[34].mxu0 %vm686_vm2, %v10986_v15  ;;  %v8553_v15 = vpop.f32.mrb[29].mxu1 }
 0x245   : > { %9190 = vmatprep.mubr.msk.f32.mxu0 %vm10255_vm1, %v13579_v1  ;;  %v11716_v50 = vpop.f32.mrb[30].mxu1  ;;  %8923 = vmatmul.mubr.msk.f32.gmra.mrb[136].mxu1 %vm686_vm2, %v613_v61 }
 0x248   : > { %9191 = vmatmul.mubr.msk.f32.gmra.mrb[36].mxu0 %vm686_vm2, %v10997_v16  ;;  %v8556_v16 = vpop.f32.mrb[31].mxu1 }
 0x249   : > { %9193 = vmatprep.mubr.msk.f32.mxu0 %vm10255_vm1, %v13579_v1  ;;  %v11724_v62 = vpop.f32.mrb[32].mxu1 }
 0x24a   : > { %v8559_v48 = vpop.f32.mrb[33].mxu1 }
 0x24c   : > { %9194 = vmatmul.mubr.msk.f32.gmra.mrb[38].mxu0 %vm686_vm2, %v11008_v17  ;;  %v11732_v17 = vpop.f32.mrb[34].mxu1 }
 0x24d   : > { %9196 = vmatprep.mubr.msk.f32.mxu0 %vm10255_vm1, %v13579_v1  ;;  %v8562_v2 = vpop.f32.mrb[35].mxu1 }
 0x250   : > { %9197 = vmatmul.mubr.msk.f32.gmra.mrb[40].mxu0 %vm686_vm2, %v11019_v18  ;;  %v11738_v18 = vpop.f32.mrb[36].mxu1 }
 0x251   : > { %9199 = vmatprep.mubr.msk.f32.mxu0 %vm10255_vm1, %v13579_v1  ;;  %v8565_v3 = vpop.f32.mrb[37].mxu1 }
 0x254   : > { %9200 = vmatmul.mubr.msk.f32.gmra.mrb[42].mxu0 %vm686_vm2, %v11030_v19  ;;  %v11744_v19 = vpop.f32.mrb[38].mxu1 }
 0x255   : > { %9202 = vmatprep.mubr.msk.f32.mxu0 %vm10255_vm1, %v13579_v1  ;;  %v8568_v4 = vpop.f32.mrb[39].mxu1 }
 0x258   : > { %9203 = vmatmul.mubr.msk.f32.gmra.mrb[44].mxu0 %vm686_vm2, %v11041_v20  ;;  %v11750_v20 = vpop.f32.mrb[40].mxu1 }
 0x259   : > { %9205 = vmatprep.mubr.msk.f32.mxu0 %vm10255_vm1, %v13579_v1  ;;  %v8571_v5 = vpop.f32.mrb[41].mxu1 }
 0x25c   : > { %9206 = vmatmul.mubr.msk.f32.gmra.mrb[46].mxu0 %vm686_vm2, %v11052_v21  ;;  %v11756_v21 = vpop.f32.mrb[42].mxu1 }
 0x25d   : > { %9208 = vmatprep.mubr.msk.f32.mxu0 %vm10255_vm1, %v13579_v1  ;;  %v8574_v6 = vpop.f32.mrb[43].mxu1 }
 0x260   : > { %9209 = vmatmul.mubr.msk.f32.gmra.mrb[48].mxu0 %vm686_vm2, %v11063_v22  ;;  %v11762_v22 = vpop.f32.mrb[44].mxu1 }
 0x261   : > { %9211 = vmatprep.mubr.msk.f32.mxu0 %vm10255_vm1, %v13579_v1  ;;  %v8577_v7 = vpop.f32.mrb[45].mxu1 }
 0x264   : > { %9212 = vmatmul.mubr.msk.f32.gmra.mrb[50].mxu0 %vm686_vm2, %v11074_v23  ;;  %v11768_v23 = vpop.f32.mrb[46].mxu1 }
 0x265   : > { %9214 = vmatprep.mubr.msk.f32.mxu0 %vm10255_vm1, %v13579_v1  ;;  %v8580_v8 = vpop.f32.mrb[47].mxu1 }
 0x266   : > { %v13603_v8 = vld [vmem:[#allocation6_spill] sm:$0xff] }
 0x268   : > { %9215 = vmatmul.mubr.msk.f32.gmra.mrb[52].mxu0 %vm686_vm2, %v11085_v24  ;;  %v11774_v24 = vpop.f32.mrb[48].mxu1 }
 0x269   : > { %9217 = vmatprep.mubr.msk.f32.mxu0 %vm10255_vm1, %v13579_v1  ;;  %v8583_v9 = vpop.f32.mrb[49].mxu1 }
 0x26c   : > { %9218 = vmatmul.mubr.msk.f32.gmra.mrb[54].mxu0 %vm686_vm2, %v11096_v25  ;;  %v11780_v25 = vpop.f32.mrb[50].mxu1 }
 0x26d   : > { %9220 = vmatprep.mubr.msk.f32.mxu0 %vm10255_vm1, %v13579_v1  ;;  %v8586_v10 = vpop.f32.mrb[51].mxu1 }
 0x26e   : > { %v13604_v10 = vld [vmem:[#allocation7_spill] sm:$0xff] }
 0x270   : > { %9221 = vmatmul.mubr.msk.f32.gmra.mrb[56].mxu0 %vm686_vm2, %v11107_v26  ;;  %v11786_v26 = vpop.f32.mrb[52].mxu1 }
 0x271   : > { %9223 = vmatprep.mubr.msk.f32.mxu0 %vm10255_vm1, %v13579_v1  ;;  %v8589_v11 = vpop.f32.mrb[53].mxu1 }
 0x274   : > { %9224 = vmatmul.mubr.msk.f32.gmra.mrb[58].mxu0 %vm686_vm2, %v11118_v27  ;;  %v11792_v27 = vpop.f32.mrb[54].mxu1 }
 0x275   : > { %9226 = vmatprep.mubr.msk.f32.mxu0 %vm10255_vm1, %v13579_v1  ;;  %v8592_v12 = vpop.f32.mrb[55].mxu1 }
 0x276   : > { %v13605_v12 = vld [vmem:[#allocation8_spill] sm:$0xff] }
 0x278   : > { %9227 = vmatmul.mubr.msk.f32.gmra.mrb[60].mxu0 %vm686_vm2, %v11129_v28  ;;  %v11798_v28 = vpop.f32.mrb[56].mxu1 }
 0x279   : > { %9229 = vmatprep.mubr.msk.f32.mxu0 %vm10255_vm1, %v13579_v1  ;;  %v8595_v13 = vpop.f32.mrb[57].mxu1 }
 0x27c   : > { %9230 = vmatmul.mubr.msk.f32.gmra.mrb[62].mxu0 %vm686_vm2, %v11140_v29  ;;  %v11804_v29 = vpop.f32.mrb[58].mxu1 }
 0x27d   : > { %9232 = vmatprep.mubr.msk.f32.mxu0 %vm10255_vm1, %v13579_v1  ;;  %v8598_v14 = vpop.f32.mrb[59].mxu1 }
 0x280   : > { %9233 = vmatmul.mubr.msk.f32.gmra.mrb[64].mxu0 %vm686_vm2, %v11151_v30  ;;  %v11810_v30 = vpop.f32.mrb[60].mxu1 }
 0x281   : > { %9235 = vmatprep.mubr.msk.f32.mxu0 %vm10255_vm1, %v13579_v1  ;;  %v8601_v15 = vpop.f32.mrb[61].mxu1 }
 0x282   : > { %v13606_v15 = vld [vmem:[#allocation9_spill] sm:$0xff] }
 0x284   : > { %9236 = vmatmul.mubr.msk.f32.gmra.mrb[66].mxu0 %vm686_vm2, %v11162_v31  ;;  %v11816_v31 = vpop.f32.mrb[62].mxu1 }
 0x285   : > { %9238 = vmatprep.mubr.msk.f32.mxu0 %vm10255_vm1, %v13579_v1  ;;  %v8604_v61 = vpop.f32.mrb[63].mxu1 }
 0x288   : > { %9239 = vmatmul.mubr.msk.f32.gmra.mrb[68].mxu0 %vm686_vm2, %v11173_v32  ;;  %v11822_v32 = vpop.f32.mrb[64].mxu1 }
 0x289   : > { %9241 = vmatprep.mubr.msk.f32.mxu0 %vm10255_vm1, %v13579_v1  ;;  %v8607_v16 = vpop.f32.mrb[65].mxu1 }
 0x28c   : > { %9242 = vmatmul.mubr.msk.f32.gmra.mrb[70].mxu0 %vm686_vm2, %v11184_v33  ;;  %v11828_v33 = vpop.f32.mrb[66].mxu1 }
 0x28d   : > { %9244 = vmatprep.mubr.msk.f32.mxu0 %vm10255_vm1, %v13579_v1  ;;  %v8610_v48 = vpop.f32.mrb[67].mxu1 }
 0x28e   : > { %v13607_v48 = vld [vmem:[#allocation10_spill] sm:$0xff] }
 0x290   : > { %9245 = vmatmul.mubr.msk.f32.gmra.mrb[72].mxu0 %vm686_vm2, %v11195_v34  ;;  %v11834_v34 = vpop.f32.mrb[68].mxu1 }
 0x291   : > { %9247 = vmatprep.mubr.msk.f32.mxu0 %vm10255_vm1, %v13579_v1  ;;  %v8613_v2 = vpop.f32.mrb[69].mxu1 }
 0x294   : > { %9248 = vmatmul.mubr.msk.f32.gmra.mrb[74].mxu0 %vm686_vm2, %v11206_v35  ;;  %v11840_v35 = vpop.f32.mrb[70].mxu1 }
 0x295   : > { %9250 = vmatprep.mubr.msk.f32.mxu0 %vm10255_vm1, %v13579_v1  ;;  %v8616_v3 = vpop.f32.mrb[71].mxu1 }
 0x298   : > { %9251 = vmatmul.mubr.msk.f32.gmra.mrb[76].mxu0 %vm686_vm2, %v11217_v36  ;;  %v11846_v36 = vpop.f32.mrb[72].mxu1 }
 0x299   : > { %9253 = vmatprep.mubr.msk.f32.mxu0 %vm10255_vm1, %v13579_v1  ;;  %v8619_v4 = vpop.f32.mrb[73].mxu1 }
 0x29a   : > { %v13608_v4 = vld [vmem:[#allocation11_spill] sm:$0xff] }
 0x29c   : > { %9254 = vmatmul.mubr.msk.f32.gmra.mrb[78].mxu0 %vm686_vm2, %v11228_v37  ;;  %v11852_v37 = vpop.f32.mrb[74].mxu1 }
 0x29d   : > { %9256 = vmatprep.mubr.msk.f32.mxu0 %vm10255_vm1, %v13579_v1  ;;  %v8622_v5 = vpop.f32.mrb[75].mxu1 }
 0x2a0   : > { %9257 = vmatmul.mubr.msk.f32.gmra.mrb[80].mxu0 %vm686_vm2, %v11239_v38  ;;  %v11858_v38 = vpop.f32.mrb[76].mxu1 }
 0x2a1   : > { %9259 = vmatprep.mubr.msk.f32.mxu0 %vm10255_vm1, %v13579_v1  ;;  %v8625_v6 = vpop.f32.mrb[77].mxu1 }
 0x2a4   : > { %9260 = vmatmul.mubr.msk.f32.gmra.mrb[82].mxu0 %vm686_vm2, %v11250_v39  ;;  %v11864_v39 = vpop.f32.mrb[78].mxu1 }
 0x2a5   : > { %9262 = vmatprep.mubr.msk.f32.mxu0 %vm10255_vm1, %v13579_v1  ;;  %v8628_v7 = vpop.f32.mrb[79].mxu1 }
 0x2a6   : > { %v13609_v7 = vld [vmem:[#allocation12_spill] sm:$0xff] }
 0x2a8   : > { %9263 = vmatmul.mubr.msk.f32.gmra.mrb[84].mxu0 %vm686_vm2, %v11261_v40  ;;  %v11870_v40 = vpop.f32.mrb[80].mxu1 }
 0x2a9   : > { %9265 = vmatprep.mubr.msk.f32.mxu0 %vm10255_vm1, %v13579_v1  ;;  %v8631_v9 = vpop.f32.mrb[81].mxu1 }
 0x2ac   : > { %9266 = vmatmul.mubr.msk.f32.gmra.mrb[86].mxu0 %vm686_vm2, %v11275_v42  ;;  %v11876_v42 = vpop.f32.mrb[82].mxu1 }
 0x2ad   : > { %9268 = vmatprep.mubr.msk.f32.mxu0 %vm10255_vm1, %v13579_v1  ;;  %v8634_v11 = vpop.f32.mrb[83].mxu1 }
 0x2ae   : > { %v11882_v13 = vpop.f32.mrb[84].mxu1 }
 0x2af   : > { %v8637_v14 = vpop.f32.mrb[85].mxu1 }
 0x2b0   : > { %9269 = vmatmul.mubr.msk.f32.gmra.mrb[88].mxu0 %vm686_vm2, %v13603_v8  ;;  %v11888_v61 = vpop.f32.mrb[86].mxu1  ;;  %v13613_v14 = vld [vmem:[#allocation14_spill] sm:$0xff] }
 0x2b1   : > { %9271 = vmatprep.mubr.msk.f32.mxu0 %vm10255_vm1, %v13579_v1  ;;  %v8640_v16 = vpop.f32.mrb[87].mxu1 }
 0x2b2   : > { %v11894_v2 = vpop.f32.mrb[88].mxu1 }
 0x2b3   : > { %v8643_v3 = vpop.f32.mrb[89].mxu1 }
 0x2b4   : > { %9272 = vmatmul.mubr.msk.f32.gmra.mrb[90].mxu0 %vm686_vm2, %v13604_v10  ;;  %v11900_v5 = vpop.f32.mrb[90].mxu1  ;;  %v13611_v10 = vld [vmem:[#allocation13_spill] sm:$0xff] }
 0x2b5   : > { %9274 = vmatprep.mubr.msk.f32.mxu0 %vm10255_vm1, %v13579_v1  ;;  %v8646_v6 = vpop.f32.mrb[91].mxu1 }
 0x2b6   : > { %v11906_v8 = vpop.f32.mrb[92].mxu1 }
 0x2b7   : > { %13610 = vst [vmem:[#allocation6_spill] sm:$0xff] %v11906_v8  ;;  %v8649_v9 = vpop.f32.mrb[93].mxu1 }
 0x2b8   : > { %9275 = vmatmul.mubr.msk.f32.gmra.mrb[92].mxu0 %vm686_vm2, %v13605_v12  ;;  %v11912_v11 = vpop.f32.mrb[94].mxu1  ;;  %v11931_v9 = vld [vmem:[%s13546_s3] ss:$0 sm:$0xff] }
 0x2b9   : > { %9277 = vmatprep.mubr.msk.f32.mxu0 %vm10255_vm1, %v13579_v1  ;;  %13612 = vst [vmem:[#allocation7_spill] sm:$0xff] %v11912_v11  ;;  %v8652_v12 = vpop.f32.mrb[95].mxu1 }
 0x2bc   : > { %9278 = vmatmul.mubr.msk.f32.gmra.mrb[94].mxu0 %vm686_vm2, %v13606_v15  ;;  %v11918_v15 = vpop.f32.mrb[96].mxu1 }
 0x2bd   : > { %9280 = vmatprep.mubr.msk.f32.mxu0 %vm10255_vm1, %v13579_v1  ;;  %13614 = vst [vmem:[#allocation8_spill] sm:$0xff] %v11918_v15  ;;  %v8655_v3 = vpop.f32.mrb[97].mxu1 }
 0x2be   : > { %v11936_v12 = vpop.f32.mrb[98].mxu1 }
 0x2bf   : > { %13616 = vst [vmem:[#allocation9_spill] sm:$0xff] %v11936_v12  ;;  %v8658_v3 = vpop.f32.mrb[99].mxu1 }
 0x2c0   : > { %9281 = vmatmul.mubr.msk.f32.gmra.mrb[96].mxu0 %vm686_vm2, %v13607_v48  ;;  %v11923_v48 = vld [vmem:[%s13545_s2] ss:$0 sm:$0xff]  ;;  %v11945_v8 = vpop.f32.mrb[100].mxu1  ;;  %v13618_v3 = vld [vmem:[#allocation17_spill] sm:$0xff] }
 0x2c1   : > { %9283 = vmatprep.mubr.msk.f32.mxu0 %vm10255_vm1, %v13579_v1  ;;  %v8661_v12 = vpop.f32.mrb[101].mxu1 }
 0x2c4   : > { %9284 = vmatmul.mubr.msk.f32.gmra.mrb[98].mxu0 %vm686_vm2, %v13608_v4 }
 0x2c5   : > { %9286 = vmatprep.mubr.msk.f32.mxu0 %vm10255_vm1, %v13579_v1 }
 0x2c8   : > { %9287 = vmatmul.mubr.msk.f32.gmra.mrb[100].mxu0 %vm686_vm2, %v13609_v7  ;;  %v13615_v7 = vld [vmem:[#allocation15_spill] sm:$0xff] }
 0x2c9   : > { %9289 = vmatprep.mubr.msk.f32.mxu0 %vm10255_vm1, %v13579_v1 }
 0x2cc   : > { %9290 = vmatmul.mubr.msk.f32.gmra.mrb[102].mxu0 %vm686_vm2, %v13611_v10 }
 0x2cd   : > { %9292 = vmatprep.mubr.msk.f32.mxu0 %vm10255_vm1, %v13579_v1 }
 0x2d0   : > { %9293 = vmatmul.mubr.msk.f32.gmra.mrb[104].mxu0 %vm686_vm2, %v13613_v14 }
 0x2d1   : > { %9295 = vmatprep.mubr.msk.f32.mxu0 %vm10255_vm1, %v13579_v1 }
 0x2d3   : > { %v3035_v16 = vpop.f32.mrb[0].mxu0 }
 0x2d4   : > { %v9814_v4 = vadd.f32 %v3035_v16, %v11566_v63  ;;  %v9138_v6 = vpop.f32.mrb[1].mxu0  ;;  %9296 = vmatmul.mubr.msk.f32.gmra.mrb[106].mxu0 %vm686_vm2, %v13615_v7  ;;  %v13617_v7 = vld [vmem:[#allocation16_spill] sm:$0xff] }
 0x2d5   : > { %9298 = vmatprep.mubr.msk.f32.mxu0 %vm10255_vm1, %v13579_v1 }
 0x2d6   : > { %v3455_v10 = vmul.f32 %v9814_v4, %v11923_v48 }
 0x2d7   : > { %v3040_v14 = vpop.f32.mrb[2].mxu0 }
 0x2d8   : > { %v3531_v63 = vadd.f32 %v11931_v9, %v3455_v10  ;;  %v9815_v16 = vadd.f32 %v3040_v14, %v11576_v0  ;;  %v9141_v6 = vpop.f32.mrb[3].mxu0  ;;  %9299 = vmatmul.mubr.msk.f32.gmra.mrb[108].mxu0 %vm686_vm2, %v13617_v7 }
 0x2d9   : > { %9301 = vmatprep.mubr.msk.f32.mxu0 %vm10255_vm1, %v13579_v1  ;;  %v11955_v6 = vpop.f32.mrb[102].mxu1 }
 0x2da   : > { %v3600_v15 = vmax.f32 %v3531_v63, 0.0  ;;  %v3456_v11 = vmul.f32 %v9815_v16, %v11923_v48  ;;  %v8664_v12 = vpop.f32.mrb[103].mxu1 }
 0x2db   : > { %v3045_v4 = vpop.f32.mrb[4].mxu0 }
 0x2dc   : > { %3669 = vst.msk [vmem:[#allocation2] sm:$0xff] %vm686_vm2, %v3600_v15  ;;  %v3532_v10 = vadd.f32 %v11931_v9, %v3456_v11  ;;  %v9816_v0 = vadd.f32 %v3045_v4, %v11586_v41  ;;  %v9144_v14 = vpop.f32.mrb[5].mxu0  ;;  %9302 = vmatmul.mubr.msk.f32.gmra.mrb[110].mxu0 %vm686_vm2, %v13618_v3  ;;  %v13619_v4 = vld [vmem:[#allocation18_spill] sm:$0xff] }
 0x2dd   : > { %9304 = vmatprep.mubr.msk.f32.mxu0 %vm10255_vm1, %v13579_v1  ;;  %v11965_v14 = vpop.f32.mrb[104].mxu1 }
 0x2de   : > { %v3601_v63 = vmax.f32 %v3532_v10, 0.0  ;;  %v3457_v16 = vmul.f32 %v9816_v0, %v11923_v48  ;;  %v8667_v12 = vpop.f32.mrb[105].mxu1 }
 0x2df   : > { %v3050_v7 = vpop.f32.mrb[6].mxu0 }
 0x2e0   : > { %3670 = vst.msk [vmem:[#allocation2 + $0x8] sm:$0xff] %vm686_vm2, %v3601_v63  ;;  %v3533_v11 = vadd.f32 %v11931_v9, %v3457_v16  ;;  %v9817_v41 = vadd.f32 %v3050_v7, %v11596_v43  ;;  %v9147_v15 = vpop.f32.mrb[7].mxu0  ;;  %9305 = vmatmul.mubr.msk.f32.gmra.mrb[112].mxu0 %vm686_vm2, %v13619_v4  ;;  %v13620_v7 = vld [vmem:[#allocation19_spill] sm:$0xff] }
 0x2e1   : > { %9307 = vmatprep.mubr.msk.f32.mxu0 %vm10255_vm1, %v13579_v1  ;;  %v11975_v15 = vpop.f32.mrb[106].mxu1 }
 0x2e2   : > { %v3602_v10 = vmax.f32 %v3533_v11, 0.0  ;;  %v3458_v0 = vmul.f32 %v9817_v41, %v11923_v48  ;;  %v8879_v12 = vpop.f32.mrb[107].mxu1 }
 0x2e3   : > { %v3055_v3 = vpop.f32.mrb[8].mxu0 }
 0x2e4   : > { %3671 = vst.msk [vmem:[#allocation2 + $0x10] sm:$0xff] %vm686_vm2, %v3602_v10  ;;  %v3534_v63 = vadd.f32 %v11931_v9, %v3458_v0  ;;  %v9818_v43 = vadd.f32 %v3055_v3, %v11606_v45  ;;  %v9150_v16 = vpop.f32.mrb[9].mxu0  ;;  %9308 = vmatmul.mubr.msk.f32.gmra.mrb[114].mxu0 %vm686_vm2, %v13620_v7  ;;  %v13621_v3 = vld [vmem:[#allocation20_spill] sm:$0xff] }
 0x2e5   : > { %9310 = vmatprep.mubr.msk.f32.mxu0 %vm10255_vm1, %v13579_v1  ;;  %v11985_v16 = vpop.f32.mrb[108].mxu1 }
 0x2e6   : > { %v3603_v11 = vmax.f32 %v3534_v63, 0.0  ;;  %v3459_v41 = vmul.f32 %v9818_v43, %v11923_v48  ;;  %13622 = vst [vmem:[#allocation10_spill] sm:$0xff] %v11985_v16  ;;  %v8882_v12 = vpop.f32.mrb[109].mxu1 }
 0x2e7   : > { %v3060_v4 = vpop.f32.mrb[10].mxu0 }
 0x2e8   : > { %3672 = vst.msk [vmem:[#allocation2 + $0x18] sm:$0xff] %vm686_vm2, %v3603_v11  ;;  %v3535_v10 = vadd.f32 %v11931_v9, %v3459_v41  ;;  %v9819_v45 = vadd.f32 %v3060_v4, %v11616_v47  ;;  %v9153_v0 = vpop.f32.mrb[11].mxu0  ;;  %9311 = vmatmul.mubr.msk.f32.gmra.mrb[116].mxu0 %vm686_vm2, %v13621_v3  ;;  %v13623_v4 = vld [vmem:[#allocation21_spill] sm:$0xff] }
 0x2e9   : > { %9313 = vmatprep.mubr.msk.f32.mxu0 %vm10255_vm1, %v13579_v1  ;;  %v11995_v0 = vpop.f32.mrb[110].mxu1 }
 0x2ea   : > { %v3604_v63 = vmax.f32 %v3535_v10, 0.0  ;;  %v3460_v43 = vmul.f32 %v9819_v45, %v11923_v48  ;;  %13624 = vst [vmem:[#allocation11_spill] sm:$0xff] %v11995_v0  ;;  %v8885_v12 = vpop.f32.mrb[111].mxu1 }
 0x2eb   : > { %v3065_v7 = vpop.f32.mrb[12].mxu0 }
 0x2ec   : > { %3673 = vst.msk [vmem:[#allocation2 + $0x20] sm:$0xff] %vm686_vm2, %v3604_v63  ;;  %v3536_v11 = vadd.f32 %v11931_v9, %v3460_v43  ;;  %v9820_v47 = vadd.f32 %v3065_v7, %v11626_v49  ;;  %v9156_v41 = vpop.f32.mrb[13].mxu0  ;;  %9314 = vmatmul.mubr.msk.f32.gmra.mrb[118].mxu0 %vm686_vm2, %v13623_v4 }
 0x2ed   : > { %9316 = vmatprep.mubr.msk.f32.mxu0 %vm10255_vm1, %v13579_v1 }
 0x2ee   : > { %v3605_v10 = vmax.f32 %v3536_v11, 0.0  ;;  %v3461_v45 = vmul.f32 %v9820_v47, %v11923_v48  ;;  %v12005_v47 = vpop.f32.mrb[112].mxu1 }
 0x2ef   : > { %v3070_v3 = vpop.f32.mrb[14].mxu0  ;;  %13625 = vst [vmem:[#allocation12_spill] sm:$0xff] %v12005_v47  ;;  %v8888_v4 = vpop.f32.mrb[113].mxu1 }
 0x2f0   : > { %3674 = vst.msk [vmem:[#allocation2 + $0x28] sm:$0xff] %vm686_vm2, %v3605_v10  ;;  %v3537_v63 = vadd.f32 %v11931_v9, %v3461_v45  ;;  %v9821_v49 = vadd.f32 %v3070_v3, %v11636_v51  ;;  %v9159_v43 = vpop.f32.mrb[15].mxu0  ;;  %9317 = vmatmul.mubr.msk.f32.gmra.mrb[120].mxu0 %vm686_vm2, %v11504_v60  ;;  %v12015_v12 = vpop.f32.mrb[114].mxu1 }
 0x2f1   : > { %9319 = vmatprep.mubr.msk.f32.mxu0 %vm10255_vm1, %v13579_v1  ;;  %13626 = vst [vmem:[#allocation13_spill] sm:$0xff] %v12015_v12 }
 0x2f2   : > { %v3606_v7 = vmax.f32 %v3537_v63, 0.0  ;;  %v3462_v11 = vmul.f32 %v9821_v49, %v11923_v48  ;;  %v8891_v49 = vpop.f32.mrb[115].mxu1 }
 0x2f3   : > { %v3075_v41 = vpop.f32.mrb[16].mxu0 }
 0x2f4   : > { %3675 = vst.msk [vmem:[#allocation2 + $0x30] sm:$0xff] %vm686_vm2, %v3606_v7  ;;  %v3538_v10 = vadd.f32 %v11931_v9, %v3462_v11  ;;  %v9822_v51 = vadd.f32 %v3075_v41, %v11646_v53  ;;  %v9162_v45 = vpop.f32.mrb[17].mxu0  ;;  %9320 = vmatmul.mubr.msk.f32.gmra.mrb[122].mxu0 %vm686_vm2, %v11515_v58  ;;  %v12025_v41 = vpop.f32.mrb[116].mxu1 }
 0x2f5   : > { %9322 = vmatprep.mubr.msk.f32.mxu0 %vm10255_vm1, %v13579_v1  ;;  %13627 = vst [vmem:[#allocation14_spill] sm:$0xff] %v12025_v41 }
 0x2f6   : > { %v3607_v60 = vmax.f32 %v3538_v10, 0.0  ;;  %v3463_v3 = vmul.f32 %v9822_v51, %v11923_v48  ;;  %v8894_v10 = vpop.f32.mrb[117].mxu1 }
 0x2f7   : > { %v3080_v63 = vpop.f32.mrb[18].mxu0 }
 0x2f8   : > { %3676 = vst.msk [vmem:[#allocation2 + $0x38] sm:$0xff] %vm686_vm2, %v3607_v60  ;;  %v3539_v43 = vadd.f32 %v11931_v9, %v3463_v3  ;;  %v9823_v53 = vadd.f32 %v3080_v63, %v11656_v55  ;;  %v9165_v7 = vpop.f32.mrb[19].mxu0  ;;  %9323 = vmatmul.mubr.msk.f32.gmra.mrb[124].mxu0 %vm686_vm2, %v11526_v46  ;;  %v12035_v3 = vpop.f32.mrb[118].mxu1 }
 0x2f9   : > { %9325 = vmatprep.mubr.msk.f32.mxu0 %vm10255_vm1, %v13579_v1  ;;  %13628 = vst [vmem:[#allocation15_spill] sm:$0xff] %v12035_v3  ;;  %v8897_v49 = vpop.f32.mrb[119].mxu1  ;;  %v13629_v7 = vld [vmem:[#allocation22_spill] sm:$0xff] }
 0x2fa   : > { %v3608_v58 = vmax.f32 %v3539_v43, 0.0  ;;  %v3464_v11 = vmul.f32 %v9823_v53, %v11923_v48 }
 0x2fb   : > { %v3085_v4 = vpop.f32.mrb[20].mxu0 }
 0x2fc   : > { %3677 = vst.msk [vmem:[#allocation2 + $0x40] sm:$0xff] %vm686_vm2, %v3608_v58  ;;  %v3540_v51 = vadd.f32 %v11931_v9, %v3464_v11  ;;  %v9824_v55 = vadd.f32 %v3085_v4, %v11666_v57  ;;  %v9168_v45 = vpop.f32.mrb[21].mxu0  ;;  %9326 = vmatmul.mubr.msk.f32.gmra.mrb[126].mxu0 %vm686_vm2, %v11537_v44  ;;  %v2753_v44 = vld [vmem:[%s10376_s19 + $0x221] sm:$0xff]  ;;  %v12046_v4 = vpop.f32.mrb[120].mxu1 }
 0x2fd   : > { %9328 = vmatprep.mubr.msk.f32.mxu0 %vm10255_vm1, %v13579_v1  ;;  %13630 = vst [vmem:[#allocation16_spill] sm:$0xff] %v12046_v4 }
 0x2fe   : > { %v3609_v46 = vmax.f32 %v3540_v51, 0.0  ;;  %v3465_v60 = vmul.f32 %v9824_v55, %v11923_v48  ;;  %v8900_v51 = vpop.f32.mrb[121].mxu1 }
 0x2ff   : > { %v3090_v63 = vpop.f32.mrb[22].mxu0  ;;  %v12056_v49 = vpop.f32.mrb[122].mxu1 }
 0x300   : > { %3678 = vst.msk [vmem:[#allocation2 + $0x48] sm:$0xff] %vm686_vm2, %v3609_v46  ;;  %v3541_v43 = vadd.f32 %v11931_v9, %v3465_v60  ;;  %v9825_v57 = vadd.f32 %v3090_v63, %v11676_v59  ;;  %v9171_v53 = vpop.f32.mrb[23].mxu0  ;;  %9329 = vmatmul.mubr.msk.f32.gmra.mrb[128].mxu0 %vm686_vm2, %v13629_v7  ;;  %v2754_v46 = vld [vmem:[%s10376_s19 + $0x229] sm:$0xff]  ;;  %13631 = vst [vmem:[#allocation17_spill] sm:$0xff] %v12056_v49 }
 0x301   : > { %9331 = vmatprep.mubr.msk.f32.mxu0 %vm10255_vm1, %v13579_v1 }
 0x302   : > { %v3610_v58 = vmax.f32 %v3541_v43, 0.0  ;;  %v3466_v11 = vmul.f32 %v9825_v57, %v11923_v48  ;;  %v8903_v57 = vpop.f32.mrb[123].mxu1 }
 0x303   : > { %v3095_v10 = vpop.f32.mrb[24].mxu0 }
 0x304   : > { %3679 = vst.msk [vmem:[#allocation2 + $0x50] sm:$0xff] %vm686_vm2, %v3610_v58  ;;  %v3542_v59 = vadd.f32 %v11931_v9, %v3466_v11  ;;  %v9826_v55 = vadd.f32 %v3095_v10, %v11686_v56  ;;  %v9174_v45 = vpop.f32.mrb[25].mxu0  ;;  %9332 = vmatmul.mubr.msk.f32.gmra.mrb[130].mxu0 %vm686_vm2, %v2753_v44  ;;  %v2755_v44 = vld [vmem:[%s10376_s19 + $0x231] sm:$0xff]  ;;  %v12066_v10 = vpop.f32.mrb[124].mxu1 }
 0x305   : > { %9334 = vmatprep.mubr.msk.f32.mxu0 %vm10255_vm1, %v13579_v1  ;;  %13632 = vst [vmem:[#allocation18_spill] sm:$0xff] %v12066_v10 }
 0x306   : > { %v3611_v60 = vmax.f32 %v3542_v59, 0.0  ;;  %v3467_v63 = vmul.f32 %v9826_v55, %v11923_v48  ;;  %v8906_v59 = vpop.f32.mrb[125].mxu1 }
 0x307   : > { %v3100_v43 = vpop.f32.mrb[26].mxu0  ;;  %v12189_v12 = vld [vmem:[#allocation2 + $0x48] sm:$0xff] }
 0x308   : > { %3680 = vst.msk [vmem:[#allocation2 + $0x58] sm:$0xff] %vm686_vm2, %v3611_v60  ;;  %v3543_v53 = vadd.f32 %v11931_v9, %v3467_v63  ;;  %v9827_v56 = vadd.f32 %v3100_v43, %v11696_v54  ;;  %v9177_v7 = vpop.f32.mrb[27].mxu0  ;;  %9335 = vmatmul.mubr.msk.f32.gmra.mrb[132].mxu0 %vm686_vm2, %v2754_v46  ;;  %v2756_v46 = vld [vmem:[%s10376_s19 + $0x239] sm:$0x7f]  ;;  %v12076_v43 = vpop.f32.mrb[126].mxu1 }
 0x309   : > { %9337 = vmatprep.mubr.msk.f32.mxu0 %vm10255_vm1, %v13579_v1  ;;  %13633 = vst [vmem:[#allocation19_spill] sm:$0xff] %v12076_v43 }
 0x30a   : > { %v3612_v58 = vmax.f32 %v3543_v53, 0.0  ;;  %v3468_v11 = vmul.f32 %v9827_v56, %v11923_v48  ;;  %v8909_v53 = vpop.f32.mrb[127].mxu1 }
 0x30b   : > { %v3105_v51 = vpop.f32.mrb[28].mxu0 }
 0x30c   : > { %3681 = vst.msk [vmem:[#allocation2 + $0x60] sm:$0xff] %vm686_vm2, %v3612_v58  ;;  %v3544_v55 = vadd.f32 %v11931_v9, %v3468_v11  ;;  %v9828_v54 = vadd.f32 %v3105_v51, %v11706_v52  ;;  %v9180_v45 = vpop.f32.mrb[29].mxu0  ;;  %9338 = vmatmul.mubr.msk.f32.gmra.mrb[134].mxu0 %vm686_vm2, %v2755_v44  ;;  %v12083_v11 = vpop.f32.mrb[128].mxu1 }
 0x30d   : > { %9340 = vmatprep.mubr.msk.f32.mxu0 %vm10255_vm1, %v13579_v1  ;;  %13634 = vst [vmem:[#allocation20_spill] sm:$0xff] %v12083_v11  ;;  %v8912_v59 = vpop.f32.mrb[129].mxu1  ;;  %v12147_v1 = vld [vmem:[#allocation2 + $0x38] sm:$0xff] }
 0x30e   : > { %v3613_v60 = vmax.f32 %v3544_v55, 0.0  ;;  %v3469_v63 = vmul.f32 %v9828_v54, %v11923_v48 }
 0x30f   : > { %v3110_v57 = vpop.f32.mrb[30].mxu0 }
 0x310   : > { %3682 = vst.msk [vmem:[#allocation2 + $0x68] sm:$0xff] %vm686_vm2, %v3613_v60  ;;  %v3545_v56 = vadd.f32 %v11931_v9, %v3469_v63  ;;  %v9829_v52 = vadd.f32 %v3110_v57, %v11716_v50  ;;  %v9183_v7 = vpop.f32.mrb[31].mxu0  ;;  %9341 = vmatmul.mubr.msk.f32.gmra.mrb[136].mxu0 %vm686_vm2, %v2756_v46  ;;  %v12089_v63 = vpop.f32.mrb[130].mxu1 }
 0x311   : > { %13635 = vst [vmem:[#allocation21_spill] sm:$0xff] %v12089_v63  ;;  %v8915_v57 = vpop.f32.mrb[131].mxu1 }
 0x312   : > { %v3614_v44 = vmax.f32 %v3545_v56, 0.0  ;;  %v3470_v58 = vmul.f32 %v9829_v52, %v11923_v48 }
 0x313   : > { %v3115_v51 = vpop.f32.mrb[32].mxu0 }
 0x314   : > { %3683 = vst.msk [vmem:[#allocation2 + $0x70] sm:$0xff] %vm686_vm2, %v3614_v44  ;;  %v3546_v55 = vadd.f32 %v11931_v9, %v3470_v58  ;;  %v9830_v54 = vadd.f32 %v3115_v51, %v11724_v62  ;;  %v9186_v45 = vpop.f32.mrb[33].mxu0  ;;  %v12095_v58 = vpop.f32.mrb[132].mxu1 }
 0x315   : > { %13636 = vst [vmem:[#allocation22_spill] sm:$0xff] %v12095_v58  ;;  %v8918_v51 = vpop.f32.mrb[133].mxu1 }
 0x316   : > { %v3615_v60 = vmax.f32 %v3546_v55, 0.0  ;;  %v3471_v50 = vmul.f32 %v9830_v54, %v11923_v48 }
 0x317   : > { %v3120_v46 = vpop.f32.mrb[34].mxu0 }
 0x318   : > { %3684 = vst.msk [vmem:[#allocation2 + $0x78] sm:$0xff] %vm686_vm2, %v3615_v60  ;;  %v3547_v53 = vadd.f32 %v11931_v9, %v3471_v50  ;;  %v9831_v56 = vadd.f32 %v3120_v46, %v11732_v17  ;;  %v9189_v52 = vpop.f32.mrb[35].mxu0  ;;  %v12101_v50 = vpop.f32.mrb[134].mxu1 }
 0x319   : > { %13637 = vst [vmem:[#allocation23_spill] sm:$0xff] %v12101_v50  ;;  %v8921_v46 = vpop.f32.mrb[135].mxu1  ;;  %v3745_v50 = vld [vmem:[#allocation2 + $0x30] sm:$0xff] }
 0x31a   : > { %v3616_v7 = vmax.f32 %v3547_v53, 0.0  ;;  %v3472_v44 = vmul.f32 %v9831_v56, %v11923_v48 }
 0x31b   : > { %v3125_v62 = vpop.f32.mrb[36].mxu0 }
 0x31c   : > { %3685 = vst.msk [vmem:[#allocation2 + $0x80] sm:$0xff] %vm686_vm2, %v3616_v7  ;;  %v3548_v59 = vadd.f32 %v11931_v9, %v3472_v44  ;;  %v9832_v55 = vadd.f32 %v3125_v62, %v11738_v18  ;;  %v9192_v54 = vpop.f32.mrb[37].mxu0  ;;  %v12107_v44 = vpop.f32.mrb[136].mxu1 }
 0x31d   : > { %13638 = vst [vmem:[#allocation24_spill] sm:$0xff] %v12107_v44  ;;  %v8924_v62 = vpop.f32.mrb[137].mxu1 }
 0x31e   : > { %v3617_v45 = vmax.f32 %v3548_v59, 0.0  ;;  %v3473_v60 = vmul.f32 %v9832_v55, %v11923_v48 }
 0x31f   : > { %v3130_v17 = vpop.f32.mrb[38].mxu0 }
 0x320   : > { %3686 = vst.msk [vmem:[#allocation2 + $0x88] sm:$0xff] %vm686_vm2, %v3617_v45  ;;  %v3549_v57 = vadd.f32 %v11931_v9, %v3473_v60  ;;  %v9833_v53 = vadd.f32 %v3130_v17, %v11744_v19  ;;  %v9195_v56 = vpop.f32.mrb[39].mxu0 }
 0x322   : > { %v3618_v52 = vmax.f32 %v3549_v57, 0.0  ;;  %v3474_v7 = vmul.f32 %v9833_v53, %v11923_v48 }
 0x323   : > { %v3135_v18 = vpop.f32.mrb[40].mxu0 }
 0x324   : > { %3687 = vst.msk [vmem:[#allocation2 + $0x90] sm:$0xff] %vm686_vm2, %v3618_v52  ;;  %v3550_v51 = vadd.f32 %v11931_v9, %v3474_v7  ;;  %v9834_v59 = vadd.f32 %v3135_v18, %v11750_v20  ;;  %v9198_v55 = vpop.f32.mrb[41].mxu0  ;;  %v12120_v18 = vld [vmem:[#allocation2 + $0x28] sm:$0xff] }
 0x325   : > { %v3743_v55 = vld [vmem:[#allocation2 + $0x20] sm:$0xff] }
 0x326   : > { %v3619_v54 = vmax.f32 %v3550_v51, 0.0  ;;  %v3475_v45 = vmul.f32 %v9834_v59, %v11923_v48  ;;  %v3741_v59 = vld [vmem:[#allocation2 + $0x10] sm:$0xff] }
 0x327   : > { %v3140_v60 = vpop.f32.mrb[42].mxu0 }
 0x328   : > { %3688 = vst.msk [vmem:[#allocation2 + $0x98] sm:$0xff] %vm686_vm2, %v3619_v54  ;;  %v3551_v19 = vadd.f32 %v11931_v9, %v3475_v45  ;;  %v9835_v17 = vadd.f32 %v3140_v60, %v11756_v21  ;;  %v9201_v46 = vpop.f32.mrb[43].mxu0  ;;  %v12124_v54 = vmax.f32 %v3741_v59, %v12120_v18  ;;  %v12134_v59 = vld [vmem:[#allocation2 + $0x88] sm:$0xff] }
 0x32a   : > { %v3620_v57 = vmax.f32 %v3551_v19, 0.0  ;;  %v3476_v53 = vmul.f32 %v9835_v17, %v11923_v48  ;;  %v3742_v17 = vld [vmem:[#allocation2 + $0x18] sm:$0xff]  ;;  %v13639_v63 = vrot.slane %v12124_v54, 1 }
 0x32b   : > { %v3145_v56 = vpop.f32.mrb[44].mxu0  ;;  %v12151_v58 = vld [vmem:[#allocation2 + $0x90] sm:$0xff]  ;;  %v12170_v4 = vmax.f32 %v3742_v17, %v3745_v50 }
 0x32c   : > { %3689 = vst.msk [vmem:[#allocation2 + $0xa0] sm:$0xff] %vm686_vm2, %v3620_v57  ;;  %v3552_v20 = vadd.f32 %v11931_v9, %v3476_v53  ;;  %v9836_v52 = vadd.f32 %v3145_v56, %v11762_v22  ;;  %v9204_v7 = vpop.f32.mrb[45].mxu0  ;;  %v3740_v22 = vld [vmem:[#allocation2 + $0x8] sm:$0xff] }
 0x32d   : > { %v12129_v57 = vmax.f32 %v3740_v22, %v3743_v55  ;;  %v12132_v7 = vld [vmem:[#allocation2 + $0x80] sm:$0xff] }
 0x32e   : > { %v3621_v62 = vmax.f32 %v3552_v20, 0.0  ;;  %v3477_v51 = vmul.f32 %v9836_v52, %v11923_v48  ;;  %v3739_v20 = vld [vmem:[#allocation2] sm:$0xff] }
 0x32f   : > { %v3150_v21 = vpop.f32.mrb[46].mxu0  ;;  %v3758_v46 = vld [vmem:[#allocation2 + $0x98] sm:$0xff]  ;;  %v3943_v44 = vrot.slane %v12129_v57, 1 }
 0x330   : > { %3690 = vst.msk [vmem:[#allocation2 + $0xa8] sm:$0xff] %vm686_vm2, %v3621_v62  ;;  %v3553_v45 = vadd.f32 %v11931_v9, %v3477_v51  ;;  %v9837_v60 = vadd.f32 %v3150_v21, %v11768_v23  ;;  %v9207_v19 = vpop.f32.mrb[47].mxu0  ;;  %v3809_v51 = vmax.f32 %v3739_v20, %v3742_v17 }
 0x331   : > { %v3946_v11 = vsel %vm3941_vm3, %v3943_v44, %v13639_v63 }
 0x332   : > { %v3622_v53 = vmax.f32 %v3553_v45, 0.0  ;;  %v3478_v56 = vmul.f32 %v9837_v60, %v11923_v48  ;;  %v12143_v60 = vmax.f32 %v12132_v7, %v3758_v46 }
 0x333   : > { %v3155_v52 = vpop.f32.mrb[48].mxu0  ;;  %v12136_v62 = vld [vmem:[#allocation2 + $0xa0] sm:$0xff] }
 0x334   : > { %3691 = vst.msk [vmem:[#allocation2 + $0xb0] sm:$0xff] %vm686_vm2, %v3622_v53  ;;  %v3554_v21 = vadd.f32 %v11931_v9, %v3478_v56  ;;  %v9838_v19 = vadd.f32 %v3155_v52, %v11774_v24  ;;  %v9210_v45 = vpop.f32.mrb[49].mxu0  ;;  %v3826_v22 = vmax.f32 %v12134_v59, %v12136_v62  ;;  %v12156_v52 = vmax.f32 %v3743_v55, %v12147_v1 }
 0x335   : > { %v3942_v45 = vrot.slane %v3809_v51, 1  ;;  %v13581_v49 = vrot.slane %v12143_v60, 1 }
 0x336   : > { %v3623_v20 = vmax.f32 %v3554_v21, 0.0  ;;  %v3479_v23 = vmul.f32 %v9838_v19, %v11923_v48  ;;  %v3975_v53 = vrot.slane %v3826_v22, 1 }
 0x337   : > { %v3160_v56 = vpop.f32.mrb[50].mxu0  ;;  %v12153_v24 = vld [vmem:[#allocation2 + $0xa8] sm:$0xff]  ;;  %v3944_v55 = vsel %vm3941_vm3, %v3942_v45, %v3943_v44  ;;  %v3947_v44 = vrot.slane %v12170_v4, 1 }
 0x338   : > { %3692 = vst.msk [vmem:[#allocation2 + $0xb8] sm:$0xff] %vm686_vm2, %v3623_v20  ;;  %v3555_v21 = vadd.f32 %v11931_v9, %v3479_v23  ;;  %v9839_v19 = vadd.f32 %v3160_v56, %v11780_v25  ;;  %v9213_v43 = vpop.f32.mrb[51].mxu0  ;;  %v12166_v10 = vmax.f32 %v12151_v58, %v12153_v24  ;;  %v3976_v23 = vsel %vm3941_vm3, %v13581_v49, %v3975_v53 }
 0x339   : > { %v4206_v43 = vld [vmem:[%s13553_s10 + $0x8] sm:$0xff]  ;;  %v4140_v56 = vmax.f32 %v12129_v57, %v3946_v11  ;;  %v4155_v11 = vmax.f32 %v12143_v60, %v3976_v23  ;;  %v4139_v47 = vmax.f32 %v3809_v51, %v3944_v55 }
 0x33a   : > { %v3624_v3 = vmax.f32 %v3555_v21, 0.0  ;;  %v3480_v63 = vmul.f32 %v9839_v19, %v11923_v48  ;;  %v3977_v25 = vrot.slane %v12166_v10, 1  ;;  %4401 = vmatprep.mubr.f32.mxu1 %v4206_v43 }
 0x33b   : > { %v3165_v20 = vpop.f32.mrb[52].mxu0  ;;  %v12181_v41 = vld [vmem:[#allocation2 + $0xb0] sm:$0xff] }
 0x33c   : > { %3693 = vst.msk [vmem:[#allocation2 + $0xc0] sm:$0xff] %vm686_vm2, %v3624_v3  ;;  %v3556_v17 = vadd.f32 %v11931_v9, %v3480_v63  ;;  %v9840_v45 = vadd.f32 %v3165_v20, %v11786_v26  ;;  %v9216_v21 = vpop.f32.mrb[53].mxu0  ;;  %v3978_v19 = vsel %vm3941_vm3, %v3975_v53, %v3977_v25  ;;  %v3828_v49 = vmax.f32 %v3758_v46, %v12181_v41  ;;  %v3747_v63 = vld [vmem:[#allocation2 + $0x40] sm:$0xff] }
 0x33d   : > { %v4156_v57 = vmax.f32 %v3826_v22, %v3978_v19  ;;  %v9614_v53 = vpack.c.bf16 %v4140_v56, %v4139_v47  ;;  %v12197_v46 = vmax.f32 %v3745_v50, %v12189_v12  ;;  %v13641_v47 = vrot.slane %v12124_v54, 1 }
 0x33e   : > { %v3625_v43 = vmax.f32 %v3556_v17, 0.0  ;;  %v3481_v3 = vmul.f32 %v9840_v45, %v11923_v48  ;;  %v3979_v0 = vrot.slane %v3828_v49, 1  ;;  %v13640_v17 = vrot.slane %v12156_v52, 1 }
 0x33f   : > { %v3170_v16 = vpop.f32.mrb[54].mxu0  ;;  %v12194_v26 = vld [vmem:[#allocation2 + $0xb8] sm:$0xff]  ;;  %v9612_v20 = vpack.c.bf16 %v4156_v57, %v4155_v11  ;;  %v3948_v50 = vsel %vm3941_vm3, %v13641_v47, %v3947_v44  ;;  %v12213_v56 = vmax.f32 %v12120_v18, %v3747_v63 }
 0x340   : > { %3694 = vst.msk [vmem:[#allocation2 + $0xc8] sm:$0xff] %vm686_vm2, %v3625_v43  ;;  %v3557_v22 = vadd.f32 %v11931_v9, %v3481_v3  ;;  %v9841_v51 = vadd.f32 %v3170_v16, %v11792_v27  ;;  %v9219_v55 = vpop.f32.mrb[55].mxu0  ;;  %v12204_v23 = vmax.f32 %v12136_v62, %v12194_v26  ;;  %v3950_v45 = vsel %vm3941_vm3, %v3947_v44, %v13640_v17 }
 0x341   : > { %9613 = vmatprep.subr.bf16.mxu1 %v9612_v20  ;;  %v3980_v16 = vsel %vm3941_vm3, %v3977_v25, %v3979_v0  ;;  %v4142_v11 = vmax.f32 %v12170_v4, %v3950_v45  ;;  %v3953_v43 = vrot.slane %v12197_v46, 1  ;;  %v3951_v55 = vrot.slane %v12213_v56, 1  ;;  %v3749_v45 = vld [vmem:[#allocation2 + $0x50] sm:$0xff] }
 0x342   : > { %v3626_v21 = vmax.f32 %v3557_v22, 0.0  ;;  %v3482_v27 = vmul.f32 %v9841_v51, %v11923_v48  ;;  %9615 = vmatpush3.bf16.msra.mxu1 %v9614_v53  ;;  %v3981_v62 = vrot.slane %v12204_v23, 1  ;;  %v12228_v53 = vld [vmem:[#allocation2 + $0x58] sm:$0xff]  ;;  %v4157_v4 = vmax.f32 %v12166_v10, %v3980_v16 }
 0x343   : > { %v3175_v19 = vpop.f32.mrb[56].mxu0  ;;  %v12219_v57 = vld [vmem:[#allocation2 + $0xc0] sm:$0xff]  ;;  %v4141_v51 = vmax.f32 %v12124_v54, %v3948_v50  ;;  %v3954_v16 = vsel %vm3941_vm3, %v3951_v55, %v3953_v43 }
 0x344   : > { %3695 = vst.msk [vmem:[#allocation2 + $0xd0] sm:$0xff] %vm686_vm2, %v3626_v21  ;;  %v3558_v18 = vadd.f32 %v11931_v9, %v3482_v27  ;;  %v9842_v44 = vadd.f32 %v3175_v19, %v11798_v28  ;;  %v9222_v3 = vpop.f32.mrb[57].mxu0  ;;  %v3982_v20 = vsel %vm3941_vm3, %v3979_v0, %v3981_v62  ;;  %v3830_v25 = vmax.f32 %v12153_v24, %v12219_v57 }
 0x345   : > { %v4158_v22 = vmax.f32 %v3828_v49, %v3982_v20  ;;  %v9618_v19 = vpack.c.bf16 %v4142_v11, %v4141_v51  ;;  %v12237_v24 = vmax.f32 %v3747_v63, %v12228_v53  ;;  %v13642_v11 = vrot.slane %v12156_v52, 1 }
 0x346   : > { %v3627_v17 = vmax.f32 %v3558_v18, 0.0  ;;  %v3483_v47 = vmul.f32 %v9842_v44, %v11923_v48  ;;  %v3983_v28 = vrot.slane %v3830_v25, 1  ;;  %v12253_v18 = vmax.f32 %v12147_v1, %v3749_v45 }
 0x347   : > { %v3180_v21 = vpop.f32.mrb[58].mxu0  ;;  %v12234_v27 = vld [vmem:[#allocation2 + $0xc8] sm:$0xff]  ;;  %v9616_v0 = vpack.c.bf16 %v4158_v22, %v4157_v4  ;;  %v3952_v63 = vsel %vm3941_vm3, %v13642_v11, %v3951_v55  ;;  %v4144_v4 = vmax.f32 %v12213_v56, %v3954_v16  ;;  %v3957_v51 = vrot.slane %v12237_v24, 1  ;;  %v3751_v11 = vld [vmem:[#allocation2 + $0x60] sm:$0xff] }
 0x348   : > { %3696 = vst.msk [vmem:[#allocation2 + $0xd8] sm:$0xff] %vm686_vm2, %v3627_v17  ;;  %v3559_v49 = vadd.f32 %v11931_v9, %v3483_v47  ;;  %v9843_v10 = vadd.f32 %v3180_v21, %v11804_v29  ;;  %v9225_v54 = vpop.f32.mrb[59].mxu0  ;;  %v12244_v50 = vmax.f32 %v12181_v41, %v12234_v27  ;;  %v3984_v3 = vsel %vm3941_vm3, %v3981_v62, %v3983_v28  ;;  %v12262_v17 = vld [vmem:[#allocation2 + $0x68] sm:$0xff] }
 0x349   : > { %9617 = vmatprep.subr.bf16.mxu1 %v9616_v0  ;;  %v4159_v56 = vmax.f32 %v12204_v23, %v3984_v3 }
 0x34a   : > { %v3628_v44 = vmax.f32 %v3559_v49, 0.0  ;;  %v3484_v29 = vmul.f32 %v9843_v10, %v11923_v48  ;;  %9619 = vmatpush3.bf16.msra.mxu1 %v9618_v19  ;;  %v3985_v41 = vrot.slane %v12244_v50, 1  ;;  %v4143_v19 = vmax.f32 %v12156_v52, %v3952_v63 }
 0x34b   : > { %v3185_v20 = vpop.f32.mrb[60].mxu0  ;;  %v12259_v22 = vld [vmem:[#allocation2 + $0xd0] sm:$0xff]  ;;  %v3955_v49 = vrot.slane %v12253_v18, 1 }
 0x34c   : > { %3697 = vst.msk [vmem:[#allocation2 + $0xe0] sm:$0xff] %vm686_vm2, %v3628_v44  ;;  %v3560_v1 = vadd.f32 %v11931_v9, %v3484_v29  ;;  %v9844_v55 = vadd.f32 %v3185_v20, %v11810_v30  ;;  %v9228_v47 = vpop.f32.mrb[61].mxu0  ;;  %v3986_v62 = vsel %vm3941_vm3, %v3983_v28, %v3985_v41  ;;  %v3832_v21 = vmax.f32 %v12194_v26, %v12259_v22 }
 0x34d   : > { %v4160_v0 = vmax.f32 %v3830_v25, %v3986_v62  ;;  %v12275_v30 = vmax.f32 %v3749_v45, %v12262_v17  ;;  %v9622_v26 = vpack.c.bf16 %v4144_v4, %v4143_v19  ;;  %v3958_v45 = vsel %vm3941_vm3, %v3955_v49, %v3957_v51 }
 0x34e   : > { %v3629_v10 = vmax.f32 %v3560_v1, 0.0  ;;  %v3485_v54 = vmul.f32 %v9844_v55, %v11923_v48  ;;  %v3987_v16 = vrot.slane %v3832_v21, 1  ;;  %v3956_v3 = vsel %vm3941_vm3, %v3953_v43, %v3955_v49 }
 0x34f   : > { %v3190_v44 = vpop.f32.mrb[62].mxu0  ;;  %v12277_v28 = vld [vmem:[#allocation2 + $0xd8] sm:$0xff]  ;;  %v9620_v29 = vpack.c.bf16 %v4160_v0, %v4159_v56  ;;  %v12293_v20 = vmax.f32 %v12189_v12, %v3751_v11  ;;  %v3961_v55 = vrot.slane %v12275_v30, 1  ;;  %v4146_v62 = vmax.f32 %v12253_v18, %v3958_v45 }
 0x350   : > { %3698 = vst.msk [vmem:[#allocation2 + $0xe8] sm:$0xff] %vm686_vm2, %v3629_v10  ;;  %v3561_v23 = vadd.f32 %v11931_v9, %v3485_v54  ;;  %v9845_v52 = vadd.f32 %v3190_v44, %v11816_v31  ;;  %v9231_v25 = vpop.f32.mrb[63].mxu0  ;;  %v12284_v63 = vmax.f32 %v12219_v57, %v12277_v28  ;;  %v3988_v1 = vsel %vm3941_vm3, %v3985_v41, %v3987_v16  ;;  %v12305_v41 = vld [vmem:[#allocation2 + $0x78] sm:$0xff] }
 0x351   : > { %9621 = vmatprep.subr.bf16.mxu1 %v9620_v29  ;;  %v4161_v10 = vmax.f32 %v12244_v50, %v3988_v1  ;;  %v4145_v44 = vmax.f32 %v12197_v46, %v3956_v3  ;;  %v3959_v18 = vrot.slane %v12293_v20, 1  ;;  %v3753_v29 = vld [vmem:[#allocation2 + $0x70] sm:$0xff] }
 0x352   : > { %v3630_v4 = vmax.f32 %v3561_v23, 0.0  ;;  %v3486_v31 = vmul.f32 %v9845_v52, %v11923_v48  ;;  %9623 = vmatpush3.bf16.msra.mxu1 %v9622_v26  ;;  %v3989_v57 = vrot.slane %v12284_v63, 1 }
 0x353   : > { %v3195_v47 = vpop.f32.mrb[64].mxu0  ;;  %v3767_v56 = vld [vmem:[#allocation2 + $0xe0] sm:$0xff]  ;;  %v9626_v45 = vpack.c.bf16 %v4146_v62, %v4145_v44 }
 0x354   : > { %3699 = vst.msk [vmem:[#allocation2 + $0xf0] sm:$0xff] %vm686_vm2, %v3630_v4  ;;  %v3562_v43 = vadd.f32 %v11931_v9, %v3486_v31  ;;  %v9846_v12 = vadd.f32 %v3195_v47, %v11822_v32  ;;  %v9234_v0 = vpop.f32.mrb[65].mxu0  ;;  %v3990_v19 = vsel %vm3941_vm3, %v3987_v16, %v3989_v57  ;;  %v3834_v49 = vmax.f32 %v12234_v27, %v3767_v56 }
 0x355   : > { %v4162_v54 = vmax.f32 %v3832_v21, %v3990_v19  ;;  %v12314_v27 = vmax.f32 %v3751_v11, %v12305_v41  ;;  %v3962_v4 = vsel %vm3941_vm3, %v3959_v18, %v3961_v55  ;;  %v3960_v11 = vsel %vm3941_vm3, %v3957_v51, %v3959_v18 }
 0x356   : > { %v3631_v26 = vmax.f32 %v3562_v43, 0.0  ;;  %v3487_v23 = vmul.f32 %v9846_v12, %v11923_v48  ;;  %v3991_v52 = vrot.slane %v3834_v49, 1  ;;  %v12330_v31 = vmax.f32 %v12228_v53, %v3753_v29 }
 0x357   : > { %v3200_v32 = vpop.f32.mrb[66].mxu0  ;;  %v12311_v25 = vld [vmem:[#allocation2 + $0xe8] sm:$0xff]  ;;  %v9624_v16 = vpack.c.bf16 %v4162_v54, %v4161_v10  ;;  %v4148_v43 = vmax.f32 %v12293_v20, %v3962_v4  ;;  %v3965_v0 = vrot.slane %v12314_v27, 1  ;;  %v4147_v18 = vmax.f32 %v12237_v24, %v3960_v11 }
 0x358   : > { %3700 = vst.msk [vmem:[#allocation2 + $0xf8] sm:$0xff] %vm686_vm2, %v3631_v26  ;;  %v3563_v50 = vadd.f32 %v11931_v9, %v3487_v23  ;;  %v9847_v46 = vadd.f32 %v3200_v32, %v11828_v33  ;;  %v9237_v21 = vpop.f32.mrb[67].mxu0  ;;  %v12321_v3 = vmax.f32 %v12259_v22, %v12311_v25  ;;  %v3992_v47 = vsel %vm3941_vm3, %v3989_v57, %v3991_v52 }
 0x359   : > { %9625 = vmatprep.subr.bf16.mxu1 %v9624_v16  ;;  %v4163_v57 = vmax.f32 %v12284_v63, %v3992_v47  ;;  %v3963_v20 = vrot.slane %v12330_v31, 1  ;;  %v12347_v16 = vmax.f32 %v3753_v29, %v12134_v59  ;;  %v12357_v21 = vmax.f32 %v12262_v17, %v12132_v7 }
 0x35a   : > { %v3632_v1 = vmax.f32 %v3563_v50, 0.0  ;;  %v3488_v33 = vmul.f32 %v9847_v46, %v11923_v48  ;;  %9627 = vmatpush3.bf16.msra.mxu1 %v9626_v45  ;;  %v3993_v22 = vrot.slane %v12321_v3, 1 }
 0x35b   : > { %v3205_v62 = vpop.f32.mrb[68].mxu0  ;;  %v3769_v12 = vld [vmem:[#allocation2 + $0xf0] sm:$0xff]  ;;  %v3966_v46 = vsel %vm3941_vm3, %v3963_v20, %v3965_v0  ;;  %v3964_v59 = vsel %vm3941_vm3, %v3961_v55, %v3963_v20  ;;  %v3969_v11 = vrot.slane %v12347_v16, 1 }
 0x35c   : > { %3701 = vst.msk [vmem:[#allocation2 + $0x100] sm:$0xff] %vm686_vm2, %v3632_v1  ;;  %v3564_v51 = vadd.f32 %v11931_v9, %v3488_v33  ;;  %v9848_v53 = vadd.f32 %v3205_v62, %v11834_v34  ;;  %v9240_v19 = vpop.f32.mrb[69].mxu0  ;;  %v3994_v10 = vsel %vm3941_vm3, %v3991_v52, %v3993_v22  ;;  %v3836_v54 = vmax.f32 %v12277_v28, %v3769_v12 }
 0x35d   : > { %v4164_v44 = vmax.f32 %v3834_v49, %v3994_v10  ;;  %v9630_v52 = vpack.c.bf16 %v4148_v43, %v4147_v18  ;;  %v4150_v33 = vmax.f32 %v12330_v31, %v3966_v46  ;;  %v4149_v19 = vmax.f32 %v12275_v30, %v3964_v59 }
 0x35e   : > { %v3633_v26 = vmax.f32 %v3564_v51, 0.0  ;;  %v3489_v23 = vmul.f32 %v9848_v53, %v11923_v48  ;;  %v3995_v32 = vrot.slane %v3836_v54, 1 }
 0x35f   : > { %v3210_v34 = vpop.f32.mrb[70].mxu0  ;;  %v3770_v45 = vld [vmem:[#allocation2 + $0xf8] sm:$0xff]  ;;  %v9628_v50 = vpack.c.bf16 %v4164_v44, %v4163_v57 }
 0x360   : > { %3702 = vst.msk [vmem:[#allocation2 + $0x108] sm:$0xff] %vm686_vm2, %v3633_v26  ;;  %v3565_v28 = vadd.f32 %v11931_v9, %v3489_v23  ;;  %v9849_v63 = vadd.f32 %v3210_v34, %v11840_v35  ;;  %v9243_v24 = vpop.f32.mrb[71].mxu0  ;;  %v12352_v49 = vmax.f32 %v3767_v56, %v3770_v45  ;;  %v3996_v35 = vsel %vm3941_vm3, %v3993_v22, %v3995_v32 }
 0x361   : > { %9629 = vmatprep.subr.bf16.mxu1 %v9628_v50  ;;  %v3967_v22 = vrot.slane %v12357_v21, 1  ;;  %v4165_v51 = vmax.f32 %v12321_v3, %v3996_v35 }
 0x362   : > { %v3634_v29 = vmax.f32 %v3565_v28, 0.0  ;;  %v3490_v4 = vmul.f32 %v9849_v63, %v11923_v48  ;;  %9631 = vmatpush3.bf16.msra.mxu1 %v9630_v52  ;;  %v3997_v56 = vrot.slane %v12352_v49, 1 }
 0x363   : > { %v3215_v1 = vpop.f32.mrb[72].mxu0  ;;  %v3771_v7 = vld [vmem:[#allocation2 + $0x100] sm:$0xff]  ;;  %v3970_v30 = vsel %vm3941_vm3, %v3967_v22, %v3969_v11  ;;  %v3968_v3 = vsel %vm3941_vm3, %v3965_v0, %v3967_v22 }
 0x364   : > { %3703 = vst.msk [vmem:[#allocation2 + $0x110] sm:$0xff] %vm686_vm2, %v3634_v29  ;;  %v3566_v17 = vadd.f32 %v11931_v9, %v3490_v4  ;;  %v9850_v55 = vadd.f32 %v3215_v1, %v11846_v36  ;;  %v9246_v47 = vpop.f32.mrb[73].mxu0  ;;  %v3998_v62 = vsel %vm3941_vm3, %v3995_v32, %v3997_v56  ;;  %v3838_v43 = vmax.f32 %v12311_v25, %v3771_v7 }
 0x365   : > { %v4166_v53 = vmax.f32 %v3836_v54, %v3998_v62  ;;  %v9634_v36 = vpack.c.bf16 %v4150_v33, %v4149_v19  ;;  %v3824_v54 = vmax.f32 %v12305_v41, %v12151_v58  ;;  %v4152_v28 = vmax.f32 %v12357_v21, %v3970_v30  ;;  %v12400_v21 = vld [vmem:[%s13545_s2] ss:$0 sm:$0xff] }
 0x366   : > { %v3635_v31 = vmax.f32 %v3566_v17, 0.0  ;;  %v3491_v10 = vmul.f32 %v9850_v55, %v11923_v48  ;;  %v3999_v57 = vrot.slane %v3838_v43, 1  ;;  %v4151_v29 = vmax.f32 %v12314_v27, %v3968_v3  ;;  %v12407_v27 = vld [vmem:[%s13546_s3] ss:$0 sm:$0xff] }
 0x367   : > { %v3220_v44 = vpop.f32.mrb[74].mxu0  ;;  %v3772_v18 = vld [vmem:[#allocation2 + $0x108] sm:$0xff]  ;;  %v9632_v20 = vpack.c.bf16 %v4166_v53, %v4165_v51  ;;  %v3971_v4 = vrot.slane %v3824_v54, 1  ;;  %v13643_v62 = vrot.slane %v12143_v60, 1 }
 0x368   : > { %3704 = vst.msk [vmem:[#allocation2 + $0x118] sm:$0xff] %vm686_vm2, %v3635_v31  ;;  %v3567_v26 = vadd.f32 %v11931_v9, %v3491_v10  ;;  %v9851_v25 = vadd.f32 %v3220_v44, %v11852_v37  ;;  %v9249_v23 = vpop.f32.mrb[75].mxu0  ;;  %v12379_v32 = vmax.f32 %v3769_v12, %v3772_v18  ;;  %v4000_v52 = vsel %vm3941_vm3, %v3997_v56, %v3999_v57 }
 0x369   : > { %9633 = vmatprep.subr.bf16.mxu1 %v9632_v20  ;;  %v9638_v17 = vpack.c.bf16 %v4152_v28, %v4151_v29  ;;  %v3972_v22 = vsel %vm3941_vm3, %v3969_v11, %v3971_v4 }
 0x36a   : > { %v3636_v34 = vmax.f32 %v3567_v26, 0.0  ;;  %v3492_v50 = vmul.f32 %v9851_v25, %v11923_v48  ;;  %9635 = vmatpush3.bf16.msra.mxu1 %v9634_v36  ;;  %v4001_v37 = vrot.slane %v12379_v32, 1  ;;  %v4167_v48 = vmax.f32 %v12352_v49, %v4000_v52 }
 0x36b   : > { %v3225_v12 = vpop.f32.mrb[76].mxu0  ;;  %v3773_v63 = vld [vmem:[#allocation2 + $0x110] sm:$0xff]  ;;  %v4153_v25 = vmax.f32 %v12347_v16, %v3972_v22 }
 0x36c   : > { %3705 = vst.msk [vmem:[#allocation2 + $0x120] sm:$0xff] %vm686_vm2, %v3636_v34  ;;  %v3568_v24 = vadd.f32 %v11931_v9, %v3492_v50  ;;  %v9852_v0 = vadd.f32 %v3225_v12, %v11858_v38  ;;  %v9252_v46 = vpop.f32.mrb[77].mxu0  ;;  %v4002_v58 = vsel %vm3941_vm3, %v3999_v57, %v4001_v37  ;;  %v3840_v41 = vmax.f32 %v3770_v45, %v3773_v63 }
 0x36d   : > { %v4168_v59 = vmax.f32 %v3838_v43, %v4002_v58  ;;  %v3974_v43 = vsel %vm3941_vm3, %v3971_v4, %v13643_v62  ;;  %v4205_v46 = vld [vmem:[%s13553_s10] sm:$0xff] }
 0x36e   : > { %v3637_v35 = vmax.f32 %v3568_v24, 0.0  ;;  %v3493_v9 = vmul.f32 %v12400_v21, %v9852_v0  ;;  %v4003_v56 = vrot.slane %v3840_v41, 1 }
 0x36f   : > { %v3230_v38 = vpop.f32.mrb[78].mxu0  ;;  %v3774_v1 = vld [vmem:[#allocation2 + $0x118] sm:$0xff]  ;;  %v9636_v33 = vpack.c.bf16 %v4168_v59, %v4167_v48 }
 0x370   : > { %3706 = vst.msk [vmem:[#allocation2 + $0x128] sm:$0xff] %vm686_vm2, %v3637_v35  ;;  %v3569_v45 = vadd.f32 %v12407_v27, %v3493_v9  ;;  %v9853_v49 = vadd.f32 %v3230_v38, %v11864_v39  ;;  %v9255_v55 = vpop.f32.mrb[79].mxu0  ;;  %v3841_v47 = vmax.f32 %v3771_v7, %v3774_v1  ;;  %v4004_v19 = vsel %vm3941_vm3, %v4001_v37, %v4003_v56  ;;  %v4210_v38 = vld [vmem:[%s13553_s10 + $0x28] sm:$0xff] }
 0x371   : > { %9637 = vmatprep.subr.bf16.mxu1 %v9636_v33  ;;  %v4154_v39 = vmax.f32 %v3824_v54, %v3974_v43  ;;  %v4169_v36 = vmax.f32 %v12379_v32, %v4004_v19  ;;  %v4215_v19 = vld [vmem:[%s13553_s10 + $0x50] sm:$0xff] }
 0x372   : > { %v3638_v51 = vmax.f32 %v3569_v45, 0.0  ;;  %v3494_v53 = vmul.f32 %v12400_v21, %v9853_v49  ;;  %9639 = vmatpush3.bf16.msra.mxu1 %v9638_v17  ;;  %v4005_v31 = vrot.slane %v3841_v47, 1 }
 0x373   : > { %v3235_v10 = vpop.f32.mrb[80].mxu0  ;;  %v3775_v57 = vld [vmem:[#allocation2 + $0x120] sm:$0xff]  ;;  %v9642_v52 = vpack.c.bf16 %v4154_v39, %v4153_v25 }
 0x374   : > { %3707 = vst.msk [vmem:[#allocation2 + $0x130] sm:$0xff] %vm686_vm2, %v3638_v51  ;;  %v3570_v60 = vadd.f32 %v12407_v27, %v3494_v53  ;;  %v9854_v7 = vadd.f32 %v3235_v10, %v11870_v40  ;;  %v9258_v44 = vpop.f32.mrb[81].mxu0  ;;  %v4006_v20 = vsel %vm3941_vm3, %v4003_v56, %v4005_v31  ;;  %v3842_v11 = vmax.f32 %v3772_v18, %v3775_v57 }
 0x375   : > { %v4170_v26 = vmax.f32 %v3840_v41, %v4006_v20 }
 0x376   : > { %v3639_v23 = vmax.f32 %v3570_v60, 0.0  ;;  %v3495_v30 = vmul.f32 %v12400_v21, %v9854_v7  ;;  %v4007_v3 = vrot.slane %v3842_v11, 1 }
 0x377   : > { %v3240_v54 = vpop.f32.mrb[82].mxu0  ;;  %v12426_v34 = vld [vmem:[#allocation2 + $0x128] sm:$0xff]  ;;  %v9640_v50 = vpack.c.bf16 %v4170_v26, %v4169_v36  ;;  %v4220_v36 = vld [vmem:[%s13553_s10 + $0x78] sm:$0xff] }
 0x378   : > { %3708 = vst.msk [vmem:[#allocation2 + $0x138] sm:$0xff] %vm686_vm2, %v3639_v23  ;;  %v3571_v40 = vadd.f32 %v12407_v27, %v3495_v30  ;;  %v9855_v18 = vadd.f32 %v3240_v54, %v11876_v42  ;;  %v9261_v37 = vpop.f32.mrb[83].mxu0  ;;  %v3843_v32 = vmax.f32 %v3773_v63, %v12426_v34  ;;  %v4008_v16 = vsel %vm3941_vm3, %v4005_v31, %v4007_v3  ;;  %v4211_v42 = vld [vmem:[%s13553_s10 + $0x30] sm:$0xff] }
 0x379   : > { %9641 = vmatprep.subr.bf16.mxu1 %v9640_v50  ;;  %v4171_v12 = vmax.f32 %v3841_v47, %v4008_v16 }
 0x37a   : > { %v3640_v28 = vmax.f32 %v3571_v40, 0.0  ;;  %v3496_v24 = vmul.f32 %v12400_v21, %v9855_v18  ;;  %v4009_v0 = vrot.slane %v3843_v32, 1  ;;  %9643 = vmatpush3.bf16.msra.mxu1 %v9642_v52  ;;  %v4225_v52 = vld [vmem:[%s13553_s10 + $0xa0] sm:$0xff]  ;;  %v4231_v18 = vld [vmem:[%s13553_s10 + $0xd0] sm:$0xff] }
 0x37b   : > { %v3245_v58 = vpop.f32.mrb[84].mxu0  ;;  %v12440_v41 = vld [vmem:[#allocation2 + $0x130] sm:$0xff] }
 0x37c   : > { %3709 = vst.msk [vmem:[#allocation2 + $0x140] sm:$0xff] %vm686_vm2, %v3640_v28  ;;  %v3572_v63 = vadd.f32 %v12407_v27, %v3496_v24  ;;  %v9856_v48 = vadd.f32 %v3245_v58, %v11882_v13  ;;  %v9264_v59 = vpop.f32.mrb[85].mxu0  ;;  %v4010_v29 = vsel %vm3941_vm3, %v4007_v3, %v4009_v0  ;;  %v3844_v4 = vmax.f32 %v3774_v1, %v12440_v41  ;;  %v4216_v1 = vld [vmem:[%s13553_s10 + $0x58] sm:$0xff]  ;;  %v4230_v24 = vld [vmem:[%s13553_s10 + $0xc8] sm:$0xff] }
 0x37d   : > { %4402 = vmatmul.mubr.f32.vlgmr.msra.gmra.mrb[138].mxu1 %v4205_v46  ;;  %v4172_v35 = vmax.f32 %v3842_v11, %v4010_v29  ;;  %v4236_v46 = vld [vmem:[%s13553_s10 + $0xf8] sm:$0xff] }
 0x37e   : > { %v3641_v9 = vmax.f32 %v3572_v63, 0.0  ;;  %v3497_v56 = vmul.f32 %v12400_v21, %v9856_v48  ;;  %4406 = vmatprep.mubr.f32.mxu1 %v4211_v42  ;;  %v4011_v33 = vrot.slane %v3844_v4, 1  ;;  %v13645_v42 = vld [vmem:[#allocation7_spill] sm:$0xff] }
 0x37f   : > { %v3250_v17 = vpop.f32.mrb[86].mxu0  ;;  %v12451_v45 = vld [vmem:[#allocation2 + $0x138] sm:$0xff]  ;;  %v12453_v13 = vpack.c.bf16 %v4172_v35, %v4171_v12 }
 0x380   : > { %3710 = vst.msk [vmem:[#allocation2 + $0x148] sm:$0xff] %vm686_vm2, %v3641_v9  ;;  %v3573_v49 = vadd.f32 %v12407_v27, %v3497_v56  ;;  %v9857_v55 = vadd.f32 %v3250_v17, %v11888_v61  ;;  %v9267_v47 = vpop.f32.mrb[87].mxu0  ;;  %v12462_v62 = vmax.f32 %v3775_v57, %v12451_v45  ;;  %v4012_v43 = vsel %vm3941_vm3, %v4009_v0, %v4011_v33  ;;  %v4221_v61 = vld [vmem:[%s13553_s10 + $0x80] sm:$0xff] }
 0x381   : > { %4407 = vmatmul.mubr.f32.gmra.mrb[140].mxu1 %v4210_v38  ;;  %v4173_v22 = vmax.f32 %v3843_v32, %v4012_v43  ;;  %v4241_v9 = vld [vmem:[%s13553_s10 + $0x120] sm:$0xff]  ;;  %v13646_v38 = vld [vmem:[#allocation8_spill] sm:$0xff] }
 0x382   : > { %v3642_v51 = vmax.f32 %v3573_v49, 0.0  ;;  %v3498_v53 = vmul.f32 %v12400_v21, %v9857_v55  ;;  %4411 = vmatprep.mubr.f32.mxu1 %v4216_v1  ;;  %v4013_v31 = vrot.slane %v12462_v62, 1  ;;  %v4240_v55 = vld [vmem:[%s13553_s10 + $0x118] sm:$0xff]  ;;  %v4246_v43 = vld [vmem:[%s13553_s10 + $0x148] sm:$0xff] }
 0x383   : > { %v3255_v10 = vpop.f32.mrb[88].mxu0 }
 0x384   : > { %3711 = vst.msk [vmem:[#allocation2 + $0x150] sm:$0xff] %vm686_vm2, %v3642_v51  ;;  %v3574_v39 = vadd.f32 %v12407_v27, %v3498_v53  ;;  %v9858_v57 = vadd.f32 %v3255_v10, %v11894_v2  ;;  %v9270_v60 = vpop.f32.mrb[89].mxu0  ;;  %v4014_v7 = vsel %vm3941_vm3, %v4011_v33, %v4013_v31  ;;  %v4226_v2 = vld [vmem:[%s13553_s10 + $0xa8] sm:$0xff]  ;;  %v13647_v51 = vld [vmem:[#allocation9_spill] sm:$0xff] }
 0x385   : > { %4412 = vmatmul.mubr.f32.gmra.mrb[142].mxu1 %v4215_v19  ;;  %v4174_v44 = vmax.f32 %v3844_v4, %v4014_v7  ;;  %v4235_v4 = vld [vmem:[%s13553_s10 + $0xf0] sm:$0xff] }
 0x386   : > { %v3643_v20 = vmax.f32 %v3574_v39, 0.0  ;;  %v3499_v11 = vmul.f32 %v12400_v21, %v9858_v57  ;;  %4416 = vmatprep.mubr.f32.mxu1 %v4221_v61  ;;  %v4245_v39 = vld [vmem:[%s13553_s10 + $0x140] sm:$0xff]  ;;  %v4251_v60 = vld [vmem:[%s13553_s10 + $0x170] sm:$0xff] }
 0x387   : > { %v3260_v26 = vpop.f32.mrb[90].mxu0  ;;  %v12483_v25 = vpack.c.bf16 %v4174_v44, %v4173_v22 }
 0x388   : > { %3712 = vst.msk [vmem:[#allocation2 + $0x158] sm:$0xff] %vm686_vm2, %v3643_v20  ;;  %v3575_v23 = vadd.f32 %v12407_v27, %v3499_v11  ;;  %v9859_v30 = vadd.f32 %v3260_v26, %v11900_v5  ;;  %v9273_v3 = vpop.f32.mrb[91].mxu0  ;;  %v13644_v5 = vld [vmem:[#allocation6_spill] sm:$0xff]  ;;  %v4250_v26 = vld [vmem:[%s13553_s10 + $0x168] sm:$0xff] }
 0x389   : > { %4417 = vmatmul.mubr.f32.gmra.mrb[144].mxu1 %v4220_v36 }
 0x38a   : > { %v3644_v54 = vmax.f32 %v3575_v23, 0.0  ;;  %v3500_v50 = vmul.f32 %v12400_v21, %v9859_v30  ;;  %4421 = vmatprep.mubr.f32.mxu1 %v4226_v2  ;;  %v4256_v23 = vld [vmem:[%s13553_s10 + $0x198] sm:$0xff] }
 0x38b   : > { %v3265_v40 = vpop.f32.mrb[92].mxu0 }
 0x38c   : > { %3713 = vst.msk [vmem:[#allocation2 + $0x160] sm:$0xff] %vm686_vm2, %v3644_v54  ;;  %v3576_v37 = vadd.f32 %v12407_v27, %v3500_v50  ;;  %v9860_v32 = vadd.f32 %v3265_v40, %v13644_v5  ;;  %v9276_v16 = vpop.f32.mrb[93].mxu0 }
 0x38d   : > { %4422 = vmatmul.mubr.f32.gmra.mrb[146].mxu1 %v4225_v52  ;;  %v4255_v52 = vld [vmem:[%s13553_s10 + $0x190] sm:$0xff] }
 0x38e   : > { %v3645_v12 = vmax.f32 %v3576_v37, 0.0  ;;  %v3501_v28 = vmul.f32 %v12400_v21, %v9860_v32  ;;  %4426 = vmatprep.mubr.f32.mxu1 %v4231_v18  ;;  %v4261_v18 = vld [vmem:[%s13553_s10 + $0x1c0] sm:$0xff] }
 0x38f   : > { %v3270_v0 = vpop.f32.mrb[94].mxu0 }
 0x390   : > { %3714 = vst.msk [vmem:[#allocation2 + $0x168] sm:$0xff] %vm686_vm2, %v3645_v12  ;;  %v3577_v58 = vadd.f32 %v12407_v27, %v3501_v28  ;;  %v9861_v63 = vadd.f32 %v3270_v0, %v13645_v42  ;;  %v9279_v48 = vpop.f32.mrb[95].mxu0  ;;  %v4260_v12 = vld [vmem:[%s13553_s10 + $0x1b8] sm:$0xff] }
 0x391   : > { %4427 = vmatmul.mubr.f32.gmra.mrb[148].mxu1 %v4230_v24  ;;  %v4266_v24 = vld [vmem:[%s13553_s10 + $0x1e8] sm:$0xff] }
 0x392   : > { %v3646_v59 = vmax.f32 %v3577_v58, 0.0  ;;  %v3502_v29 = vmul.f32 %v12400_v21, %v9861_v63  ;;  %4431 = vmatprep.mubr.f32.mxu1 %v4236_v46  ;;  %v4265_v63 = vld [vmem:[%s13553_s10 + $0x1e0] sm:$0xff] }
 0x393   : > { %v3275_v35 = vpop.f32.mrb[96].mxu0 }
 0x394   : > { %3715 = vst.msk [vmem:[#allocation2 + $0x170] sm:$0xff] %vm686_vm2, %v3646_v59  ;;  %v3578_v56 = vadd.f32 %v12407_v27, %v3502_v29  ;;  %v9862_v33 = vadd.f32 %v3275_v35, %v13646_v38  ;;  %v9282_v17 = vpop.f32.mrb[97].mxu0  ;;  %v4271_v59 = vld [vmem:[%s13553_s10 + $0x210] sm:$0xff]  ;;  %v4270_v38 = vld [vmem:[%s13553_s10 + $0x208] sm:$0xff] }
 0x395   : > { %4432 = vmatmul.mubr.f32.gmra.mrb[150].mxu1 %v4235_v4  ;;  %v4276_v17 = vld [vmem:[%s13553_s10 + $0x238] sm:$0xff] }
 0x396   : > { %v3647_v1 = vmax.f32 %v3578_v56, 0.0  ;;  %v3503_v49 = vmul.f32 %v12400_v21, %v9862_v33  ;;  %4436 = vmatprep.mubr.f32.mxu1 %v4241_v9 }
 0x397   : > { %v3280_v47 = vpop.f32.mrb[98].mxu0 }
 0x398   : > { %3716 = vst.msk [vmem:[#allocation2 + $0x178] sm:$0xff] %vm686_vm2, %v3647_v1  ;;  %v3579_v22 = vadd.f32 %v12407_v27, %v3503_v49  ;;  %v9863_v53 = vadd.f32 %v3280_v47, %v13647_v51  ;;  %v9285_v19 = vpop.f32.mrb[99].mxu0  ;;  %v13649_v49 = vld [vmem:[#allocation11_spill] sm:$0xff] }
 0x399   : > { %4437 = vmatmul.mubr.f32.gmra.mrb[152].mxu1 %v4240_v55  ;;  %v4281_v19 = vld [vmem:[%s13553_s10 + $0x260] sm:$0x1] }
 0x39a   : > { %v3648_v10 = vmax.f32 %v3579_v22, 0.0  ;;  %v3504_v61 = vmul.f32 %v12400_v21, %v9863_v53  ;;  %4441 = vmatprep.mubr.f32.mxu1 %v4246_v43  ;;  %v4275_v53 = vld [vmem:[%s13553_s10 + $0x230] sm:$0xff] }
 0x39b   : > { %v3285_v57 = vpop.f32.mrb[100].mxu0 }
 0x39c   : > { %3717 = vst.msk [vmem:[#allocation2 + $0x180] sm:$0xff] %vm686_vm2, %v3648_v10  ;;  %v3580_v7 = vadd.f32 %v12407_v27, %v3504_v61  ;;  %v9864_v44 = vadd.f32 %v3285_v57, %v11945_v8  ;;  %v9288_v20 = vpop.f32.mrb[101].mxu0 }
 0x39d   : > { %4442 = vmatmul.mubr.f32.gmra.mrb[154].mxu1 %v4245_v39 }
 0x39e   : > { %v3649_v11 = vmax.f32 %v3580_v7, 0.0  ;;  %v3505_v36 = vmul.f32 %v12400_v21, %v9864_v44  ;;  %4446 = vmatprep.mubr.f32.mxu1 %v4251_v60  ;;  %v13650_v7 = vld [vmem:[#allocation12_spill] sm:$0xff] }
 0x39f   : > { %v3290_v2 = vpop.f32.mrb[102].mxu0 }
 0x3a0   : > { %3718 = vst.msk [vmem:[#allocation2 + $0x188] sm:$0xff] %vm686_vm2, %v3649_v11  ;;  %v3581_v30 = vadd.f32 %v12407_v27, %v3505_v36  ;;  %v9865_v8 = vadd.f32 %v3290_v2, %v11955_v6  ;;  %v9291_v3 = vpop.f32.mrb[103].mxu0 }
 0x3a1   : > { %4447 = vmatmul.mubr.f32.gmra.mrb[156].mxu1 %v4250_v26 }
 0x3a2   : > { %v3650_v54 = vmax.f32 %v3581_v30, 0.0  ;;  %v3506_v50 = vmul.f32 %v12400_v21, %v9865_v8  ;;  %4451 = vmatprep.mubr.f32.mxu1 %v4256_v23  ;;  %v4280_v30 = vld [vmem:[%s13553_s10 + $0x258] sm:$0x1] }
 0x3a3   : > { %v3295_v40 = vpop.f32.mrb[104].mxu0  ;;  %v12598_v61 = vld [vmem:[#allocation2 + $0x180] sm:$0xff] }
 0x3a4   : > { %3719 = vst.msk [vmem:[#allocation2 + $0x190] sm:$0xff] %vm686_vm2, %v3650_v54  ;;  %v3582_v37 = vadd.f32 %v12407_v27, %v3506_v50  ;;  %v9866_v6 = vadd.f32 %v3295_v40, %v11965_v14  ;;  %v9294_v5 = vpop.f32.mrb[105].mxu0  ;;  %v4208_v50 = vld [vmem:[%s13553_s10 + $0x18] sm:$0xff]  ;;  %v13651_v40 = vld [vmem:[#allocation13_spill] sm:$0xff] }
 0x3a5   : > { %4452 = vmatmul.mubr.f32.gmra.mrb[158].mxu1 %v4255_v52 }
 0x3a6   : > { %v3651_v32 = vmax.f32 %v3582_v37, 0.0  ;;  %v3507_v16 = vmul.f32 %v12400_v21, %v9866_v6  ;;  %4456 = vmatprep.mubr.f32.mxu1 %v4261_v18 }
 0x3a7   : > { %v3300_v28 = vpop.f32.mrb[106].mxu0  ;;  %v12600_v39 = vld [vmem:[#allocation2 + $0x188] sm:$0xff] }
 0x3a8   : > { %3720 = vst.msk [vmem:[#allocation2 + $0x198] sm:$0xff] %vm686_vm2, %v3651_v32  ;;  %v3583_v0 = vadd.f32 %v12407_v27, %v3507_v16  ;;  %v9867_v14 = vadd.f32 %v3300_v28, %v11975_v15  ;;  %v9297_v46 = vpop.f32.mrb[107].mxu0  ;;  %v13648_v15 = vld [vmem:[#allocation10_spill] sm:$0xff] }
 0x3a9   : > { %4457 = vmatmul.mubr.f32.gmra.mrb[160].mxu1 %v4260_v12  ;;  %v13652_v46 = vld [vmem:[#allocation14_spill] sm:$0xff] }
 0x3aa   : > { %v3652_v58 = vmax.f32 %v3583_v0, 0.0  ;;  %v3508_v42 = vmul.f32 %v12400_v21, %v9867_v14  ;;  %4461 = vmatprep.mubr.f32.mxu1 %v4266_v24 }
 0x3ab   : > { %v3305_v48 = vpop.f32.mrb[108].mxu0  ;;  %v12613_v3 = vld [vmem:[#allocation2 + $0x190] sm:$0xff] }
 0x3ac   : > { %3721 = vst.msk [vmem:[#allocation2 + $0x1a0] sm:$0xff] %vm686_vm2, %v3652_v58  ;;  %v3584_v29 = vadd.f32 %v12407_v27, %v3508_v42  ;;  %v9868_v4 = vadd.f32 %v3305_v48, %v13648_v15  ;;  %v9300_v35 = vpop.f32.mrb[109].mxu0 }
 0x3ad   : > { %4462 = vmatmul.mubr.f32.gmra.mrb[162].mxu1 %v4265_v63 }
 0x3ae   : > { %v3653_v9 = vmax.f32 %v3584_v29, 0.0  ;;  %v3509_v56 = vmul.f32 %v12400_v21, %v9868_v4  ;;  %4466 = vmatprep.mubr.f32.mxu1 %v4271_v59  ;;  %v12631_v59 = vld [vmem:[#allocation2 + $0x148] sm:$0xff] }
 0x3af   : > { %v3310_v33 = vpop.f32.mrb[110].mxu0  ;;  %v3790_v43 = vld [vmem:[#allocation2 + $0x198] sm:$0xff] }
 0x3b0   : > { %3722 = vst.msk [vmem:[#allocation2 + $0x1a8] sm:$0xff] %vm686_vm2, %v3653_v9  ;;  %v3585_v1 = vadd.f32 %v12407_v27, %v3509_v56  ;;  %v9869_v55 = vadd.f32 %v3310_v33, %v13649_v49  ;;  %v9303_v47 = vpop.f32.mrb[111].mxu0  ;;  %v12606_v11 = vmax.f32 %v12598_v61, %v3790_v43  ;;  %v3779_v56 = vld [vmem:[#allocation2 + $0x140] sm:$0xff] }
 0x3b1   : > { %4467 = vmatmul.mubr.f32.gmra.mrb[164].mxu1 %v4270_v38 }
 0x3b2   : > { %v3654_v22 = vmax.f32 %v3585_v1, 0.0  ;;  %v3510_v51 = vmul.f32 %v12400_v21, %v9869_v55  ;;  %4471 = vmatprep.mubr.f32.mxu1 %v4276_v17  ;;  %v4037_v5 = vrot.slane %v12606_v11, 1  ;;  %v12637_v1 = vmax.f32 %v12440_v41, %v12631_v59  ;;  %v13653_v55 = vld [vmem:[#allocation15_spill] sm:$0xff] }
 0x3b3   : > { %v3315_v10 = vpop.f32.mrb[112].mxu0  ;;  %v3791_v57 = vld [vmem:[#allocation2 + $0x1a0] sm:$0xff] }
 0x3b4   : > { %3723 = vst.msk [vmem:[#allocation2 + $0x1b0] sm:$0xff] %vm686_vm2, %v3654_v22  ;;  %v3586_v60 = vadd.f32 %v12407_v27, %v3510_v51  ;;  %v9870_v44 = vadd.f32 %v3315_v10, %v13650_v7  ;;  %v9306_v20 = vpop.f32.mrb[113].mxu0  ;;  %v3858_v36 = vmax.f32 %v12600_v39, %v3791_v57  ;;  %v12645_v51 = vmax.f32 %v12426_v34, %v3779_v56 }
 0x3b5   : > { %4472 = vmatmul.mubr.f32.gmra.mrb[166].mxu1 %v4275_v53  ;;  %v13654_v20 = vld [vmem:[#allocation16_spill] sm:$0xff] }
 0x3b6   : > { %v3655_v26 = vmax.f32 %v3586_v60, 0.0  ;;  %v3511_v2 = vmul.f32 %v12400_v21, %v9870_v44  ;;  %v4039_v23 = vrot.slane %v3858_v36, 1  ;;  %4476 = vmatprep.mubr.f32.mxu1 %v4281_v19  ;;  %v4017_v44 = vrot.slane %v12637_v1, 1 }
 0x3b7   : > { %v3320_v8 = vpop.f32.mrb[114].mxu0  ;;  %v3792_v54 = vld [vmem:[#allocation2 + $0x1a8] sm:$0xff] }
 0x3b8   : > { %3724 = vst.msk [vmem:[#allocation2 + $0x1b8] sm:$0xff] %vm686_vm2, %v3655_v26  ;;  %v3587_v52 = vadd.f32 %v12407_v27, %v3511_v2  ;;  %v9871_v18 = vadd.f32 %v3320_v8, %v13651_v40  ;;  %v9309_v37 = vpop.f32.mrb[115].mxu0  ;;  %v3859_v6 = vmax.f32 %v12613_v3, %v3792_v54  ;;  %v4040_v12 = vsel %vm3941_vm3, %v4037_v5, %v4039_v23 }
 0x3b9   : > { %4477 = vmatmul.mubr.f32.gmra.mrb[168].mxu1 %v4280_v30  ;;  %v4187_v29 = vmax.f32 %v12606_v11, %v4040_v12  ;;  %v4015_v8 = vrot.slane %v12645_v51, 1 }
 0x3ba   : > { %v3656_v32 = vmax.f32 %v3587_v52, 0.0  ;;  %v3512_v16 = vmul.f32 %v12400_v21, %v9871_v18  ;;  %v4041_v28 = vrot.slane %v3859_v6, 1  ;;  %4546 = vmatprep.mubr.f32.mxu1 %v4208_v50  ;;  %v3781_v52 = vld [vmem:[#allocation2 + $0x150] sm:$0xff] }
 0x3bb   : > { %v3325_v24 = vpop.f32.mrb[116].mxu0  ;;  %v3793_v0 = vld [vmem:[#allocation2 + $0x1b0] sm:$0xff] }
 0x3bc   : > { %3725 = vst.msk [vmem:[#allocation2 + $0x1c0] sm:$0xff] %vm686_vm2, %v3656_v32  ;;  %v3588_v14 = vadd.f32 %v12407_v27, %v3512_v16  ;;  %v9872_v58 = vadd.f32 %v3325_v24, %v13652_v46  ;;  %v9312_v42 = vpop.f32.mrb[117].mxu0  ;;  %v4042_v63 = vsel %vm3941_vm3, %v4039_v23, %v4041_v28  ;;  %v3860_v48 = vmax.f32 %v3790_v43, %v3793_v0  ;;  %v12656_v23 = vld [vmem:[#allocation2 + $0x158] sm:$0xff] }
 0x3bd   : > { %v4188_v15 = vmax.f32 %v3858_v36, %v4042_v63  ;;  %v12663_v12 = vmax.f32 %v3779_v56, %v12656_v23  ;;  %v4018_v46 = vsel %vm3941_vm3, %v4015_v8, %v4017_v44  ;;  %v12678_v42 = vmax.f32 %v12451_v45, %v3781_v52  ;;  %v13656_v56 = vld [vmem:[#allocation18_spill] sm:$0xff] }
 0x3be   : > { %v3657_v4 = vmax.f32 %v3588_v14, 0.0  ;;  %v3513_v35 = vmul.f32 %v12400_v21, %v9872_v58  ;;  %v4043_v9 = vrot.slane %v3860_v48, 1  ;;  %v4016_v58 = vsel %vm3941_vm3, %v4013_v31, %v4015_v8  ;;  %v12688_v31 = vld [vmem:[#allocation2 + $0x168] sm:$0xff] }
 0x3bf   : > { %v3330_v38 = vpop.f32.mrb[118].mxu0  ;;  %v3794_v33 = vld [vmem:[#allocation2 + $0x1b8] sm:$0xff]  ;;  %v9644_v17 = vpack.c.bf16 %v4188_v15, %v4187_v29 }
 0x3c0   : > { %3726 = vst.msk [vmem:[#allocation2 + $0x1c8] sm:$0xff] %vm686_vm2, %v3657_v4  ;;  %v3589_v49 = vadd.f32 %v12407_v27, %v3513_v35  ;;  %v9873_v47 = vadd.f32 %v3330_v38, %v13653_v55  ;;  %v9315_v43 = vpop.f32.mrb[119].mxu0  ;;  %v12642_v22 = vmax.f32 %v3791_v57, %v3794_v33  ;;  %v4044_v41 = vsel %vm3941_vm3, %v4041_v28, %v4043_v9 }
 0x3c1   : > { %9645 = vmatprep.subr.bf16.mxu1 %v9644_v17  ;;  %v4176_v4 = vmax.f32 %v12645_v51, %v4018_v46  ;;  %v4175_v43 = vmax.f32 %v12462_v62, %v4016_v58  ;;  %v4019_v51 = vrot.slane %v12678_v42, 1  ;;  %v13657_v62 = vld [vmem:[#allocation19_spill] sm:$0xff]  ;;  %v12729_v58 = vld [vmem:[#allocation2 + $0x178] sm:$0xff] }
 0x3c2   : > { %v3658_v53 = vmax.f32 %v3589_v49, 0.0  ;;  %v3514_v19 = vmul.f32 %v12400_v21, %v9873_v47  ;;  %9647 = vmatpush3.bf16.msra.mxu1 %v12453_v13  ;;  %v4045_v10 = vrot.slane %v12642_v22, 1  ;;  %v4189_v13 = vmax.f32 %v3859_v6, %v4044_v41  ;;  %v13655_v6 = vld [vmem:[#allocation17_spill] sm:$0xff] }
 0x3c3   : > { %v3335_v60 = vpop.f32.mrb[120].mxu0  ;;  %v3795_v7 = vld [vmem:[#allocation2 + $0x1c0] sm:$0xff] }
 0x3c4   : > { %3727 = vst.msk [vmem:[#allocation2 + $0x1d0] sm:$0xff] %vm686_vm2, %v3658_v53  ;;  %v3590_v57 = vadd.f32 %v12407_v27, %v3514_v19  ;;  %v9874_v34 = vadd.f32 %v3335_v60, %v13654_v20  ;;  %v9318_v36 = vpop.f32.mrb[121].mxu0  ;;  %v4046_v26 = vsel %vm3941_vm3, %v4043_v9, %v4045_v10  ;;  %v3862_v2 = vmax.f32 %v3792_v54, %v3795_v7 }
 0x3c5   : > { %v4190_v30 = vmax.f32 %v3860_v48, %v4046_v26  ;;  %v4021_v9 = vrot.slane %v12663_v12, 1  ;;  %v12700_v60 = vmax.f32 %v3781_v52, %v12688_v31 }
 0x3c6   : > { %v3659_v50 = vmax.f32 %v3590_v57, 0.0  ;;  %v3515_v40 = vmul.f32 %v12400_v21, %v9874_v34  ;;  %v4047_v18 = vrot.slane %v3862_v2, 1 }
 0x3c7   : > { %v3340_v37 = vpop.f32.mrb[122].mxu0  ;;  %v12660_v32 = vld [vmem:[#allocation2 + $0x1c8] sm:$0xff]  ;;  %v9648_v16 = vpack.c.bf16 %v4190_v30, %v4189_v13  ;;  %v4022_v13 = vsel %vm3941_vm3, %v4019_v51, %v4021_v9  ;;  %v4020_v30 = vsel %vm3941_vm3, %v4017_v44, %v4019_v51 }
 0x3c8   : > { %3728 = vst.msk [vmem:[#allocation2 + $0x1d8] sm:$0xff] %vm686_vm2, %v3659_v50  ;;  %v3591_v54 = vadd.f32 %v12407_v27, %v3515_v40  ;;  %v9875_v28 = vadd.f32 %v3340_v37, %v13655_v6  ;;  %v9321_v24 = vpop.f32.mrb[123].mxu0  ;;  %v12669_v14 = vmax.f32 %v3793_v0, %v12660_v32  ;;  %v4048_v0 = vsel %vm3941_vm3, %v4045_v10, %v4047_v18  ;;  %v3783_v10 = vld [vmem:[#allocation2 + $0x160] sm:$0xff] }
 0x3c9   : > { %9649 = vmatprep.subr.bf16.mxu1 %v9648_v16  ;;  %v4191_v55 = vmax.f32 %v12642_v22, %v4048_v0  ;;  %v12717_v8 = vmax.f32 %v12631_v59, %v3783_v10  ;;  %v4178_v16 = vmax.f32 %v12678_v42, %v4022_v13  ;;  %v13658_v59 = vld [vmem:[#allocation20_spill] sm:$0xff]  ;;  %v4177_v0 = vmax.f32 %v12637_v1, %v4020_v30  ;;  %v13659_v1 = vld [vmem:[#allocation21_spill] sm:$0xff] }
 0x3ca   : > { %v3660_v63 = vmax.f32 %v3591_v54, 0.0  ;;  %v3516_v48 = vmul.f32 %v12400_v21, %v9875_v28  ;;  %9651 = vmatpush3.bf16.msra.mxu1 %v12483_v25  ;;  %v4049_v29 = vrot.slane %v12669_v14, 1 }
 0x3cb   : > { %v3345_v15 = vpop.f32.mrb[124].mxu0  ;;  %v12685_v35 = vld [vmem:[#allocation2 + $0x1d0] sm:$0xff]  ;;  %v4023_v42 = vrot.slane %v12717_v8, 1 }
 0x3cc   : > { %3729 = vst.msk [vmem:[#allocation2 + $0x1e0] sm:$0xff] %vm686_vm2, %v3660_v63  ;;  %v3592_v45 = vadd.f32 %v12407_v27, %v3516_v48  ;;  %v9876_v38 = vadd.f32 %v3345_v15, %v13656_v56  ;;  %v9324_v25 = vpop.f32.mrb[125].mxu0  ;;  %v4050_v17 = vsel %vm3941_vm3, %v4047_v18, %v4049_v29  ;;  %v3864_v49 = vmax.f32 %v3794_v33, %v12685_v35 }
 0x3cd   : > { %v4192_v47 = vmax.f32 %v3862_v2, %v4050_v17  ;;  %v9654_v33 = vpack.c.bf16 %v4176_v4, %v4175_v43  ;;  %v4025_v18 = vrot.slane %v12700_v60, 1  ;;  %v9658_v17 = vpack.c.bf16 %v4178_v16, %v4177_v0 }
 0x3ce   : > { %v3661_v53 = vmax.f32 %v3592_v45, 0.0  ;;  %v3517_v19 = vmul.f32 %v12400_v21, %v9876_v38  ;;  %v4051_v41 = vrot.slane %v3864_v49, 1  ;;  %v4024_v51 = vsel %vm3941_vm3, %v4021_v9, %v4023_v42 }
 0x3cf   : > { %v3350_v57 = vpop.f32.mrb[126].mxu0  ;;  %v12702_v20 = vld [vmem:[#allocation2 + $0x1d8] sm:$0xff]  ;;  %v9652_v34 = vpack.c.bf16 %v4192_v47, %v4191_v55  ;;  %v4026_v43 = vsel %vm3941_vm3, %v4023_v42, %v4025_v18 }
 0x3d0   : > { %3730 = vst.msk [vmem:[#allocation2 + $0x1e8] sm:$0xff] %vm686_vm2, %v3661_v53  ;;  %v3593_v22 = vadd.f32 %v12407_v27, %v3517_v19  ;;  %v9877_v36 = vadd.f32 %v3350_v57, %v13657_v62  ;;  %v9327_v26 = vpop.f32.mrb[127].mxu0  ;;  %v12708_v2 = vmax.f32 %v3795_v7, %v12702_v20  ;;  %v4052_v40 = vsel %vm3941_vm3, %v4049_v29, %v4051_v41  ;;  %v3785_v29 = vld [vmem:[#allocation2 + $0x170] sm:$0xff] }
 0x3d1   : > { %9653 = vmatprep.subr.bf16.mxu1 %v9652_v34  ;;  %v4193_v63 = vmax.f32 %v12669_v14, %v4052_v40  ;;  %v12754_v53 = vmax.f32 %v12656_v23, %v3785_v29  ;;  %v4180_v34 = vmax.f32 %v12717_v8, %v4026_v43  ;;  %v13660_v23 = vld [vmem:[#allocation22_spill] sm:$0xff] }
 0x3d2   : > { %v3662_v50 = vmax.f32 %v3593_v22, 0.0  ;;  %v3518_v52 = vmul.f32 %v12400_v21, %v9877_v36  ;;  %9655 = vmatpush3.bf16.msra.mxu1 %v9654_v33  ;;  %v4053_v7 = vrot.slane %v12708_v2, 1 }
 0x3d3   : > { %v3355_v37 = vpop.f32.mrb[128].mxu0  ;;  %v3799_v54 = vld [vmem:[#allocation2 + $0x1e0] sm:$0xff] }
 0x3d4   : > { %3731 = vst.msk [vmem:[#allocation2 + $0x1f0] sm:$0xff] %vm686_vm2, %v3662_v50  ;;  %v3594_v44 = vadd.f32 %v12407_v27, %v3518_v52  ;;  %v9878_v6 = vadd.f32 %v3355_v37, %v13658_v59  ;;  %v9330_v28 = vpop.f32.mrb[129].mxu0  ;;  %v4054_v24 = vsel %vm3941_vm3, %v4051_v41, %v4053_v7  ;;  %v3866_v46 = vmax.f32 %v12660_v32, %v3799_v54 }
 0x3d5   : > { %v4194_v48 = vmax.f32 %v3864_v49, %v4054_v24  ;;  %v12738_v32 = vmax.f32 %v3783_v10, %v12729_v58  ;;  %v4179_v52 = vmax.f32 %v12663_v12, %v4024_v51  ;;  %v4027_v37 = vrot.slane %v12754_v53, 1 }
 0x3d6   : > { %v3663_v15 = vmax.f32 %v3594_v44, 0.0  ;;  %v3519_v4 = vmul.f32 %v12400_v21, %v9878_v6  ;;  %v4055_v45 = vrot.slane %v3866_v46, 1 }
 0x3d7   : > { %v3360_v56 = vpop.f32.mrb[130].mxu0  ;;  %v12735_v38 = vld [vmem:[#allocation2 + $0x1e8] sm:$0xff]  ;;  %v9656_v25 = vpack.c.bf16 %v4194_v48, %v4193_v63  ;;  %v4029_v22 = vrot.slane %v12738_v32, 1  ;;  %v9662_v6 = vpack.c.bf16 %v4180_v34, %v4179_v52  ;;  %v12777_v63 = vmax.f32 %v3785_v29, %v12600_v39 }
 0x3d8   : > { %3732 = vst.msk [vmem:[#allocation2 + $0x1f8] sm:$0xff] %vm686_vm2, %v3663_v15  ;;  %v3595_v14 = vadd.f32 %v12407_v27, %v3519_v4  ;;  %v9879_v49 = vadd.f32 %v3360_v56, %v13659_v1  ;;  %v9333_v55 = vpop.f32.mrb[131].mxu0  ;;  %v12745_v47 = vmax.f32 %v12685_v35, %v12735_v38  ;;  %v4056_v10 = vsel %vm3941_vm3, %v4053_v7, %v4055_v45 }
 0x3d9   : > { %9657 = vmatprep.subr.bf16.mxu1 %v9656_v25  ;;  %v4195_v30 = vmax.f32 %v12708_v2, %v4056_v10  ;;  %v4030_v12 = vsel %vm3941_vm3, %v4027_v37, %v4029_v22  ;;  %v3854_v4 = vmax.f32 %v12688_v31, %v12598_v61  ;;  %v13662_v25 = vld [vmem:[#allocation24_spill] sm:$0xff]  ;;  %v4033_v61 = vrot.slane %v12777_v63, 1 }
 0x3da   : > { %v3664_v19 = vmax.f32 %v3595_v14, 0.0  ;;  %v3520_v41 = vmul.f32 %v12400_v21, %v9879_v49  ;;  %9659 = vmatpush3.bf16.msra.mxu1 %v9658_v17  ;;  %v4057_v35 = vrot.slane %v12745_v47, 1  ;;  %v4182_v56 = vmax.f32 %v12754_v53, %v4030_v12 }
 0x3db   : > { %v3365_v57 = vpop.f32.mrb[132].mxu0  ;;  %v3801_v33 = vld [vmem:[#allocation2 + $0x1f0] sm:$0xff] }
 0x3dc   : > { %3733 = vst.msk [vmem:[#allocation2 + $0x200] sm:$0xff] %vm686_vm2, %v3664_v19  ;;  %v3596_v9 = vadd.f32 %v12407_v27, %v3520_v41  ;;  %v9880_v62 = vadd.f32 %v3365_v57, %v13660_v23  ;;  %v9336_v36 = vpop.f32.mrb[133].mxu0  ;;  %v4058_v26 = vsel %vm3941_vm3, %v4055_v45, %v4057_v35  ;;  %v3868_v13 = vmax.f32 %v12702_v20, %v3801_v33  ;;  %v13661_v20 = vld [vmem:[#allocation23_spill] sm:$0xff] }
 0x3dd   : > { %v4196_v50 = vmax.f32 %v3866_v46, %v4058_v26  ;;  %v4031_v19 = vrot.slane %v3854_v4, 1 }
 0x3de   : > { %v3665_v8 = vmax.f32 %v3596_v9, 0.0  ;;  %v3521_v40 = vmul.f32 %v12400_v21, %v9880_v62  ;;  %v4059_v7 = vrot.slane %v3868_v13, 1  ;;  %v3856_v62 = vmax.f32 %v12729_v58, %v12613_v3 }
 0x3df   : > { %v3370_v16 = vpop.f32.mrb[134].mxu0  ;;  %v3802_v44 = vld [vmem:[#allocation2 + $0x1f8] sm:$0xff]  ;;  %v9660_v59 = vpack.c.bf16 %v4196_v50, %v4195_v30 }
 0x3e0   : > { %3734 = vst.msk [vmem:[#allocation2 + $0x208] sm:$0xff] %vm686_vm2, %v3665_v8  ;;  %v3597_v28 = vadd.f32 %v12407_v27, %v3521_v40  ;;  %v9881_v24 = vadd.f32 %v3370_v16, %v13661_v20  ;;  %v9339_v2 = vpop.f32.mrb[135].mxu0  ;;  %v3869_v46 = vmax.f32 %v3799_v54, %v3802_v44  ;;  %v4060_v42 = vsel %vm3941_vm3, %v4057_v35, %v4059_v7 }
 0x3e1   : > { %9661 = vmatprep.subr.bf16.mxu1 %v9660_v59  ;;  %v4028_v54 = vsel %vm3941_vm3, %v4025_v18, %v4027_v37  ;;  %v4197_v31 = vmax.f32 %v12745_v47, %v4060_v42  ;;  %v4034_v47 = vsel %vm3941_vm3, %v4031_v19, %v4033_v61  ;;  %v4035_v40 = vrot.slane %v3856_v62, 1  ;;  %v4207_v42 = vld [vmem:[%s13553_s10 + $0x10] sm:$0xff] }
 0x3e2   : > { %v3666_v48 = vmax.f32 %v3597_v28, 0.0  ;;  %v3522_v0 = vmul.f32 %v12400_v21, %v9881_v24  ;;  %9663 = vmatpush3.bf16.msra.mxu1 %v9662_v6  ;;  %v4061_v15 = vrot.slane %v3869_v46, 1  ;;  %v4181_v51 = vmax.f32 %v12700_v60, %v4028_v54  ;;  %v4217_v54 = vld [vmem:[%s13553_s10 + $0x60] sm:$0xff] }
 0x3e3   : > { %v3375_v45 = vpop.f32.mrb[136].mxu0  ;;  %v3803_v39 = vld [vmem:[#allocation2 + $0x200] sm:$0xff]  ;;  %v4032_v60 = vsel %vm3941_vm3, %v4029_v22, %v4031_v19  ;;  %v4038_v3 = vsel %vm3941_vm3, %v4035_v40, %v4037_v5  ;;  %v4036_v16 = vsel %vm3941_vm3, %v4033_v61, %v4035_v40  ;;  %v4243_v61 = vld [vmem:[%s13553_s10 + $0x130] sm:$0xff]  ;;  %v4264_v40 = vld [vmem:[%s13553_s10 + $0x1d8] sm:$0xff] }
 0x3e4   : > { %3735 = vst.msk [vmem:[#allocation2 + $0x210] sm:$0xff] %vm686_vm2, %v3666_v48  ;;  %v3598_v29 = vadd.f32 %v12407_v27, %v3522_v0  ;;  %v9882_v17 = vadd.f32 %v3375_v45, %v13662_v25  ;;  %v9342_v14 = vpop.f32.mrb[137].mxu0  ;;  %v4062_v1 = vsel %vm3941_vm3, %v4059_v7, %v4061_v15  ;;  %v3870_v49 = vmax.f32 %v12735_v38, %v3803_v39  ;;  %v4218_v45 = vld [vmem:[%s13553_s10 + $0x68] sm:$0xff]  ;;  %v4227_v25 = vld [vmem:[%s13553_s10 + $0xb0] sm:$0xff]  ;;  %v4257_v19 = vld [vmem:[%s13553_s10 + $0x1a0] sm:$0xff] }
 0x3e5   : > { %v4198_v55 = vmax.f32 %v3868_v13, %v4062_v1  ;;  %v9666_v38 = vpack.c.bf16 %v4182_v56, %v4181_v51  ;;  %v4183_v30 = vmax.f32 %v12738_v32, %v4032_v60  ;;  %v4186_v6 = vmax.f32 %v3856_v62, %v4038_v3  ;;  %v4223_v56 = vld [vmem:[%s13553_s10 + $0x90] sm:$0xff]  ;;  %v4232_v14 = vld [vmem:[%s13553_s10 + $0xd8] sm:$0xff]  ;;  %v4238_v1 = vld [vmem:[%s13553_s10 + $0x108] sm:$0xff] }
 0x3e6   : > { %v3667_v18 = vmax.f32 %v3598_v29, 0.0  ;;  %v3523_v43 = vmul.f32 %v12400_v21, %v9882_v17  ;;  %v4063_v53 = vrot.slane %v3870_v49, 1  ;;  %v4185_v2 = vmax.f32 %v12777_v63, %v4036_v16  ;;  %v4213_v63 = vld [vmem:[%s13553_s10 + $0x40] sm:$0xff]  ;;  %v4228_v29 = vld [vmem:[%s13553_s10 + $0xb8] sm:$0xff]  ;;  %v4282_v60 = vld [vmem:[%s13553_s10 + $0x268] sm:$0x1] }
 0x3e7   : > { %v3805_v41 = vld [vmem:[#allocation2 + $0x208] sm:$0xff]  ;;  %v9664_v10 = vpack.c.bf16 %v4198_v55, %v4197_v31  ;;  %v4233_v17 = vld [vmem:[%s13553_s10 + $0xe0] sm:$0xff]  ;;  %v4248_v55 = vld [vmem:[%s13553_s10 + $0x158] sm:$0xff] }
 0x3e8   : > { %3736 = vst.msk [vmem:[#allocation2 + $0x218] sm:$0xff] %vm686_vm2, %v3667_v18  ;;  %v3599_v35 = vadd.f32 %v12407_v27, %v3523_v43  ;;  %v3871_v57 = vmax.f32 %v3801_v33, %v3805_v41  ;;  %v4064_v21 = vsel %vm3941_vm3, %v4061_v15, %v4063_v53  ;;  %v4184_v33 = vmax.f32 %v3854_v4, %v4034_v47  ;;  %v4212_v4 = vld [vmem:[%s13553_s10 + $0x38] sm:$0xff]  ;;  %v4242_v31 = vld [vmem:[%s13553_s10 + $0x128] sm:$0xff]  ;;  %v4247_v18 = vld [vmem:[%s13553_s10 + $0x150] sm:$0xff] }
 0x3e9   : > { %9665 = vmatprep.subr.bf16.mxu1 %v9664_v10  ;;  %v4199_v26 = vmax.f32 %v3869_v46, %v4064_v21  ;;  %v9674_v12 = vpack.c.bf16 %v4186_v6, %v4185_v2  ;;  %v4253_v43 = vld [vmem:[%s13553_s10 + $0x180] sm:$0xff]  ;;  %v4252_v51 = vld [vmem:[%s13553_s10 + $0x178] sm:$0xff]  ;;  %v4263_v41 = vld [vmem:[%s13553_s10 + $0x1d0] sm:$0xff] }
 0x3ea   : > { %v3668_v34 = vmax.f32 %v3599_v35, 0.0  ;;  %9667 = vmatpush3.bf16.msra.mxu1 %v9666_v38  ;;  %v4065_v9 = vrot.slane %v3871_v57, 1  ;;  %v9670_v37 = vpack.c.bf16 %v4184_v33, %v4183_v30  ;;  %v4262_v10 = vld [vmem:[%s13553_s10 + $0x1c8] sm:$0xff]  ;;  %v4268_v35 = vld [vmem:[%s13553_s10 + $0x1f8] sm:$0xff]  ;;  %v4273_v38 = vld [vmem:[%s13553_s10 + $0x220] sm:$0xff] }
 0x3eb   : > { %v3806_v23 = vld [vmem:[#allocation2 + $0x210] sm:$0xff]  ;;  %v4272_v47 = vld [vmem:[%s13553_s10 + $0x218] sm:$0xff]  ;;  %v4277_v21 = vld [vmem:[%s13553_s10 + $0x240] sm:$0xff] }
 0x3ec   : > { %3738 = vst.msk [vmem:[#allocation2 + $0x220] sm:$0x7f] %vm3737_vm4, %v3668_v34  ;;  %v4066_v27 = vsel %vm3941_vm3, %v4063_v53, %v4065_v9  ;;  %v3872_v36 = vmax.f32 %v3802_v44, %v3806_v23  ;;  %v3804_v44 = vld [vmem:[#allocation2 + $0x208] sm:$0x7f]  ;;  %v4209_v23 = vld [vmem:[%s13553_s10 + $0x20] sm:$0xff]  ;;  %v4224_v33 = vld [vmem:[%s13553_s10 + $0x98] sm:$0xff] }
 0x3ed   : > { %v4200_v13 = vmax.f32 %v3870_v49, %v4066_v27  ;;  %v4237_v49 = vld [vmem:[%s13553_s10 + $0x100] sm:$0xff]  ;;  %v4258_v53 = vld [vmem:[%s13553_s10 + $0x1a8] sm:$0xff]  ;;  %v4219_v27 = vld [vmem:[%s13553_s10 + $0x70] sm:$0xff] }
 0x3ee   : > { %v4067_v50 = vrot.slane %v3872_v36, 1  ;;  %v4278_v34 = vld [vmem:[%s13553_s10 + $0x248] sm:$0xff]  ;;  %v4244_v30 = vld [vmem:[%s13553_s10 + $0x138] sm:$0xff]  ;;  %v4279_v16 = vld [vmem:[%s13553_s10 + $0x250] sm:$0xff] }
 0x3ef   : > { %v3807_v52 = vld [vmem:[#allocation2 + $0x218] sm:$0xff]  ;;  %v9668_v8 = vpack.c.bf16 %v4200_v13, %v4199_v26  ;;  %v4214_v62 = vld [vmem:[%s13553_s10 + $0x48] sm:$0xff]  ;;  %v4239_v13 = vld [vmem:[%s13553_s10 + $0x110] sm:$0xff] }
 0x3f0   : > { %v3873_v7 = vmax.f32 %v3803_v39, %v3807_v52  ;;  %v4068_v58 = vsel %vm3941_vm3, %v4065_v9, %v4067_v50  ;;  %v4222_v39 = vld [vmem:[%s13553_s10 + $0x88] sm:$0xff]  ;;  %v4283_v9 = vld [vmem:[%s13553_s10 + $0x270] sm:$0x1] }
 0x3f1   : > { %9669 = vmatprep.subr.bf16.mxu1 %v9668_v8  ;;  %v4201_v20 = vmax.f32 %v3871_v57, %v4068_v58  ;;  %v4267_v57 = vld [vmem:[%s13553_s10 + $0x1f0] sm:$0xff]  ;;  %v4234_v26 = vld [vmem:[%s13553_s10 + $0xe8] sm:$0xff] }
 0x3f2   : > { %9671 = vmatpush3.bf16.msra.mxu1 %v9670_v37  ;;  %v4069_v22 = vrot.slane %v3873_v7, 1  ;;  %v4254_v52 = vld [vmem:[%s13553_s10 + $0x188] sm:$0xff]  ;;  %v4259_v8 = vld [vmem:[%s13553_s10 + $0x1b0] sm:$0xff] }
 0x3f3   : > { %v3808_v59 = vld [vmem:[#allocation2 + $0x220] sm:$0x7f]  ;;  %v4274_v58 = vld [vmem:[%s13553_s10 + $0x228] sm:$0xff] }
 0x3f4   : > { %v4070_v32 = vsel %vm3941_vm3, %v4067_v50, %v4069_v22  ;;  %v3874_v28 = vmax.f32 %v3804_v44, %v3808_v59  ;;  %v4249_v50 = vld [vmem:[%s13553_s10 + $0x160] sm:$0xff] }
 0x3f5   : > { %v4202_v24 = vmax.f32 %v3872_v36, %v4070_v32  ;;  %v4229_v36 = vld [vmem:[%s13553_s10 + $0xc0] sm:$0xff]  ;;  %v4284_v32 = vld [vmem:[%s13553_s10 + $0x278] sm:$0x1] }
 0x3f6   : > { %v4071_v46 = vrot.slane %v3874_v28, 1 }
 0x3f7   : > { %v9672_v11 = vpack.c.bf16 %v4202_v24, %v4201_v20 }
 0x3f8   : > { %v4072_v5 = vsel %vm3941_vm3, %v4069_v22, %v4071_v46  ;;  %v4204_v48 = vmax.f32 %v3874_v28, %v4071_v46 }
 0x3f9   : > { %9673 = vmatprep.subr.bf16.mxu1 %v9672_v11  ;;  %v4203_v0 = vmax.f32 %v3873_v7, %v4072_v5  ;;  %v4269_v7 = vld [vmem:[%s13553_s10 + $0x200] sm:$0xff] }
 0x3fa   : > { %9675 = vmatpush3.bf16.msra.mxu1 %v9674_v12 }
 0x3fb   : > { %v9676_v15 = vpack.c.bf16 %v4204_v48, %v4203_v0 }
 0x3fd   : > { %4547 = vmatmul.mubr.f32.vlgmr.msra.gmra.mrb[170].mxu1 %v4207_v42  ;;  %9678 = vmatprep.subr.msk.bf16.mxu1 %vm9677_vm6, %v9676_v15 }
 0x3fe   : > { %9681 = vmatpush3.bf16.msk.msra.mxu1 %vm9677_vm6, %v9676_v15  ;;  %4551 = vmatprep.mubr.f32.mxu1 %v4213_v63 }
 0x401   : > { %4552 = vmatmul.mubr.f32.gmra.mrb[172].mxu1 %v4212_v4 }
 0x402   : > { %4556 = vmatprep.mubr.f32.mxu1 %v4218_v45 }
 0x405   : > { %4557 = vmatmul.mubr.f32.gmra.mrb[174].mxu1 %v4217_v54 }
 0x406   : > { %4561 = vmatprep.mubr.f32.mxu1 %v4223_v56 }
 0x409   : > { %4562 = vmatmul.mubr.f32.gmra.mrb[176].mxu1 %v4222_v39 }
 0x40a   : > { %4566 = vmatprep.mubr.f32.mxu1 %v4228_v29 }
 0x40d   : > { %4567 = vmatmul.mubr.f32.gmra.mrb[178].mxu1 %v4227_v25 }
 0x40e   : > { %4571 = vmatprep.mubr.f32.mxu1 %v4233_v17 }
 0x411   : > { %4572 = vmatmul.mubr.f32.gmra.mrb[180].mxu1 %v4232_v14 }
 0x412   : > { %4576 = vmatprep.mubr.f32.mxu1 %v4238_v1 }
 0x415   : > { %4577 = vmatmul.mubr.f32.gmra.mrb[182].mxu1 %v4237_v49 }
 0x416   : > { %4581 = vmatprep.mubr.f32.mxu1 %v4243_v61 }
 0x419   : > { %4582 = vmatmul.mubr.f32.gmra.mrb[184].mxu1 %v4242_v31 }
 0x41a   : > { %4586 = vmatprep.mubr.f32.mxu1 %v4248_v55 }
 0x41d   : > { %4587 = vmatmul.mubr.f32.gmra.mrb[186].mxu1 %v4247_v18 }
 0x41e   : > { %4591 = vmatprep.mubr.f32.mxu1 %v4253_v43 }
 0x421   : > { %4592 = vmatmul.mubr.f32.gmra.mrb[188].mxu1 %v4252_v51 }
 0x422   : > { %4596 = vmatprep.mubr.f32.mxu1 %v4258_v53 }
 0x425   : > { %4597 = vmatmul.mubr.f32.gmra.mrb[190].mxu1 %v4257_v19 }
 0x426   : > { %4601 = vmatprep.mubr.f32.mxu1 %v4263_v41 }
 0x429   : > { %4602 = vmatmul.mubr.f32.gmra.mrb[192].mxu1 %v4262_v10 }
 0x42a   : > { %4606 = vmatprep.mubr.f32.mxu1 %v4268_v35  ;;  %v7798_v35 = vld [vmem:[%s13547_s4 + $0x8] sm:$0x3f] }
 0x42b   : > { %9371 = vmatprep.subr.msk.mxu1 %vm894_vm0, %v7798_v35 }
 0x42d   : > { %4607 = vmatmul.mubr.f32.gmra.mrb[194].mxu1 %v4267_v57 }
 0x42e   : > { %4611 = vmatprep.mubr.f32.mxu1 %v4273_v38 }
 0x431   : > { %4612 = vmatmul.mubr.f32.gmra.mrb[196].mxu1 %v4272_v47 }
 0x432   : > { %4616 = vmatprep.mubr.f32.mxu1 %v4278_v34 }
 0x435   : > { %4617 = vmatmul.mubr.f32.gmra.mrb[198].mxu1 %v4277_v21 }
 0x436   : > { %4621 = vmatprep.mubr.f32.mxu1 %v4283_v9 }
 0x439   : > { %4622 = vmatmul.mubr.f32.gmra.mrb[200].mxu1 %v4282_v60 }
 0x43a   : > { %9347 = vmatprep.mubr.msk.f32.mxu1 %vm4285_vm7, %v4209_v23 }
 0x43d   : > { %9348 = vmatmul.mubr.msk.f32.vlgmr.msra.gmra.mrb[202].mxu1 %vm4285_vm7, %v4214_v62  ;;  %v12997_v62 = vld [vmem:[%s13547_s4] sm:$0x3f] }
 0x43e   : > { %9350 = vmatprep.mubr.msk.f32.mxu1 %vm4285_vm7, %v4219_v27  ;;  %9372 = vmatpush3.msk.msra.mxu1 %vm894_vm0, %v7798_v35 }
 0x43f   : > { %9394 = vmatprep.subr.msk.mxu1 %vm894_vm0, %v12997_v62 }
 0x441   : > { %9351 = vmatmul.mubr.msk.f32.gmra.mrb[204].mxu1 %vm4285_vm7, %v4224_v33 }
 0x442   : > { %9353 = vmatprep.mubr.msk.f32.mxu1 %vm4285_vm7, %v4229_v36 }
 0x445   : > { %9354 = vmatmul.mubr.msk.f32.gmra.mrb[206].mxu1 %vm4285_vm7, %v4234_v26 }
 0x446   : > { %9356 = vmatprep.mubr.msk.f32.mxu1 %vm4285_vm7, %v4239_v13 }
 0x449   : > { %9357 = vmatmul.mubr.msk.f32.gmra.mrb[208].mxu1 %vm4285_vm7, %v4244_v30 }
 0x44a   : > { %9359 = vmatprep.mubr.msk.f32.mxu1 %vm4285_vm7, %v4249_v50 }
 0x44d   : > { %9360 = vmatmul.mubr.msk.f32.gmra.mrb[210].mxu1 %vm4285_vm7, %v4254_v52 }
 0x44e   : > { %9362 = vmatprep.mubr.msk.f32.mxu1 %vm4285_vm7, %v4259_v8 }
 0x450   : > { %v8234_v37 = vpop.f32.mrb[138].mxu1 }
 0x451   : > { %9363 = vmatmul.mubr.msk.f32.gmra.mrb[212].mxu1 %vm4285_vm7, %v4264_v40  ;;  %v8235_v3 = vpop.f32.mrb[139].mxu1 }
 0x452   : > { %9365 = vmatprep.mubr.msk.f32.mxu1 %vm4285_vm7, %v4269_v7  ;;  %v8236_v22 = vadd.f32 %v8235_v3, %v8234_v37 }
 0x454   : > { %v8237_v44 = vpop.f32.mrb[140].mxu1 }
 0x455   : > { %9366 = vmatmul.mubr.msk.f32.gmra.mrb[214].mxu1 %vm4285_vm7, %v4274_v58  ;;  %v8238_v59 = vpop.f32.mrb[141].mxu1 }
 0x456   : > { %9368 = vmatprep.mubr.msk.f32.mxu1 %vm4285_vm7, %v4279_v16  ;;  %v8239_v6 = vadd.f32 %v8238_v59, %v8237_v44 }
 0x458   : > { %v8240_v28 = vpop.f32.mrb[142].mxu1 }
 0x459   : > { %9369 = vmatmul.mubr.msk.f32.gmra.mrb[216].mxu1 %vm4285_vm7, %v4284_v32  ;;  %v8241_v20 = vpop.f32.mrb[143].mxu1 }
 0x45a   : > { %v8242_v24 = vadd.f32 %v8241_v20, %v8240_v28 }
 0x45c   : > { %v8243_v2 = vpop.f32.mrb[144].mxu1 }
 0x45d   : > { %v8244_v46 = vpop.f32.mrb[145].mxu1 }
 0x45e   : > { %v8245_v11 = vadd.f32 %v8244_v46, %v8243_v2 }
 0x460   : > { %v8246_v12 = vpop.f32.mrb[146].mxu1 }
 0x461   : > { %v8247_v5 = vpop.f32.mrb[147].mxu1 }
 0x462   : > { %v8248_v48 = vadd.f32 %v8247_v5, %v8246_v12 }
 0x464   : > { %v8249_v0 = vpop.f32.mrb[148].mxu1 }
 0x465   : > { %v8250_v42 = vpop.f32.mrb[149].mxu1 }
 0x466   : > { %v8251_v15 = vadd.f32 %v8250_v42, %v8249_v0 }
 0x468   : > { %v8252_v63 = vpop.f32.mrb[150].mxu1 }
 0x469   : > { %v8253_v4 = vpop.f32.mrb[151].mxu1 }
 0x46a   : > { %v8254_v45 = vadd.f32 %v8253_v4, %v8252_v63 }
 0x46c   : > { %v8255_v54 = vpop.f32.mrb[152].mxu1 }
 0x46d   : > { %v8256_v56 = vpop.f32.mrb[153].mxu1 }
 0x46e   : > { %v8257_v39 = vadd.f32 %v8256_v56, %v8255_v54 }
 0x470   : > { %v8258_v29 = vpop.f32.mrb[154].mxu1 }
 0x471   : > { %v8259_v25 = vpop.f32.mrb[155].mxu1 }
 0x472   : > { %v12973_v17 = vadd.f32 %v8259_v25, %v8258_v29 }
 0x474   : > { %v8261_v14 = vpop.f32.mrb[156].mxu1 }
 0x475   : > { %v8262_v1 = vpop.f32.mrb[157].mxu1 }
 0x476   : > { %v12975_v49 = vadd.f32 %v8262_v1, %v8261_v14 }
 0x478   : > { %v8264_v61 = vpop.f32.mrb[158].mxu1 }
 0x479   : > { %v8265_v31 = vpop.f32.mrb[159].mxu1 }
 0x47a   : > { %v12977_v55 = vadd.f32 %v8265_v31, %v8264_v61 }
 0x47c   : > { %v8267_v18 = vpop.f32.mrb[160].mxu1 }
 0x47d   : > { %v8268_v43 = vpop.f32.mrb[161].mxu1 }
 0x47e   : > { %v12979_v51 = vadd.f32 %v8268_v43, %v8267_v18 }
 0x480   : > { %v8270_v53 = vpop.f32.mrb[162].mxu1 }
 0x481   : > { %v8271_v19 = vpop.f32.mrb[163].mxu1 }
 0x482   : > { %v12981_v41 = vadd.f32 %v8271_v19, %v8270_v53 }
 0x484   : > { %v8273_v10 = vpop.f32.mrb[164].mxu1 }
 0x485   : > { %v8274_v57 = vpop.f32.mrb[165].mxu1 }
 0x486   : > { %v12987_v38 = vadd.f32 %v8274_v57, %v8273_v10 }
 0x488   : > { %v8276_v47 = vpop.f32.mrb[166].mxu1 }
 0x489   : > { %v8277_v34 = vpop.f32.mrb[167].mxu1 }
 0x48a   : > { %v12990_v21 = vadd.f32 %v8277_v34, %v8276_v47 }
 0x48c   : > { %v8279_v9 = vpop.f32.mrb[168].mxu1 }
 0x48d   : > { %v8280_v60 = vpop.f32.mrb[169].mxu1 }
 0x48e   : > { %v12992_v23 = vadd.f32 %v8280_v60, %v8279_v9 }
 0x4d0   : > { %v8314_v27 = vpop.f32.mrb[170].mxu1 }
 0x4d1   : > { %v8315_v33 = vpop.f32.mrb[171].mxu1 }
 0x4d2   : > { %v8316_v36 = vadd.f32 %v8315_v33, %v8314_v27 }
 0x4d4   : > { %v8317_v26 = vpop.f32.mrb[172].mxu1  ;;  %v13001_v13 = vadd.f32 %v8316_v36, %v8236_v22 }
 0x4d5   : > { %v8318_v30 = vpop.f32.mrb[173].mxu1 }
 0x4d6   : > { %v8319_v50 = vadd.f32 %v8318_v30, %v8317_v26 }
 0x4d8   : > { %v8320_v52 = vpop.f32.mrb[174].mxu1  ;;  %v4554_v8 = vadd.f32 %v8319_v50, %v8239_v6 }
 0x4d9   : > { %v8321_v40 = vpop.f32.mrb[175].mxu1 }
 0x4da   : > { %v8322_v7 = vadd.f32 %v8321_v40, %v8320_v52 }
 0x4dc   : > { %v8323_v37 = vpop.f32.mrb[176].mxu1  ;;  %v4559_v3 = vadd.f32 %v8322_v7, %v8242_v24 }
 0x4dd   : > { %v8324_v58 = vpop.f32.mrb[177].mxu1 }
 0x4de   : > { %v8325_v16 = vadd.f32 %v8324_v58, %v8323_v37 }
 0x4e0   : > { %v8326_v44 = vpop.f32.mrb[178].mxu1  ;;  %v4564_v59 = vadd.f32 %v8325_v16, %v8245_v11 }
 0x4e1   : > { %v8327_v32 = vpop.f32.mrb[179].mxu1 }
 0x4e2   : > { %v8328_v28 = vadd.f32 %v8327_v32, %v8326_v44 }
 0x4e4   : > { %v8329_v20 = vpop.f32.mrb[180].mxu1  ;;  %v4569_v2 = vadd.f32 %v8328_v28, %v8248_v48 }
 0x4e5   : > { %v8330_v46 = vpop.f32.mrb[181].mxu1 }
 0x4e6   : > { %v8331_v12 = vadd.f32 %v8330_v46, %v8329_v20  ;;  %v7829_v46 = vld [vmem:[%s13547_s4 + $0x10] sm:$0x3f] }
 0x4e8   : > { %v8332_v22 = vpop.f32.mrb[182].mxu1  ;;  %v4574_v5 = vadd.f32 %v8331_v12, %v8251_v15 }
 0x4e9   : > { %v8333_v0 = vpop.f32.mrb[183].mxu1 }
 0x4ea   : > { %v8334_v42 = vadd.f32 %v8333_v0, %v8332_v22 }
 0x4ec   : > { %v8335_v63 = vpop.f32.mrb[184].mxu1  ;;  %v4579_v6 = vadd.f32 %v8334_v42, %v8254_v45 }
 0x4ed   : > { %v8336_v4 = vpop.f32.mrb[185].mxu1 }
 0x4ee   : > { %v8337_v54 = vadd.f32 %v8336_v4, %v8335_v63 }
 0x4f0   : > { %v8338_v56 = vpop.f32.mrb[186].mxu1  ;;  %v4584_v24 = vadd.f32 %v8337_v54, %v8257_v39 }
 0x4f1   : > { %v8339_v29 = vpop.f32.mrb[187].mxu1 }
 0x4f2   : > { %v8340_v25 = vadd.f32 %v8339_v29, %v8338_v56 }
 0x4f4   : > { %v8341_v14 = vpop.f32.mrb[188].mxu1  ;;  %v13004_v11 = vadd.f32 %v8340_v25, %v12973_v17 }
 0x4f5   : > { %v8342_v1 = vpop.f32.mrb[189].mxu1 }
 0x4f6   : > { %v8343_v48 = vadd.f32 %v8342_v1, %v8341_v14 }
 0x4f8   : > { %v8344_v61 = vpop.f32.mrb[190].mxu1  ;;  %v4594_v31 = vadd.f32 %v8343_v48, %v12975_v49 }
 0x4f9   : > { %v8345_v15 = vpop.f32.mrb[191].mxu1 }
 0x4fa   : > { %v8346_v18 = vadd.f32 %v8345_v15, %v8344_v61 }
 0x4fc   : > { %v8347_v43 = vpop.f32.mrb[192].mxu1  ;;  %v13008_v45 = vadd.f32 %v8346_v18, %v12977_v55 }
 0x4fd   : > { %v8348_v53 = vpop.f32.mrb[193].mxu1 }
 0x4fe   : > { %v8349_v19 = vadd.f32 %v8348_v53, %v8347_v43 }
 0x500   : > { %v8350_v39 = vpop.f32.mrb[194].mxu1  ;;  %v4604_v10 = vadd.f32 %v8349_v19, %v12979_v51 }
 0x501   : > { %v8351_v35 = vpop.f32.mrb[195].mxu1 }
 0x502   : > { %v8352_v57 = vadd.f32 %v8351_v35, %v8350_v39  ;;  %v7845_v35 = vld [vmem:[%s13547_s4 + $0x18] sm:$0x3f] }
 0x504   : > { %v8353_v17 = vpop.f32.mrb[196].mxu1  ;;  %v13012_v47 = vadd.f32 %v8352_v57, %v12981_v41 }
 0x505   : > { %v8354_v34 = vpop.f32.mrb[197].mxu1 }
 0x506   : > { %v8355_v9 = vadd.f32 %v8354_v34, %v8353_v17 }
 0x508   : > { %v8356_v49 = vpop.f32.mrb[198].mxu1  ;;  %v4614_v60 = vadd.f32 %v8355_v9, %v12987_v38 }
 0x509   : > { %v8357_v27 = vpop.f32.mrb[199].mxu1 }
 0x50a   : > { %v8358_v33 = vadd.f32 %v8357_v27, %v8356_v49 }
 0x50c   : > { %v8359_v55 = vpop.f32.mrb[200].mxu1  ;;  %v13016_v36 = vadd.f32 %v8358_v33, %v12990_v21 }
 0x50d   : > { %v8360_v26 = vpop.f32.mrb[201].mxu1 }
 0x50e   : > { %v8361_v30 = vadd.f32 %v8360_v26, %v8359_v55 }
 0x510   : > { %v9349_v51 = vpop.f32.mrb[202].mxu1  ;;  %v13019_v50 = vadd.f32 %v8361_v30, %v12992_v23 }
 0x511   : > { %v4699_v52 = vadd.f32 %v9349_v51, %v4554_v8  ;;  %v4693_v41 = vpop.f32.mrb[203].mxu1 }
 0x512   : > { %v4694_v40 = vadd.f32 %v4693_v41, %v13001_v13 }
 0x513   : > { %4773 = vst.msk [vmem:[#allocation3 + $0x8] sm:$0xff] %vm686_vm2, %v4699_v52 }
 0x514   : > { %4772 = vst.msk [vmem:[#allocation3] sm:$0xff] %vm686_vm2, %v4694_v40  ;;  %v9352_v38 = vpop.f32.mrb[204].mxu1 }
 0x515   : > { %v4709_v7 = vadd.f32 %v9352_v38, %v4564_v59  ;;  %v4703_v37 = vpop.f32.mrb[205].mxu1 }
 0x516   : > { %v4704_v58 = vadd.f32 %v4703_v37, %v4559_v3 }
 0x517   : > { %4775 = vst.msk [vmem:[#allocation3 + $0x18] sm:$0xff] %vm686_vm2, %v4709_v7 }
 0x518   : > { %4774 = vst.msk [vmem:[#allocation3 + $0x10] sm:$0xff] %vm686_vm2, %v4704_v58  ;;  %v9355_v21 = vpop.f32.mrb[206].mxu1 }
 0x519   : > { %v4719_v16 = vadd.f32 %v9355_v21, %v4574_v5  ;;  %v4713_v23 = vpop.f32.mrb[207].mxu1 }
 0x51a   : > { %v4714_v44 = vadd.f32 %v4713_v23, %v4569_v2 }
 0x51b   : > { %4777 = vst.msk [vmem:[#allocation3 + $0x28] sm:$0xff] %vm686_vm2, %v4719_v16  ;;  %v4804_v8 = vld [vmem:[#allocation3 + $0x1] sm:$0xff] }
 0x51c   : > { %4776 = vst.msk [vmem:[#allocation3 + $0x20] sm:$0xff] %vm686_vm2, %v4714_v44  ;;  %v9358_v13 = vpop.f32.mrb[208].mxu1  ;;  %9373 = vmatprep.mubr.msk.f32.mxu1 %vm686_vm2, %v4804_v8  ;;  %v4789_v39 = vld [vmem:[#allocation3] sm:$0xff] }
 0x51d   : > { %v4729_v32 = vadd.f32 %v9358_v13, %v4584_v24  ;;  %v4723_v59 = vpop.f32.mrb[209].mxu1 }
 0x51e   : > { %v4724_v28 = vadd.f32 %v4723_v59, %v4579_v6  ;;  %v4792_v17 = vld [vmem:[#allocation3 + $0x18] sm:$0xff] }
 0x51f   : > { %4779 = vst.msk [vmem:[#allocation3 + $0x38] sm:$0xff] %vm686_vm2, %v4729_v32  ;;  %v4805_v3 = vld [vmem:[#allocation3 + $0x9] sm:$0xff]  ;;  %v4806_v20 = vld [vmem:[#allocation3 + $0x11] sm:$0xff] }
 0x520   : > { %4778 = vst.msk [vmem:[#allocation3 + $0x30] sm:$0xff] %vm686_vm2, %v4724_v28  ;;  %v9361_v2 = vpop.f32.mrb[210].mxu1  ;;  %9374 = vmatmul.mubr.msk.f32.vlgmr.msra.gmra.mrb[218].mxu1 %vm686_vm2, %v4805_v3  ;;  %v4791_v57 = vld [vmem:[#allocation3 + $0x10] sm:$0xff] }
 0x521   : > { %v4739_v12 = vadd.f32 %v9361_v2, %v4594_v31  ;;  %v4733_v22 = vpop.f32.mrb[211].mxu1  ;;  %9376 = vmatprep.mubr.msk.f32.mxu1 %vm686_vm2, %v4806_v20  ;;  %9395 = vmatpush3.msk.msra.mxu1 %vm894_vm0, %v12997_v62  ;;  %v5180_v30 = vld [vmem:[#allocation3 + $0xb] sm:$0xff]  ;;  %v5181_v51 = vld [vmem:[#allocation3 + $0x13] sm:$0xff] }
 0x522   : > { %v4734_v5 = vadd.f32 %v4733_v22, %v13004_v11  ;;  %9417 = vmatprep.subr.msk.mxu1 %vm894_vm0, %v7829_v46  ;;  %v4794_v34 = vld [vmem:[#allocation3 + $0x28] sm:$0xff]  ;;  %v5391_v13 = vld [vmem:[#allocation3 + $0x14] sm:$0xff] }
 0x523   : > { %4781 = vst.msk [vmem:[#allocation3 + $0x48] sm:$0xff] %vm686_vm2, %v4739_v12  ;;  %v4807_v0 = vld [vmem:[#allocation3 + $0x19] sm:$0xff]  ;;  %v4808_v42 = vld [vmem:[#allocation3 + $0x21] sm:$0xff]  ;;  %v5390_v8 = vld [vmem:[#allocation3 + $0xc] sm:$0xff] }
 0x524   : > { %4780 = vst.msk [vmem:[#allocation3 + $0x40] sm:$0xff] %vm686_vm2, %v4734_v5  ;;  %v9364_v63 = vpop.f32.mrb[212].mxu1  ;;  %9377 = vmatmul.mubr.msk.f32.gmra.mrb[220].mxu1 %vm686_vm2, %v4807_v0  ;;  %v5183_v52 = vld [vmem:[#allocation3 + $0x23] sm:$0xff] }
 0x525   : > { %v4749_v6 = vadd.f32 %v9364_v63, %v4604_v10  ;;  %v4743_v4 = vpop.f32.mrb[213].mxu1  ;;  %9379 = vmatprep.mubr.msk.f32.mxu1 %vm686_vm2, %v4808_v42  ;;  %v4790_v10 = vld [vmem:[#allocation3 + $0x8] sm:$0xff]  ;;  %v5392_v32 = vld [vmem:[#allocation3 + $0x1c] sm:$0xff] }
 0x526   : > { %v4744_v54 = vadd.f32 %v4743_v4, %v13008_v45  ;;  %v4796_v49 = vld [vmem:[#allocation3 + $0x38] sm:$0xff]  ;;  %v5393_v59 = vld [vmem:[#allocation3 + $0x24] sm:$0xff] }
 0x527   : > { %4783 = vst.msk [vmem:[#allocation3 + $0x58] sm:$0xff] %vm686_vm2, %v4749_v6  ;;  %v4809_v62 = vld [vmem:[#allocation3 + $0x29] sm:$0xff]  ;;  %v4810_v56 = vld [vmem:[#allocation3 + $0x31] sm:$0xff] }
 0x528   : > { %4782 = vst.msk [vmem:[#allocation3 + $0x50] sm:$0xff] %vm686_vm2, %v4744_v54  ;;  %v9367_v24 = vpop.f32.mrb[214].mxu1  ;;  %9380 = vmatmul.mubr.msk.f32.gmra.mrb[222].mxu1 %vm686_vm2, %v4809_v62  ;;  %v4795_v9 = vld [vmem:[#allocation3 + $0x30] sm:$0xff]  ;;  %v5775_v63 = vld [vmem:[%s13554_s11] sm:$0xff] }
 0x529   : > { %v4759_v29 = vadd.f32 %v9367_v24, %v4614_v60  ;;  %v4753_v25 = vpop.f32.mrb[215].mxu1  ;;  %9382 = vmatprep.mubr.msk.f32.mxu1 %vm686_vm2, %v4810_v56  ;;  %v5184_v41 = vld [vmem:[#allocation3 + $0x2b] sm:$0xff]  ;;  %v5185_v40 = vld [vmem:[#allocation3 + $0x33] sm:$0xff] }
 0x52a   : > { %v4754_v14 = vadd.f32 %v4753_v25, %v13012_v47  ;;  %v4793_v47 = vld [vmem:[#allocation3 + $0x20] sm:$0xff]  ;;  %v4798_v27 = vld [vmem:[#allocation3 + $0x48] sm:$0xff]  ;;  %v5395_v3 = vld [vmem:[#allocation3 + $0x34] sm:$0xff] }
 0x52b   : > { %4785 = vst.msk [vmem:[#allocation3 + $0x68] sm:$0xff] %vm686_vm2, %v4759_v29  ;;  %v4811_v11 = vld [vmem:[#allocation3 + $0x39] sm:$0xff]  ;;  %v4812_v1 = vld [vmem:[#allocation3 + $0x41] sm:$0xff]  ;;  %v5394_v28 = vld [vmem:[#allocation3 + $0x2c] sm:$0xff] }
 0x52c   : > { %4784 = vst.msk [vmem:[#allocation3 + $0x60] sm:$0xff] %vm686_vm2, %v4754_v14  ;;  %v9370_v48 = vpop.f32.mrb[216].mxu1  ;;  %9383 = vmatmul.mubr.msk.f32.gmra.mrb[224].mxu1 %vm686_vm2, %v4811_v11  ;;  %v4797_v60 = vld [vmem:[#allocation3 + $0x40] sm:$0xff]  ;;  %v13117_v6 = vld [vmem:[%s13548_s5] ss:$0 sm:$0xff] }
 0x52d   : > { %v4769_v61 = vadd.f32 %v9370_v48, %v13019_v50  ;;  %v4763_v31 = vpop.f32.mrb[217].mxu1  ;;  %9385 = vmatprep.mubr.msk.f32.mxu1 %vm686_vm2, %v4812_v1  ;;  %v5182_v50 = vld [vmem:[#allocation3 + $0x1b] sm:$0xff]  ;;  %v5187_v7 = vld [vmem:[#allocation3 + $0x43] sm:$0xff]  ;;  %v13122_v54 = vld [vmem:[%s13549_s6] ss:$0 sm:$0xff] }
 0x52e   : > { %v4764_v15 = vadd.f32 %v4763_v31, %v13016_v36  ;;  %v4800_v55 = vld [vmem:[#allocation3 + $0x58] sm:$0xff] }
 0x52f   : > { %4788 = vst.msk [vmem:[#allocation3 + $0x78] sm:$0x1] %vm4787_vm8, %v4769_v61  ;;  %v4813_v18 = vld [vmem:[#allocation3 + $0x49] sm:$0xff]  ;;  %v4814_v43 = vld [vmem:[#allocation3 + $0x51] sm:$0xff]  ;;  %v5186_v38 = vld [vmem:[#allocation3 + $0x3b] sm:$0xff] }
 0x530   : > { %4786 = vst.msk [vmem:[#allocation3 + $0x70] sm:$0xff] %vm686_vm2, %v4764_v15  ;;  %9386 = vmatmul.mubr.msk.f32.gmra.mrb[226].mxu1 %vm686_vm2, %v4813_v18  ;;  %v4799_v33 = vld [vmem:[#allocation3 + $0x50] sm:$0xff]  ;;  %v5396_v20 = vld [vmem:[#allocation3 + $0x3c] sm:$0xff] }
 0x531   : > { %9388 = vmatprep.mubr.msk.f32.mxu1 %vm686_vm2, %v4814_v43  ;;  %v5188_v37 = vld [vmem:[#allocation3 + $0x4b] sm:$0xff]  ;;  %v5189_v58 = vld [vmem:[#allocation3 + $0x53] sm:$0xff] }
 0x532   : > { %v4817_v19 = vld [vmem:[#allocation3 + $0x69] sm:$0x1f]  ;;  %v5399_v12 = vld [vmem:[#allocation3 + $0x54] sm:$0xff] }
 0x533   : > { %v4815_v45 = vld [vmem:[#allocation3 + $0x59] sm:$0xff]  ;;  %v4816_v53 = vld [vmem:[#allocation3 + $0x61] sm:$0xff]  ;;  %v5398_v2 = vld [vmem:[#allocation3 + $0x4c] sm:$0xff] }
 0x534   : > { %9389 = vmatmul.mubr.msk.f32.gmra.mrb[228].mxu1 %vm686_vm2, %v4815_v45  ;;  %v4801_v36 = vld [vmem:[#allocation3 + $0x60] sm:$0xff]  ;;  %v4802_v26 = vld [vmem:[#allocation3 + $0x68] sm:$0x1f] }
 0x535   : > { %9391 = vmatprep.mubr.msk.f32.mxu1 %vm686_vm2, %v4816_v53  ;;  %v5190_v21 = vld [vmem:[#allocation3 + $0x5b] sm:$0xff]  ;;  %v5191_v16 = vld [vmem:[#allocation3 + $0x63] sm:$0xff] }
 0x536   : > { %v5400_v22 = vld [vmem:[#allocation3 + $0x5c] sm:$0xff]  ;;  %v5401_v5 = vld [vmem:[#allocation3 + $0x64] sm:$0xff] }
 0x537   : > { %v5192_v23 = vld [vmem:[#allocation3 + $0x6b] sm:$0xff]  ;;  %v5193_v44 = vld [vmem:[#allocation3 + $0x73] sm:$0x1f] }
 0x538   : > { %9392 = vmatmul.mubr.msk.f32.gmra.mrb[230].mxu1 %vm686_vm2, %v4817_v19  ;;  %v5402_v0 = vld [vmem:[#allocation3 + $0x6c] sm:$0xff]  ;;  %v5403_v42 = vld [vmem:[#allocation3 + $0x74] sm:$0x1f] }
 0x539   : > { %9396 = vmatprep.mubr.msk.f32.mxu1 %vm686_vm2, %v4789_v39 }
 0x53c   : > { %9397 = vmatmul.mubr.msk.f32.vlgmr.msra.gmra.mrb[218].mxu1 %vm686_vm2, %v4790_v10 }
 0x53d   : > { %9399 = vmatprep.mubr.msk.f32.mxu1 %vm686_vm2, %v4791_v57  ;;  %9418 = vmatpush3.msk.msra.mxu1 %vm894_vm0, %v7829_v46  ;;  %v5397_v46 = vld [vmem:[#allocation3 + $0x44] sm:$0xff] }
 0x53e   : > { %9440 = vmatprep.subr.msk.mxu1 %vm894_vm0, %v7845_v35 }
 0x540   : > { %9400 = vmatmul.mubr.msk.f32.gmra.mrb[220].mxu1 %vm686_vm2, %v4792_v17 }
 0x541   : > { %9402 = vmatprep.mubr.msk.f32.mxu1 %vm686_vm2, %v4793_v47 }
 0x544   : > { %9403 = vmatmul.mubr.msk.f32.gmra.mrb[222].mxu1 %vm686_vm2, %v4794_v34 }
 0x545   : > { %9405 = vmatprep.mubr.msk.f32.mxu1 %vm686_vm2, %v4795_v9 }
 0x548   : > { %9406 = vmatmul.mubr.msk.f32.gmra.mrb[224].mxu1 %vm686_vm2, %v4796_v49 }
 0x549   : > { %9408 = vmatprep.mubr.msk.f32.mxu1 %vm686_vm2, %v4797_v60 }
 0x54c   : > { %9409 = vmatmul.mubr.msk.f32.gmra.mrb[226].mxu1 %vm686_vm2, %v4798_v27 }
 0x54d   : > { %9411 = vmatprep.mubr.msk.f32.mxu1 %vm686_vm2, %v4799_v33 }
 0x550   : > { %9412 = vmatmul.mubr.msk.f32.gmra.mrb[228].mxu1 %vm686_vm2, %v4800_v55 }
 0x551   : > { %9414 = vmatprep.mubr.msk.f32.mxu1 %vm686_vm2, %v4801_v36 }
 0x554   : > { %9415 = vmatmul.mubr.msk.f32.gmra.mrb[230].mxu1 %vm686_vm2, %v4802_v26 }
 0x555   : > { %9419 = vmatprep.mubr.msk.f32.mxu1 %vm686_vm2, %v5180_v30 }
 0x558   : > { %9420 = vmatmul.mubr.msk.f32.vlgmr.msra.gmra.mrb[218].mxu1 %vm686_vm2, %v5181_v51 }
 0x559   : > { %9422 = vmatprep.mubr.msk.f32.mxu1 %vm686_vm2, %v5182_v50  ;;  %9441 = vmatpush3.msk.msra.mxu1 %vm894_vm0, %v7845_v35  ;;  %vm7367_vm0 = vcmask 326656  }
 0x55c   : > { %9423 = vmatmul.mubr.msk.f32.gmra.mrb[220].mxu1 %vm686_vm2, %v5183_v52 }
 0x55d   : > { %9425 = vmatprep.mubr.msk.f32.mxu1 %vm686_vm2, %v5184_v41 }
 0x560   : > { %9426 = vmatmul.mubr.msk.f32.gmra.mrb[222].mxu1 %vm686_vm2, %v5185_v40 }
 0x561   : > { %9428 = vmatprep.mubr.msk.f32.mxu1 %vm686_vm2, %v5186_v38 }
 0x564   : > { %9429 = vmatmul.mubr.msk.f32.gmra.mrb[224].mxu1 %vm686_vm2, %v5187_v7 }
 0x565   : > { %9431 = vmatprep.mubr.msk.f32.mxu1 %vm686_vm2, %v5188_v37 }
 0x568   : > { %9432 = vmatmul.mubr.msk.f32.gmra.mrb[226].mxu1 %vm686_vm2, %v5189_v58 }
 0x569   : > { %9434 = vmatprep.mubr.msk.f32.mxu1 %vm686_vm2, %v5190_v21 }
 0x56c   : > { %9435 = vmatmul.mubr.msk.f32.gmra.mrb[228].mxu1 %vm686_vm2, %v5191_v16 }
 0x56d   : > { %9437 = vmatprep.mubr.msk.f32.mxu1 %vm686_vm2, %v5192_v23 }
 0x570   : > { %9438 = vmatmul.mubr.msk.f32.gmra.mrb[230].mxu1 %vm686_vm2, %v5193_v44 }
 0x571   : > { %9442 = vmatprep.mubr.msk.f32.mxu1 %vm686_vm2, %v5390_v8 }
 0x574   : > { %9443 = vmatmul.mubr.msk.f32.vlgmr.msra.gmra.mrb[218].mxu1 %vm686_vm2, %v5391_v13 }
 0x575   : > { %9445 = vmatprep.mubr.msk.f32.mxu1 %vm686_vm2, %v5392_v32 }
 0x578   : > { %9446 = vmatmul.mubr.msk.f32.gmra.mrb[220].mxu1 %vm686_vm2, %v5393_v59 }
 0x579   : > { %9448 = vmatprep.mubr.msk.f32.mxu1 %vm686_vm2, %v5394_v28 }
 0x57c   : > { %9449 = vmatmul.mubr.msk.f32.gmra.mrb[222].mxu1 %vm686_vm2, %v5395_v3 }
 0x57d   : > { %9451 = vmatprep.mubr.msk.f32.mxu1 %vm686_vm2, %v5396_v20 }
 0x580   : > { %9452 = vmatmul.mubr.msk.f32.gmra.mrb[224].mxu1 %vm686_vm2, %v5397_v46 }
 0x581   : > { %9454 = vmatprep.mubr.msk.f32.mxu1 %vm686_vm2, %v5398_v2 }
 0x584   : > { %9455 = vmatmul.mubr.msk.f32.gmra.mrb[226].mxu1 %vm686_vm2, %v5399_v12 }
 0x585   : > { %9457 = vmatprep.mubr.msk.f32.mxu1 %vm686_vm2, %v5400_v22 }
 0x588   : > { %9458 = vmatmul.mubr.msk.f32.gmra.mrb[228].mxu1 %vm686_vm2, %v5401_v5 }
 0x589   : > { %9460 = vmatprep.mubr.msk.f32.mxu1 %vm686_vm2, %v5402_v0 }
 0x58c   : > { %9461 = vmatmul.mubr.msk.f32.gmra.mrb[230].mxu1 %vm686_vm2, %v5403_v42 }
 0x58d   : > { %9489 = vmatprep.mubr.msk.f32.mxu1 %vm5779_vm9, %v5775_v63 }
 0x647   : > { %v9444_v4 = vpop.f32.mrb[218].mxu1 }
 0x648   : > { %v5608_v62 = vmul.f32 %v9444_v4, %v13117_v6  ;;  %v5517_v56 = vpop.f32.mrb[219].mxu1 }
 0x649   : > { %v5607_v24 = vmul.f32 %v13117_v6, %v5517_v56 }
 0x64a   : > { %v5629_v29 = vadd.f32 %v13122_v54, %v5608_v62 }
 0x64b   : > { %v5628_v25 = vadd.f32 %v13122_v54, %v5607_v24  ;;  %v9447_v14 = vpop.f32.mrb[220].mxu1 }
 0x64c   : > { %v5643_v11 = vmax.f32 %v5629_v29, 0.0  ;;  %v5610_v1 = vmul.f32 %v9447_v14, %v13117_v6  ;;  %v5527_v48 = vpop.f32.mrb[221].mxu1 }
 0x64d   : > { %v5642_v61 = vmax.f32 %v5628_v25, 0.0  ;;  %v5609_v31 = vmul.f32 %v13117_v6, %v5527_v48 }
 0x64e   : > { %5658 = vst.msk [vmem:[#allocation4 + $0x8] sm:$0xff] %vm5656_vm10, %v5643_v11  ;;  %v5631_v15 = vadd.f32 %v13122_v54, %v5610_v1 }
 0x64f   : > { %5657 = vst.msk [vmem:[#allocation4] sm:$0xff] %vm5656_vm10, %v5642_v61  ;;  %v5630_v18 = vadd.f32 %v13122_v54, %v5609_v31  ;;  %v9450_v43 = vpop.f32.mrb[222].mxu1 }
 0x650   : > { %v5645_v45 = vmax.f32 %v5631_v15, 0.0  ;;  %v5612_v53 = vmul.f32 %v9450_v43, %v13117_v6  ;;  %v5537_v19 = vpop.f32.mrb[223].mxu1 }
 0x651   : > { %v5644_v39 = vmax.f32 %v5630_v18, 0.0  ;;  %v5611_v10 = vmul.f32 %v13117_v6, %v5537_v19 }
 0x652   : > { %5660 = vst.msk [vmem:[#allocation4 + $0x18] sm:$0xff] %vm5656_vm10, %v5645_v45  ;;  %v5633_v35 = vadd.f32 %v13122_v54, %v5612_v53 }
 0x653   : > { %5659 = vst.msk [vmem:[#allocation4 + $0x10] sm:$0xff] %vm5656_vm10, %v5644_v39  ;;  %v5632_v57 = vadd.f32 %v13122_v54, %v5611_v10  ;;  %v9453_v17 = vpop.f32.mrb[224].mxu1 }
 0x654   : > { %v5647_v47 = vmax.f32 %v5633_v35, 0.0  ;;  %v5614_v34 = vmul.f32 %v9453_v17, %v13117_v6  ;;  %v5547_v9 = vpop.f32.mrb[225].mxu1 }
 0x655   : > { %v5646_v49 = vmax.f32 %v5632_v57, 0.0  ;;  %v5613_v60 = vmul.f32 %v13117_v6, %v5547_v9  ;;  %v5673_v52 = vld [vmem:[#allocation4 + $0x8] sm:$0xff] }
 0x656   : > { %5662 = vst.msk [vmem:[#allocation4 + $0x28] sm:$0xff] %vm5656_vm10, %v5647_v47  ;;  %v5635_v27 = vadd.f32 %v13122_v54, %v5614_v34  ;;  %v5672_v40 = vld [vmem:[#allocation4] sm:$0xff] }
 0x657   : > { %5661 = vst.msk [vmem:[#allocation4 + $0x20] sm:$0xff] %vm5656_vm10, %v5646_v49  ;;  %v5634_v33 = vadd.f32 %v13122_v54, %v5613_v60  ;;  %v9456_v55 = vpop.f32.mrb[226].mxu1 }
 0x658   : > { %v5649_v36 = vmax.f32 %v5635_v27, 0.0  ;;  %v5616_v26 = vmul.f32 %v9456_v55, %v13117_v6  ;;  %v5557_v30 = vpop.f32.mrb[227].mxu1 }
 0x659   : > { %v5648_v51 = vmax.f32 %v5634_v33, 0.0  ;;  %v5615_v50 = vmul.f32 %v13117_v6, %v5557_v30  ;;  %v5675_v3 = vld [vmem:[#allocation4 + $0x18] sm:$0xff] }
 0x65a   : > { %5664 = vst.msk [vmem:[#allocation4 + $0x38] sm:$0xff] %vm5656_vm10, %v5649_v36  ;;  %v5637_v41 = vadd.f32 %v13122_v54, %v5616_v26  ;;  %v5685_v38 = vld [vmem:[#allocation4 + $0xb] sm:$0xff]  ;;  %v5686_v7 = vld [vmem:[#allocation4 + $0x13] sm:$0xff] }
 0x65b   : > { %5663 = vst.msk [vmem:[#allocation4 + $0x30] sm:$0xff] %vm5656_vm10, %v5648_v51  ;;  %v5636_v37 = vadd.f32 %v13122_v54, %v5615_v50  ;;  %v9459_v58 = vpop.f32.mrb[228].mxu1  ;;  %v5698_v21 = vmax.f32 %v5672_v40, %v5685_v38  ;;  %v5699_v16 = vmax.f32 %v5673_v52, %v5686_v7  ;;  %v5674_v46 = vld [vmem:[#allocation4 + $0x10] sm:$0xff] }
 0x65c   : > { %v5651_v23 = vmax.f32 %v5637_v41, 0.0  ;;  %v5618_v44 = vmul.f32 %v9459_v58, %v13117_v6  ;;  %v5567_v8 = vpop.f32.mrb[229].mxu1 }
 0x65d   : > { %v5650_v13 = vmax.f32 %v5636_v37, 0.0  ;;  %v5617_v32 = vmul.f32 %v13117_v6, %v5567_v8  ;;  %v5724_v59 = vrot.slane %v5698_v21, 1  ;;  %v5725_v28 = vrot.slane %v5699_v16, 1  ;;  %v5677_v43 = vld [vmem:[#allocation4 + $0x28] sm:$0xff] }
 0x65e   : > { %5666 = vst.msk [vmem:[#allocation4 + $0x48] sm:$0xff] %vm5656_vm10, %v5651_v23  ;;  %v5639_v20 = vadd.f32 %v13122_v54, %v5618_v44  ;;  %v5687_v2 = vld [vmem:[#allocation4 + $0x1b] sm:$0xff]  ;;  %v5688_v12 = vld [vmem:[#allocation4 + $0x23] sm:$0xff] }
 0x65f   : > { %5665 = vst.msk [vmem:[#allocation4 + $0x40] sm:$0xff] %vm5656_vm10, %v5650_v13  ;;  %v5638_v22 = vadd.f32 %v13122_v54, %v5617_v32  ;;  %v9462_v5 = vpop.f32.mrb[230].mxu1  ;;  %v5700_v0 = vmax.f32 %v5674_v46, %v5687_v2  ;;  %v5701_v42 = vmax.f32 %v5675_v3, %v5688_v12  ;;  %v5726_v56 = vsel %vm3941_vm3, %v5724_v59, %v5725_v28  ;;  %v5676_v1 = vld [vmem:[#allocation4 + $0x20] sm:$0xff] }
 0x660   : > { %v5653_v63 = vmax.f32 %v5639_v20, 0.0  ;;  %v5620_v4 = vmul.f32 %v9462_v5, %v13117_v6  ;;  %v5577_v62 = vpop.f32.mrb[231].mxu1 }
 0x661   : > { %v5652_v24 = vmax.f32 %v5638_v22, 0.0  ;;  %v5619_v29 = vmul.f32 %v13117_v6, %v5577_v62  ;;  %v5727_v25 = vrot.slane %v5700_v0, 1  ;;  %v5729_v14 = vrot.slane %v5701_v42, 1  ;;  %v5679_v57 = vld [vmem:[#allocation4 + $0x38] sm:$0xff] }
 0x662   : > { %5668 = vst.msk [vmem:[#allocation4 + $0x58] sm:$0xff] %vm5656_vm10, %v5653_v63  ;;  %v5641_v11 = vadd.f32 %v13122_v54, %v5620_v4  ;;  %v5689_v48 = vld [vmem:[#allocation4 + $0x2b] sm:$0xff]  ;;  %v5690_v61 = vld [vmem:[#allocation4 + $0x33] sm:$0xff]  ;;  %v5762_v6 = vmax.f32 %v5698_v21, %v5726_v56 }
 0x663   : > { %5667 = vst.msk [vmem:[#allocation4 + $0x50] sm:$0xff] %vm5656_vm10, %v5652_v24  ;;  %v5640_v31 = vadd.f32 %v13122_v54, %v5619_v29  ;;  %v5728_v15 = vsel %vm3941_vm3, %v5725_v28, %v5727_v25  ;;  %v5702_v18 = vmax.f32 %v5676_v1, %v5689_v48  ;;  %v5703_v19 = vmax.f32 %v5677_v43, %v5690_v61  ;;  %v5678_v47 = vld [vmem:[#allocation4 + $0x30] sm:$0xff]  ;;  %v5777_v43 = vld [vmem:[%s13554_s11 + $0x10] sm:$0xff] }
 0x664   : > { %v5655_v45 = vmax.f32 %v5641_v11, 0.0  ;;  %v5763_v53 = vmax.f32 %v5699_v16, %v5728_v15  ;;  %v5730_v10 = vsel %vm3941_vm3, %v5727_v25, %v5729_v14 }
 0x665   : > { %v5654_v39 = vmax.f32 %v5640_v31, 0.0  ;;  %v5731_v35 = vrot.slane %v5702_v18, 1  ;;  %v5733_v9 = vrot.slane %v5703_v19, 1  ;;  %v5764_v33 = vmax.f32 %v5700_v0, %v5730_v10  ;;  %v5681_v51 = vld [vmem:[#allocation4 + $0x48] sm:$0xff] }
 0x666   : > { %5671 = vst.msk [vmem:[#allocation4 + $0x68] sm:$0x1f] %vm5670_vm11, %v5655_v45  ;;  %v9682_v17 = vpack.c.bf16 %v5763_v53, %v5762_v6  ;;  %v5691_v34 = vld [vmem:[#allocation4 + $0x3b] sm:$0xff]  ;;  %v5692_v49 = vld [vmem:[#allocation4 + $0x43] sm:$0xff]  ;;  %v5778_v45 = vld [vmem:[%s13554_s11 + $0x18] sm:$0x1] }
 0x667   : > { %5669 = vst.msk [vmem:[#allocation4 + $0x60] sm:$0xff] %vm5656_vm10, %v5654_v39  ;;  %v5732_v54 = vsel %vm3941_vm3, %v5729_v14, %v5731_v35  ;;  %v5704_v60 = vmax.f32 %v5678_v47, %v5691_v34  ;;  %v5705_v27 = vmax.f32 %v5679_v57, %v5692_v49  ;;  %v5734_v36 = vsel %vm3941_vm3, %v5731_v35, %v5733_v9  ;;  %v5680_v52 = vld [vmem:[#allocation4 + $0x40] sm:$0xff]  ;;  %v7868_v53 = vld [vmem:[%s13550_s7 + $0x10] sm:$0xff]  ;;  %v5887_v47 = vld [vmem:[%s13550_s7] sm:$0xff] }
 0x668   : > { %9683 = vmatprep.subr.bf16.mxu1 %v9682_v17  ;;  %v5765_v55 = vmax.f32 %v5701_v42, %v5732_v54  ;;  %v5766_v58 = vmax.f32 %v5702_v18, %v5734_v36  ;;  %v5776_v18 = vld [vmem:[%s13554_s11 + $0x8] sm:$0xff]  ;;  %v13663_v6 = vmov 0.0   ;;  %v10257_v39 = vmov 0.0|0.0   ;;  %v7875_v36 = vld [vmem:[%s13550_s7 + $0x30] sm:$0xff] }
 0x669   : > { %9685 = vmatpush3.bf16.msra.mxu1 %v9682_v17  ;;  %v5735_v26 = vrot.slane %v5704_v60, 1  ;;  %v5737_v30 = vrot.slane %v5705_v27, 1  ;;  %v5683_v13 = vld [vmem:[#allocation4 + $0x58] sm:$0xff]  ;;  %v5888_v34 = vld [vmem:[%s13550_s7 + $0x8] sm:$0xff] }
 0x66a   : > { %v9686_v50 = vpack.c.bf16 %v5765_v55, %v5764_v33  ;;  %v5693_v41 = vld [vmem:[#allocation4 + $0x4b] sm:$0xff]  ;;  %v5694_v40 = vld [vmem:[#allocation4 + $0x53] sm:$0xff]  ;;  %v9710_v49 = vpack.c.bf16 %v5888_v34, %v5887_v47 }
 0x66b   : > { %v5736_v38 = vsel %vm3941_vm3, %v5733_v9, %v5735_v26  ;;  %v5706_v7 = vmax.f32 %v5680_v52, %v5693_v41  ;;  %v5707_v37 = vmax.f32 %v5681_v51, %v5694_v40  ;;  %v5738_v16 = vsel %vm3941_vm3, %v5735_v26, %v5737_v30  ;;  %v5682_v44 = vld [vmem:[#allocation4 + $0x50] sm:$0xff]  ;;  %v7879_v52 = vld [vmem:[%s13550_s7 + $0x48] sm:$0xff]  ;;  %v7914_v47 = vld [vmem:[%s13551_s8] ss:$0 sm:$0xff] }
 0x66c   : > { %9687 = vmatprep.subr.bf16.mxu1 %v9686_v50  ;;  %v5767_v21 = vmax.f32 %v5703_v19, %v5736_v38  ;;  %v5768_v22 = vmax.f32 %v5704_v60, %v5738_v16  ;;  %v7869_v19 = vld [vmem:[%s13550_s7 + $0x18] sm:$0xff]  ;;  %v7872_v60 = vld [vmem:[%s13550_s7 + $0x20] sm:$0xff]  ;;  %v7881_v38 = vld [vmem:[%s13550_s7 + $0x50] sm:$0xff] }
 0x66d   : > { %9689 = vmatpush3.bf16.msra.mxu1 %v9686_v50  ;;  %v5739_v23 = vrot.slane %v5706_v7, 1  ;;  %v5741_v8 = vrot.slane %v5707_v37, 1  ;;  %v5697_v32 = vld [vmem:[#allocation4 + $0x6b] sm:$0x3]  ;;  %v9707_v10 = vpack.c.bf16 %v7869_v19, %v7868_v53  ;;  %v7876_v26 = vld [vmem:[%s13550_s7 + $0x38] sm:$0xff]  ;;  %v7878_v50 = vld [vmem:[%s13550_s7 + $0x40] sm:$0xff] }
 0x66e   : > { %v9690_v59 = vpack.c.bf16 %v5767_v21, %v5766_v58  ;;  %v5695_v28 = vld [vmem:[#allocation4 + $0x5b] sm:$0xff]  ;;  %v5696_v20 = vld [vmem:[#allocation4 + $0x63] sm:$0xff]  ;;  %v9719_v41 = vpack.c.bf16 %v7879_v52, %v7878_v50  ;;  %v7148_v52 = vld [vmem:[%s13555_s12] sm:$0x1] }
 0x66f   : > { %v5684_v3 = vld [vmem:[#allocation4 + $0x60] sm:$0x3]  ;;  %v5740_v46 = vsel %vm3941_vm3, %v5737_v30, %v5739_v23  ;;  %v5708_v2 = vmax.f32 %v5682_v44, %v5695_v28  ;;  %v5709_v12 = vmax.f32 %v5683_v13, %v5696_v20  ;;  %v5742_v42 = vsel %vm3941_vm3, %v5739_v23, %v5741_v8  ;;  %v7884_v21 = vld [vmem:[%s13550_s7 + $0x60] sm:$0xff]  ;;  %v7888_v13 = vld [vmem:[%s13550_s7 + $0x78] sm:$0xff] }
 0x670   : > { %9691 = vmatprep.subr.bf16.mxu1 %v9690_v59  ;;  %v5769_v5 = vmax.f32 %v5705_v27, %v5740_v46  ;;  %v5710_v0 = vmax.f32 %v5684_v3, %v5697_v32  ;;  %v5770_v25 = vmax.f32 %v5706_v7, %v5742_v42  ;;  %v7873_v27 = vld [vmem:[%s13550_s7 + $0x28] sm:$0xff]  ;;  %v9716_v30 = vpack.c.bf16 %v7876_v26, %v7875_v36  ;;  %v7882_v7 = vld [vmem:[%s13550_s7 + $0x58] sm:$0xff]  ;;  %v7890_v28 = vld [vmem:[%s13550_s7 + $0x80] sm:$0xff] }
 0x671   : > { %9693 = vmatpush3.bf16.msra.mxu1 %v9690_v59  ;;  %v5743_v63 = vrot.slane %v5708_v2, 1  ;;  %v5745_v4 = vrot.slane %v5709_v12, 1  ;;  %v9713_v33 = vpack.c.bf16 %v7873_v27, %v7872_v60  ;;  %v7885_v16 = vld [vmem:[%s13550_s7 + $0x68] sm:$0xff]  ;;  %v7911_v19 = vld [vmem:[%s13550_s7 + $0xf0] sm:$0xff]  ;;  %v7229_v27 = vld [vmem:[%s13556_s13 + $0x18] sm:$0xff] }
 0x672   : > { %v9694_v62 = vpack.c.bf16 %v5769_v5, %v5768_v22  ;;  %v5747_v56 = vrot.slane %v5710_v0, 1  ;;  %v9725_v23 = vpack.c.bf16 %v7885_v16, %v7884_v21  ;;  %v7891_v3 = vld [vmem:[%s13550_s7 + $0x88] sm:$0xff] }
 0x673   : > { %v5744_v24 = vsel %vm3941_vm3, %v5741_v8, %v5743_v63  ;;  %v5746_v29 = vsel %vm3941_vm3, %v5743_v63, %v5745_v4  ;;  %v7887_v8 = vld [vmem:[%s13550_s7 + $0x70] sm:$0xff]  ;;  %v9731_v20 = vpack.c.bf16 %v7891_v3, %v7890_v28  ;;  %v7897_v42 = vld [vmem:[%s13550_s7 + $0xa8] sm:$0xff]  ;;  %v7238_v28 = vld [vmem:[%s13556_s13 + $0x60] sm:$0xff] }
 0x674   : > { %9695 = vmatprep.subr.bf16.mxu1 %v9694_v62  ;;  %v5771_v14 = vmax.f32 %v5707_v37, %v5744_v24  ;;  %v5748_v11 = vsel %vm3941_vm3, %v5745_v4, %v5747_v56  ;;  %v5772_v1 = vmax.f32 %v5708_v2, %v5746_v29  ;;  %v5774_v15 = vmax.f32 %v5710_v0, %v5747_v56  ;;  %v7893_v2 = vld [vmem:[%s13550_s7 + $0x90] sm:$0xff]  ;;  %v7896_v0 = vld [vmem:[%s13550_s7 + $0xa0] sm:$0xff]  ;;  %v7900_v56 = vld [vmem:[%s13550_s7 + $0xb8] sm:$0xff] }
 0x675   : > { %9697 = vmatpush3.bf16.msra.mxu1 %v9694_v62  ;;  %v5773_v48 = vmax.f32 %v5709_v12, %v5748_v11  ;;  %v9722_v37 = vpack.c.bf16 %v7882_v7, %v7881_v38  ;;  %v9728_v32 = vpack.c.bf16 %v7888_v13, %v7887_v8  ;;  %v7894_v12 = vld [vmem:[%s13550_s7 + $0x98] sm:$0xff]  ;;  %v9737_v63 = vpack.c.bf16 %v7897_v42, %v7896_v0  ;;  %v7899_v62 = vld [vmem:[%s13550_s7 + $0xb0] sm:$0xff]  ;;  %v7227_v60 = vld [vmem:[%s13556_s13 + $0x8] sm:$0xff] }
 0x676   : > { %v9698_v61 = vpack.c.bf16 %v5771_v14, %v5770_v25  ;;  %v9734_v22 = vpack.c.bf16 %v7894_v12, %v7893_v2  ;;  %v9740_v24 = vpack.c.bf16 %v7900_v56, %v7899_v62  ;;  %v7902_v25 = vld [vmem:[%s13550_s7 + $0xc0] sm:$0xff]  ;;  %v7903_v14 = vld [vmem:[%s13550_s7 + $0xc8] sm:$0xff]  ;;  %v7232_v7 = vld [vmem:[%s13556_s13 + $0x30] sm:$0xff] }
 0x677   : > { %v9702_v31 = vpack.c.bf16 %v5773_v48, %v5772_v1  ;;  %v9743_v11 = vpack.c.bf16 %v7903_v14, %v7902_v25  ;;  %v7905_v48 = vld [vmem:[%s13550_s7 + $0xd0] sm:$0xff]  ;;  %v7231_v26 = vld [vmem:[%s13556_s13 + $0x28] sm:$0xff]  ;;  %v7230_v38 = vld [vmem:[%s13556_s13 + $0x20] sm:$0xff] }
 0x678   : > { %9699 = vmatprep.subr.bf16.mxu1 %v9698_v61  ;;  %v9760_v21 = vpack.c.bf16 %v7232_v7, %v7230_v38  ;;  %v7239_v8 = vld [vmem:[%s13556_s13 + $0x68] sm:$0xff]  ;;  %v7241_v13 = vld [vmem:[%s13556_s13 + $0x78] sm:$0xff]  ;;  %v7240_v3 = vld [vmem:[%s13556_s13 + $0x70] sm:$0xff] }
 0x679   : > { %9701 = vmatpush3.bf16.msra.mxu1 %v9698_v61  ;;  %v7906_v61 = vld [vmem:[%s13550_s7 + $0xd8] sm:$0xff]  ;;  %v9768_v2 = vpack.c.bf16 %v7240_v3, %v7238_v28  ;;  %v7247_v0 = vld [vmem:[%s13556_s13 + $0xa8] sm:$0xff]  ;;  %v7246_v62 = vld [vmem:[%s13556_s13 + $0xa0] sm:$0xff] }
 0x67a   : > { %9703 = vmatprep.subr.bf16.mxu1 %v9702_v31  ;;  %v7249_v42 = vld [vmem:[%s13556_s13 + $0xb8] sm:$0xff]  ;;  %v7248_v56 = vld [vmem:[%s13556_s13 + $0xb0] sm:$0xff]  ;;  %v7362_v38 = vld [vmem:[%s13558_s15 + $0x88] sm:$0xff] }
 0x67b   : > { %v9776_v25 = vpack.c.bf16 %v7248_v56, %v7246_v62 }
 0x67d   : > { %9705 = vmatpush3.bf16.msra.mxu1 %v9702_v31  ;;  %v9746_v31 = vpack.c.bf16 %v7906_v61, %v7905_v48  ;;  %v7255_v61 = vld [vmem:[%s13556_s13 + $0xe8] sm:$0xff] }
 0x67e   : > { %9487 = vmatprep.subr.msk.mxu1 %vm5792_vm12, %v5774_v15 }
 0x681   : > { %9488 = vmatpush3.msk.msra.mxu1 %vm5792_vm12, %v5774_v15 }
 0x682   : > { %9490 = vmatmul.mubr.msk.f32.vlgmr.msra.gmra.mrb[232].mxu1 %vm5779_vm9, %v5776_v18  ;;  %9706 = vmatprep.subr.bf16.mxu1 %v10257_v39  ;;  %v7908_v18 = vld [vmem:[%s13550_s7 + $0xe0] sm:$0xff] }
 0x683   : > { %9492 = vmatprep.mubr.msk.f32.mxu1 %vm5779_vm9, %v5777_v43  ;;  %9708 = vmatpush3.bf16.msra.mxu1 %v9707_v10  ;;  %v7909_v43 = vld [vmem:[%s13550_s7 + $0xe8] sm:$0xff]  ;;  %v7912_v10 = vld [vmem:[%s13550_s7 + $0xf8] sm:$0xff] }
 0x684   : > { %9709 = vmatprep.subr.bf16.mxu1 %v10257_v39 }
 0x686   : > { %9493 = vmatmul.mubr.msk.f32.gmra.mrb[234].mxu1 %vm5779_vm9, %v5778_v45  ;;  %v9749_v45 = vpack.c.bf16 %v7909_v43, %v7908_v18  ;;  %v7346_v18 = vld [vmem:[%s13558_s15 + $0x8] sm:$0xff] }
 0x687   : > { %9499 = vmatprep.mubr.msk.f32.mxu1 %vm10255_vm1, %v13663_v6 }
 0x755   : > { %v9491_v35 = vpop.f32.mrb[232].mxu1 }
 0x756   : > { %5882 = vst.msk [vmem:[#allocation5 + $0x8] sm:$0xff] %vm5656_vm10, %v9491_v35  ;;  %v5862_v57 = vpop.f32.mrb[233].mxu1  ;;  %v9752_v35 = vpack.c.bf16 %v7912_v10, %v7911_v19 }
 0x757   : > { %5881 = vst.msk [vmem:[#allocation5] sm:$0xff] %vm5656_vm10, %v5862_v57 }
 0x759   : > { %v9494_v17 = vpop.f32.mrb[234].mxu1 }
 0x75a   : > { %5885 = vst.msk [vmem:[#allocation5 + $0x18] sm:$0x1] %vm5884_vm13, %v9494_v17  ;;  %v5872_v9 = vpop.f32.mrb[235].mxu1 }
 0x75b   : > { %5883 = vst.msk [vmem:[#allocation5 + $0x10] sm:$0xff] %vm5656_vm10, %v5872_v9  ;;  %v7915_v9 = vld [vmem:[%s13552_s9] ss:$0 sm:$0xff] }
 0x75d   : > { %v6429_v46 = vld [vmem:[#allocation5 + $0x8] sm:$0x7f] }
 0x75e   : > { %v5889_v54 = vld [vmem:[#allocation5 + $0x1] sm:$0x7f] }
 0x75f   : > { %9500 = vmatmul.mubr.msk.f32.vlgmr.msra.gmra.mrb[236].mxu1 %vm5656_vm10, %v5889_v54  ;;  %v5886_v55 = vld [vmem:[#allocation5] sm:$0x7f]  ;;  %v6351_v59 = vld [vmem:[#allocation5 + $0x7] sm:$0x7f] }
 0x760   : > { %9711 = vmatpush3.bf16.msra.mxu1 %v9710_v49  ;;  %9506 = vmatprep.mubr.msk.f32.mxu1 %vm10255_vm1, %v13663_v6  ;;  %v6039_v51 = vld [vmem:[#allocation5 + $0x2] sm:$0x7f] }
 0x761   : > { %9712 = vmatprep.subr.bf16.mxu1 %v10257_v39  ;;  %v6117_v40 = vld [vmem:[#allocation5 + $0x3] sm:$0x7f] }
 0x762   : > { %v6195_v58 = vld [vmem:[#allocation5 + $0x5] sm:$0x7f]  ;;  %v6663_v29 = vld [vmem:[#allocation5 + $0xc] sm:$0x7f] }
 0x763   : > { %v6273_v44 = vld [vmem:[#allocation5 + $0x6] sm:$0x7f]  ;;  %v6741_v1 = vld [vmem:[#allocation5 + $0xd] sm:$0x7f] }
 0x764   : > { %v6507_v5 = vld [vmem:[#allocation5 + $0xa] sm:$0x7f]  ;;  %v6975_v57 = vld [vmem:[#allocation5 + $0x11] sm:$0x7f] }
 0x765   : > { %v6585_v4 = vld [vmem:[#allocation5 + $0xb] sm:$0x7f]  ;;  %v7053_v17 = vld [vmem:[#allocation5 + $0x12] sm:$0x7f] }
 0x766   : > { %v6819_v15 = vld [vmem:[#allocation5 + $0xf] sm:$0x7f] }
 0x767   : > { %9507 = vmatmul.mubr.msk.f32.vlgmr.msra.gmra.mrb[236].mxu1 %vm5656_vm10, %v5886_v55  ;;  %v6897_v53 = vld [vmem:[#allocation5 + $0x10] sm:$0x7f]  ;;  %v7228_v55 = vld [vmem:[%s13556_s13 + $0x10] sm:$0xff] }
 0x768   : > { %9714 = vmatpush3.bf16.msra.mxu1 %v9713_v33  ;;  %9513 = vmatprep.mubr.msk.f32.mxu1 %vm10255_vm1, %v13663_v6  ;;  %v7226_v33 = vld [vmem:[%s13556_s13] sm:$0xff] }
 0x769   : > { %9715 = vmatprep.subr.bf16.mxu1 %v10257_v39 }
 0x76f   : > { %9514 = vmatmul.mubr.msk.f32.vlgmr.msra.gmra.mrb[236].mxu1 %vm5656_vm10, %v6039_v51  ;;  %v9754_v51 = vpack.c.bf16 %v7229_v27, %v7227_v60  ;;  %v7354_v60 = vld [vmem:[%s13558_s15 + $0x48] sm:$0xff] }
 0x770   : > { %9717 = vmatpush3.bf16.msra.mxu1 %v9716_v30  ;;  %9520 = vmatprep.mubr.msk.f32.mxu1 %vm10255_vm1, %v13663_v6  ;;  %v7233_v30 = vld [vmem:[%s13556_s13 + $0x38] sm:$0xff] }
 0x771   : > { %9718 = vmatprep.subr.bf16.mxu1 %v10257_v39 }
 0x777   : > { %9521 = vmatmul.mubr.msk.f32.vlgmr.msra.gmra.mrb[236].mxu1 %vm5656_vm10, %v6117_v40  ;;  %v9758_v40 = vpack.c.bf16 %v7233_v30, %v7231_v26  ;;  %v7357_v26 = vld [vmem:[%s13558_s15 + $0x60] sm:$0xff]  ;;  %v7358_v30 = vld [vmem:[%s13558_s15 + $0x68] sm:$0xff] }
 0x778   : > { %9720 = vmatpush3.bf16.msra.mxu1 %v9719_v41  ;;  %9527 = vmatprep.mubr.msk.f32.mxu1 %vm10255_vm1, %v13663_v6  ;;  %v9756_v41 = vpack.c.bf16 %v7228_v55, %v7226_v33  ;;  %v7355_v33 = vld [vmem:[%s13558_s15 + $0x50] sm:$0xff]  ;;  %v7356_v55 = vld [vmem:[%s13558_s15 + $0x58] sm:$0xff] }
 0x779   : > { %9721 = vmatprep.subr.bf16.mxu1 %v10257_v39 }
 0x77f   : > { %9528 = vmatmul.mubr.msk.f32.vlgmr.msra.gmra.mrb[236].mxu1 %vm5656_vm10, %v6195_v58  ;;  %v7237_v58 = vld [vmem:[%s13556_s13 + $0x58] sm:$0xff] }
 0x780   : > { %9723 = vmatpush3.bf16.msra.mxu1 %v9722_v37  ;;  %9534 = vmatprep.mubr.msk.f32.mxu1 %vm10255_vm1, %v13663_v6  ;;  %v7235_v37 = vld [vmem:[%s13556_s13 + $0x48] sm:$0xff] }
 0x781   : > { %9724 = vmatprep.subr.bf16.mxu1 %v10257_v39  ;;  %v9762_v16 = vpack.c.bf16 %v7237_v58, %v7235_v37  ;;  %v7363_v37 = vld [vmem:[%s13558_s15 + $0x90] sm:$0xff]  ;;  %v7364_v58 = vld [vmem:[%s13558_s15 + $0x98] sm:$0xff] }
 0x787   : > { %9535 = vmatmul.mubr.msk.f32.vlgmr.msra.gmra.mrb[236].mxu1 %vm5656_vm10, %v6273_v44  ;;  %v7236_v44 = vld [vmem:[%s13556_s13 + $0x50] sm:$0xff] }
 0x788   : > { %9726 = vmatpush3.bf16.msra.mxu1 %v9725_v23  ;;  %9541 = vmatprep.mubr.msk.f32.mxu1 %vm10255_vm1, %v13663_v6  ;;  %v7234_v23 = vld [vmem:[%s13556_s13 + $0x40] sm:$0xff] }
 0x789   : > { %9727 = vmatprep.subr.bf16.mxu1 %v10257_v39 }
 0x78f   : > { %9542 = vmatmul.mubr.msk.f32.vlgmr.msra.gmra.mrb[236].mxu1 %vm5656_vm10, %v6351_v59  ;;  %v9766_v59 = vpack.c.bf16 %v7241_v13, %v7239_v8  ;;  %v7256_v8 = vld [vmem:[%s13557_s14] sm:$0x3] }
 0x790   : > { %9729 = vmatpush3.bf16.msra.mxu1 %v9728_v32  ;;  %9548 = vmatprep.mubr.msk.f32.mxu1 %vm10255_vm1, %v13663_v6  ;;  %v9764_v32 = vpack.c.bf16 %v7236_v44, %v7234_v23  ;;  %v7258_v23 = vlaneseq }
 0x791   : > { %9730 = vmatprep.subr.bf16.mxu1 %v10257_v39 }
 0x792   : > { %v7259_v44 = vshrl.u32 %v7258_v23, 7 }
 0x794   : > { %v7264_v13 = vsub.s32 1, %v7259_v44 }
 0x797   : > { %9549 = vmatmul.mubr.msk.f32.vlgmr.msra.gmra.mrb[236].mxu1 %vm5656_vm10, %v6429_v46  ;;  %v7245_v46 = vld [vmem:[%s13556_s13 + $0x98] sm:$0xff] }
 0x798   : > { %9732 = vmatpush3.bf16.msra.mxu1 %v9731_v20  ;;  %9555 = vmatprep.mubr.msk.f32.mxu1 %vm10255_vm1, %v13663_v6  ;;  %v7243_v20 = vld [vmem:[%s13556_s13 + $0x88] sm:$0xff] }
 0x799   : > { %9733 = vmatprep.subr.bf16.mxu1 %v10257_v39  ;;  %v9770_v12 = vpack.c.bf16 %v7245_v46, %v7243_v20 }
 0x79f   : > { %9556 = vmatmul.mubr.msk.f32.vlgmr.msra.gmra.mrb[236].mxu1 %vm5656_vm10, %v6507_v5  ;;  %v7244_v5 = vld [vmem:[%s13556_s13 + $0x90] sm:$0xff] }
 0x7a0   : > { %9735 = vmatpush3.bf16.msra.mxu1 %v9734_v22  ;;  %9562 = vmatprep.mubr.msk.f32.mxu1 %vm10255_vm1, %v13663_v6  ;;  %v7242_v22 = vld [vmem:[%s13556_s13 + $0x80] sm:$0xff] }
 0x7a1   : > { %9736 = vmatprep.subr.bf16.mxu1 %v10257_v39 }
 0x7a7   : > { %9563 = vmatmul.mubr.msk.f32.vlgmr.msra.gmra.mrb[236].mxu1 %vm5656_vm10, %v6585_v4  ;;  %v9774_v4 = vpack.c.bf16 %v7249_v42, %v7247_v0 }
 0x7a8   : > { %9738 = vmatpush3.bf16.msra.mxu1 %v9737_v63  ;;  %9569 = vmatprep.mubr.msk.f32.mxu1 %vm10255_vm1, %v13663_v6  ;;  %v9772_v63 = vpack.c.bf16 %v7244_v5, %v7242_v22 }
 0x7a9   : > { %9739 = vmatprep.subr.bf16.mxu1 %v10257_v39 }
 0x7af   : > { %9570 = vmatmul.mubr.msk.f32.vlgmr.msra.gmra.mrb[236].mxu1 %vm5656_vm10, %v6663_v29  ;;  %v7253_v29 = vld [vmem:[%s13556_s13 + $0xd8] sm:$0xff] }
 0x7b0   : > { %9741 = vmatpush3.bf16.msra.mxu1 %v9740_v24  ;;  %9576 = vmatprep.mubr.msk.f32.mxu1 %vm10255_vm1, %v13663_v6  ;;  %v7251_v24 = vld [vmem:[%s13556_s13 + $0xc8] sm:$0xff] }
 0x7b1   : > { %9742 = vmatprep.subr.bf16.mxu1 %v10257_v39  ;;  %v9778_v14 = vpack.c.bf16 %v7253_v29, %v7251_v24 }
 0x7b7   : > { %9577 = vmatmul.mubr.msk.f32.vlgmr.msra.gmra.mrb[236].mxu1 %vm5656_vm10, %v6741_v1  ;;  %v7252_v1 = vld [vmem:[%s13556_s13 + $0xd0] sm:$0xff] }
 0x7b8   : > { %9744 = vmatpush3.bf16.msra.mxu1 %v9743_v11  ;;  %9583 = vmatprep.mubr.msk.f32.mxu1 %vm10255_vm1, %v13663_v6  ;;  %v7250_v11 = vld [vmem:[%s13556_s13 + $0xc0] sm:$0xff] }
 0x7b9   : > { %9745 = vmatprep.subr.bf16.mxu1 %v10257_v39  ;;  %v9780_v48 = vpack.c.bf16 %v7252_v1, %v7250_v11 }
 0x7bf   : > { %9584 = vmatmul.mubr.msk.f32.vlgmr.msra.gmra.mrb[236].mxu1 %vm5656_vm10, %v6819_v15  ;;  %v7345_v15 = vld [vmem:[%s13558_s15] sm:$0xff] }
 0x7c0   : > { %9747 = vmatpush3.bf16.msra.mxu1 %v9746_v31  ;;  %9590 = vmatprep.mubr.msk.f32.mxu1 %vm10255_vm1, %v13663_v6  ;;  %v7254_v31 = vld [vmem:[%s13556_s13 + $0xe0] sm:$0xff]  ;;  %v9783_v43 = vpack.c.bf16 %v7346_v18, %v7345_v15 }
 0x7c1   : > { %9748 = vmatprep.subr.bf16.mxu1 %v10257_v39 }
 0x7c7   : > { %9591 = vmatmul.mubr.msk.f32.vlgmr.msra.gmra.mrb[236].mxu1 %vm5656_vm10, %v6897_v53  ;;  %v7348_v53 = vld [vmem:[%s13558_s15 + $0x18] sm:$0xff] }
 0x7c8   : > { %9750 = vmatpush3.bf16.msra.mxu1 %v9749_v45  ;;  %9597 = vmatprep.mubr.msk.f32.mxu1 %vm10255_vm1, %v13663_v6  ;;  %v7347_v45 = vld [vmem:[%s13558_s15 + $0x10] sm:$0xff] }
 0x7c9   : > { %9751 = vmatprep.subr.bf16.mxu1 %v10257_v39 }
 0x7cf   : > { %9598 = vmatmul.mubr.msk.f32.vlgmr.msra.gmra.mrb[236].mxu1 %vm5656_vm10, %v6975_v57  ;;  %v7349_v57 = vld [vmem:[%s13558_s15 + $0x20] sm:$0xff] }
 0x7d0   : > { %9753 = vmatpush3.bf16.msra.mxu1 %v9752_v35  ;;  %9604 = vmatprep.mubr.msk.f32.mxu1 %vm10255_vm1, %v13663_v6  ;;  %v9786_v35 = vpack.c.bf16 %v7348_v53, %v7347_v45 }
 0x7d1   : > { %9607 = vmatprep.subr.mxu1 %v13663_v6 }
 0x7d7   : > { %9605 = vmatmul.mubr.msk.f32.vlgmr.msra.gmra.mrb[236].mxu1 %vm5656_vm10, %v7053_v17  ;;  %v7350_v17 = vld [vmem:[%s13558_s15 + $0x28] sm:$0xff] }
 0x7d8   : > { %9609 = vmatprep.mubr.msk.f32.mxu1 %vm10255_vm1, %v13663_v6  ;;  %vm7441_vm1 = vcmask 81920  }
 0x8aa   : > { %v7126_v34 = vpop.f32.mrb[236].mxu1 }
 0x8ab   : > { %v7138_v49 = vmul.f32 %v7914_v47, %v7126_v34  ;;  %v9606_v54 = vpop.f32.mrb[237].mxu1  ;;  %v9789_v47 = vpack.c.bf16 %v7350_v17, %v7349_v57  ;;  %v7351_v34 = vld [vmem:[%s13558_s15 + $0x30] sm:$0xff] }
 0x8ac   : > { %v7353_v54 = vld [vmem:[%s13558_s15 + $0x40] sm:$0xff] }
 0x8ad   : > { %v7146_v36 = vadd.f32 %v7915_v9, %v7138_v49  ;;  %v7352_v9 = vld [vmem:[%s13558_s15 + $0x38] sm:$0xff]  ;;  %v9795_v27 = vpack.c.bf16 %v7354_v60, %v7353_v54 }
 0x8ae   : > { %v9792_v49 = vpack.c.bf16 %v7352_v9, %v7351_v34 }
 0x8af   : > { %v7147_v50 = vmax.f32 %v7146_v36, 0.0  ;;  %v9798_v36 = vpack.c.bf16 %v7356_v55, %v7355_v33 }
 0x8b1   : > { %9608 = vmatpush3.msk.msra.mxu1 %vm3941_vm3, %v7147_v50  ;;  %v7359_v50 = vld [vmem:[%s13558_s15 + $0x70] sm:$0xff] }
 0x8b2   : > { %9610 = vmatmul.mubr.msk.f32.vlgmr.msra.gmra.mrb[238].mxu1 %vm7149_vm14, %v7148_v52  ;;  %9755 = vmatprep.subr.bf16.mxu1 %v9754_v51  ;;  %v9801_v51 = vpack.c.bf16 %v7358_v30, %v7357_v26  ;;  %v7360_v52 = vld [vmem:[%s13558_s15 + $0x78] sm:$0xff] }
 0x8b3   : > { %9757 = vmatpush1.bf16.msra.mxu1 %v9756_v41  ;;  %7336 = vmatprep.mubr.f32.mxu1 %v13663_v6  ;;  %v9804_v41 = vpack.c.bf16 %v7360_v52, %v7359_v50 }
 0x8b4   : > { %9759 = vmatprep.subr.bf16.mxu1 %v9758_v40  ;;  %v7361_v40 = vld [vmem:[%s13558_s15 + $0x80] sm:$0xff] }
 0x8b5   : > { %v9807_v7 = vpack.c.bf16 %v7362_v38, %v7361_v40 }
 0x8b7   : > { %9761 = vmatpush1.bf16.msra.mxu1 %v9760_v21  ;;  %v9810_v21 = vpack.c.bf16 %v7364_v58, %v7363_v37 }
 0x8b8   : > { %9763 = vmatprep.subr.bf16.mxu1 %v9762_v16  ;;  %v7365_v16 = vld [vmem:[%s13558_s15 + $0xa0] sm:$0xff] }
 0x8bb   : > { %9765 = vmatpush1.bf16.msra.mxu1 %v9764_v32 }
 0x8bc   : > { %9767 = vmatprep.subr.bf16.mxu1 %v9766_v59  ;;  %v7265_v59 = vrot.slane %v7256_v8, %v7264_v13 }
 0x8bf   : > { %9769 = vmatpush1.bf16.msra.mxu1 %v9768_v2 }
 0x8c0   : > { %9771 = vmatprep.subr.bf16.mxu1 %v9770_v12  ;;  %v7366_v12 = vld [vmem:[%s13559_s16] sm:$0x1] }
 0x8c3   : > { %9773 = vmatpush1.bf16.msra.mxu1 %v9772_v63 }
 0x8c4   : > { %9775 = vmatprep.subr.bf16.mxu1 %v9774_v4 }
 0x8c7   : > { %9777 = vmatpush1.bf16.msra.mxu1 %v9776_v25 }
 0x8c8   : > { %9779 = vmatprep.subr.bf16.mxu1 %v9778_v14 }
 0x8cb   : > { %9781 = vmatpush1.bf16.msra.mxu1 %v9780_v48 }
 0x8cc   : > { %7300 = vmatprep.subr.mxu1 %v7255_v61 }
 0x8cf   : > { %7301 = vmatpush1.msra.mxu1 %v7254_v31 }
 0x8d0   : > { %9782 = vmatprep.subr.bf16.mxu1 %v10257_v39 }
 0x985   : > { %v7222_v19 = vpop.f32.mrb[238].mxu1 }
 0x986   : > { %7918 = vmatmul.mubr.msk.f32.vlgmr.msra.gmra.mrb[240].mxu1 %vm7268_vm15, %v7222_v19  ;;  %v9611_v10 = vpop.f32.mrb[239].mxu1 }
 0x987   : > { %9784 = vmatpush1.bf16.msra.mxu1 %v9783_v43 }
 0x988   : > { %9785 = vmatprep.subr.bf16.mxu1 %v10257_v39 }
 0x98b   : > { %9787 = vmatpush1.bf16.msra.mxu1 %v9786_v35 }
 0x98c   : > { %9788 = vmatprep.subr.bf16.mxu1 %v10257_v39 }
 0x98f   : > { %9790 = vmatpush1.bf16.msra.mxu1 %v9789_v47 }
 0x990   : > { %9791 = vmatprep.subr.bf16.mxu1 %v10257_v39 }
 0x993   : > { %9793 = vmatpush1.bf16.msra.mxu1 %v9792_v49 }
 0x994   : > { %9794 = vmatprep.subr.bf16.mxu1 %v10257_v39 }
 0x997   : > { %9796 = vmatpush1.bf16.msra.mxu1 %v9795_v27 }
 0x998   : > { %9797 = vmatprep.subr.bf16.mxu1 %v10257_v39 }
 0x99b   : > { %9799 = vmatpush1.bf16.msra.mxu1 %v9798_v36 }
 0x99c   : > { %9800 = vmatprep.subr.bf16.mxu1 %v10257_v39 }
 0x99f   : > { %9802 = vmatpush1.bf16.msra.mxu1 %v9801_v51 }
 0x9a0   : > { %9803 = vmatprep.subr.bf16.mxu1 %v10257_v39 }
 0x9a3   : > { %9805 = vmatpush1.bf16.msra.mxu1 %v9804_v41 }
 0x9a4   : > { %9806 = vmatprep.subr.bf16.mxu1 %v10257_v39 }
 0x9a7   : > { %9808 = vmatpush1.bf16.msra.mxu1 %v9807_v7 }
 0x9a8   : > { %9809 = vmatprep.subr.bf16.mxu1 %v10257_v39  ;;  %v7260_v39 = vsub.s32 0, %v7259_v44 }
 0x9aa   : > { %v7261_v32 = vrot.slane %v7256_v8, %v7260_v39 }
 0x9ab   : > { %9811 = vmatpush1.bf16.msra.mxu1 %v9810_v21 }
 0x9ac   : > { %7411 = vmatprep.subr.mxu1 %v13663_v6 }
 0x9af   : > { %7412 = vmatpush1.msra.mxu1 %v7365_v16 }
 0xa59   : > { %v7338_v28 = vpop.f32.mrb[240].mxu1 }
 0xa5a   : > { %v7339_v3 = vadd.f32 %v7338_v28, %v7261_v32  ;;  %v7340_v20 = vpop.f32.mrb[241].mxu1 }
 0xa5b   : > { %v7341_v6 = vadd.f32 %v7340_v20, %v7265_v59 }
 0xa5c   : > { %v7343_v2 = vmax.f32 %v7339_v3, 0.0 }
 0xa5d   : > { %v7344_v46 = vmax.f32 %v7341_v6, 0.0 }
 0xa5f   : > { %7919 = vmatprep.mubr.msk.f32.mxu1 %vm7367_vm0, %v7344_v46 }
 0xa60   : > { %7436 = vmatmul.mubr.f32.vlgmr.msra.gmra.mrb[242].mxu1 %v7343_v2 }
 0xb33   : > { %v7437_v22 = vpop.f32.mrb[242].mxu1 }
 0xb34   : > { %v7438_v5 = vadd.f32 %v7437_v22, %v7366_v12  ;;  %v7439_v0 = vpop.f32.mrb[243].mxu1 }
 0xb36   : > { %7442 = vst.msk [vmem:[%s544_s1] sm:$0x1] %vm7441_vm1, %v7438_v5 }
 0xb37 PF: > { %s27_s24 = sadd.s32 1, %s10252_s24  }
 0xb38   : > { %p24_p4 = scmp.ge.s32.totalorder %s27_s24, 4  }
 0xb3a   :  { %26 = sbr.rel (!%p24_p4) target bundleno = 3 (0x3), region = 139 }

</bundles_post_ra>
